<compile_context>
chip_gen: v7x
topology: tpu7x:2x2x1
jax: 0.10.0
libtpu: 0.0.40
codegen_flags: <defaults>
</compile_context>

<pallas_src>
import numpy as np

import jax
import jax.numpy as jnp
from jax import lax
from jax.experimental import pallas as pl
from jax.experimental.pallas import tpu as pltpu


KH = KW = 5           # conv kernel size
PAD = 2               # conv padding (same conv)


def _round_up(n, m):
    return (n + m - 1) // m * m


# ------------------------------- fused kernel ------------------------------- #

def _cnn_fused_kernel(x_ref, wb1_ref, b1_ref, pe1_ref, po1_ref,
                      wb2_ref, b2_ref, pe2_ref, po2_ref,
                      w3_ref, b3_ref, p2_ref, out_ref):
    """Entire CNN forward for one image.

    x_ref   : (32, 128)       row-padded image, lanes 0..27 real, rest zero
    wb1_ref : (640, 512)      stage-1 banded weights (K = 5 taps * 128 lanes),
                              output cols parity-ordered: [even ow | odd ow],
                              each half (ow2*16 + c), padded to 256
    b1_ref  : (1, 512)        stage-1 bias row (f32, zeros in pad cols)
    pe1/po1 : (14, 28)        0/1 row selectors (even / odd conv rows, f32)
    wb2_ref : (1280, 512)     stage-2 banded weights (K = 5 * 256)
    b2_ref  : (1, 512)        stage-2 bias row
    pe2/po2 : (7, 14)         stage-2 row selectors
    w3_ref  : (7, 256, 128)   linear head, pre-permuted to NHWC rows, N pad 128
    b3_ref  : (1, 128)        head bias row (f32)
    p2_ref  : (7, 256)        pooled stage-2 output (NHWC rows, f32)
    out_ref : (1, 128)        logits (first 10 lanes real)
    """
    cdt = wb1_ref.dtype                      # bf16 (or f32 validation path)
    H1 = x_ref.shape[0] - (KH - 1)           # 28 conv-1 output rows
    H2 = pe1_ref.shape[0]                    # 14 pooled rows == conv-2 rows
    H3 = pe2_ref.shape[0]                    # 7  pooled rows of stage 2

    # ---------------- stage 1: conv(5x5,s1,p2) + bias + ReLU + 2x2 pool ----- #
    x = x_ref[...]                                                   # (32,128)
    # one long-K matmul: LHS = [x shifted by ki for ki in 0..4] along lanes
    lhs1 = jnp.concatenate([x[ki:ki + H1, :] for ki in range(KH)], axis=1)
    acc1 = jnp.dot(lhs1, wb1_ref[...], preferred_element_type=jnp.float32)
    acc1 = jnp.maximum(acc1 + b1_ref[...], 0.0)                      # (28,512)
    half1 = acc1.shape[1] // 2
    cm1 = jnp.maximum(acc1[:, :half1], acc1[:, half1:])  # width pool (28,256)
    p1 = jnp.maximum(                                    # height pool (14,256)
        jnp.dot(pe1_ref[...], cm1, preferred_element_type=jnp.float32),
        jnp.dot(po1_ref[...], cm1, preferred_element_type=jnp.float32))
    # p1 cols: ow2*16 + c (224 real, 32 zero pad) == stage-2 input lane layout.

    # ---------------- stage 2: conv(5x5,s1,p2) + bias + ReLU + 2x2 pool ----- #
    zrow = jnp.zeros((PAD, p1.shape[1]), jnp.float32)
    xp2 = jnp.concatenate([zrow, p1, zrow], axis=0).astype(cdt)      # (18,256)
    lhs2 = jnp.concatenate([xp2[ki:ki + H2, :] for ki in range(KH)], axis=1)
    acc2 = jnp.dot(lhs2, wb2_ref[...], preferred_element_type=jnp.float32)
    acc2 = jnp.maximum(acc2 + b2_ref[...], 0.0)                      # (14,512)
    half2 = acc2.shape[1] // 2
    cm2 = jnp.maximum(acc2[:, :half2], acc2[:, half2:])              # (14,256)
    p2 = jnp.maximum(
        jnp.dot(pe2_ref[...], cm2, preferred_element_type=jnp.float32),
        jnp.dot(po2_ref[...], cm2, preferred_element_type=jnp.float32))  # (7,256)
    p2_ref[...] = p2.astype(p2_ref.dtype)

    # ---------------- fused linear head ------------------------------------ #
    # logits = b3 + sum_oh p2[oh,:] @ w3[oh] ; w3 rows already NHWC-permuted.
    p2c = p2.astype(cdt)
    acc3 = b3_ref[...]                                               # (1,128) f32
    for oh in range(H3):                     # static unroll (7 tiny matmuls)
        acc3 = acc3 + jnp.dot(p2c[oh:oh + 1, :], w3_ref[oh],
                              preferred_element_type=jnp.float32)
    out_ref[...] = acc3.astype(out_ref.dtype)


def cnn_fused(xp, prep):
    """xp: (B, 32, 128) row/lane-padded images in the compute dtype."""
    B = xp.shape[0]
    s1, s2 = prep["stage1"], prep["stage2"]

    def whole(a):                            # full-array block, fetched once
        return pl.BlockSpec(a.shape, lambda b, _n=a.ndim: (0,) * _n)

    consts = (s1["wband"], s1["bias_row"], s1["prow_even"], s1["prow_odd"],
              s2["wband"], s2["bias_row"], s2["prow_even"], s2["prow_odd"],
              prep["w3k"], prep["b3_row"])

    return pl.pallas_call(
        _cnn_fused_kernel,
        out_shape=(jax.ShapeDtypeStruct((B, 7, 256), jnp.float32),
                   jax.ShapeDtypeStruct((B, 1, 128), jnp.float32)),
        grid=(B,),
        in_specs=[pl.BlockSpec((None,) + xp.shape[1:], lambda b: (b, 0, 0))]
                 + [whole(a) for a in consts],
        out_specs=(pl.BlockSpec((None, 7, 256), lambda b: (b, 0, 0)),
                   pl.BlockSpec((None, 1, 128), lambda b: (b, 0, 0))),
        compiler_params=pltpu.CompilerParams(
            dimension_semantics=("parallel",)),
    )(xp, *consts)


# -------------------------- one-time weight prep ---------------------------- #

def prepare_params(params, compute_dtype=jnp.bfloat16):
    """Host-side, once: banded conv weights with parity-ordered (pool-ready),
    128-aligned output columns; bias rows; 0/1 row-pool selectors; the linear
    head pre-permuted to the kernel's NHWC row layout.  MXU operands are stored
    in `compute_dtype`; biases stay f32 and accumulation is always f32."""

    def conv_stage(w, b, W):
        w = np.asarray(w, np.float32)            # (Cout, Cin, KH, KW) torch
        b = np.asarray(b, np.float32)
        Cout, Cin, KH_, KW_ = w.shape
        lanes = _round_up(W * Cin, 128)          # per-tap lane width of LHS
        half = _round_up((W // 2) * Cout, 128)   # lane width of a parity half
        band = np.zeros((KH_ * lanes, 2 * half), np.float32)
        brow = np.zeros((1, 2 * half), np.float32)
        for ow in range(W):
            cbase = (ow % 2) * half + (ow // 2) * Cout
            brow[0, cbase:cbase + Cout] = b
            for ki in range(KH_):
                for kj in range(KW_):
                    wi = ow + kj - PAD           # unpadded input column
                    if 0 <= wi < W:              # horizontal pad folded away
                        for ci in range(Cin):
                            band[ki * lanes + wi * Cin + ci,
                                 cbase:cbase + Cout] = w[:, ci, ki, kj]
        Hh = W // 2
        pe = np.zeros((Hh, W), np.float32)
        po = np.zeros((Hh, W), np.float32)
        pe[np.arange(Hh), 2 * np.arange(Hh)] = 1.0
        po[np.arange(Hh), 2 * np.arange(Hh) + 1] = 1.0
        return dict(wband=jnp.asarray(band, compute_dtype),
                    bias_row=jnp.asarray(brow, jnp.float32),
                    prow_even=jnp.asarray(pe, jnp.float32),
                    prow_odd=jnp.asarray(po, jnp.float32))

    s1 = conv_stage(params["w1"], params["b1"], 28)
    s2 = conv_stage(params["w2"], params["b2"], 14)

    # Linear head: rows permuted so it consumes the kernel's NHWC (oh, ow*32+c)
    # rows directly (no transpose on the logits path); N padded 10 -> 128.
    w3 = np.asarray(params["w3"], np.float32)    # (10, 32*7*7), NCHW-flat cols
    b3 = np.asarray(params["b3"], np.float32)
    C2, Ho, Wo = 32, 7, 7
    w3k = np.zeros((Ho, _round_up(Wo * C2, 128), 128), np.float32)
    for oh in range(Ho):
        for ow in range(Wo):
            for c in range(C2):
                w3k[oh, ow * C2 + c, :10] = w3[:, c * (Ho * Wo) + oh * Wo + ow]
    b3row = np.zeros((1, 128), np.float32)
    b3row[0, :10] = b3

    return dict(stage1=s1, stage2=s2,
                w3k=jnp.asarray(w3k, compute_dtype),
                b3_row=jnp.asarray(b3row, jnp.float32))


# ------------------------------ forward pass -------------------------------- #

def cnn_forward(prep, x_nchw):
    """Matches torch CNN.forward: returns (logits, NCHW-flattened features)."""
    B, Cin, H, W = x_nchw.shape                  # (B, 1, 28, 28)
    dt = prep["stage1"]["wband"].dtype
    x = x_nchw.reshape(B, H, W).astype(dt)       # Cin == 1: pure reshape
    xp = jnp.pad(x, ((0, 0), (PAD, PAD), (0, 128 - W)))    # (B, 32, 128)

    p2, logits = cnn_fused(xp, prep)             # (B,7,256), (B,1,128)
    out = logits[:, 0, :10]

    # torch's x.view(B,-1) flattens NCHW; this one tiny permutation (6 KiB) is
    # required to return features with identical semantics.
    feat_nhwc = p2[:, :, :7 * 32].reshape(B, 7, 7, 32)
    feat = jnp.transpose(feat_nhwc, (0, 3, 1, 2)).reshape(B, 32 * 7 * 7)
    return out, feat


def init_params(key):
    k1, k2, k3, k4, k5, k6 = jax.random.split(key, 6)
    return {
        "w1": jax.random.normal(k1, (16, 1, 5, 5), jnp.float32) * 0.10,
        "b1": jax.random.normal(k2, (16,), jnp.float32) * 0.10,
        "w2": jax.random.normal(k3, (32, 16, 5, 5), jnp.float32) * 0.05,
        "b2": jax.random.normal(k4, (32,), jnp.float32) * 0.05,
        "w3": jax.random.normal(k5, (10, 32 * 7 * 7), jnp.float32) * 0.02,
        "b3": jax.random.normal(k6, (10,), jnp.float32) * 0.02,
    }


# Pure-JAX reference (correctness check only), highest precision.
def cnn_reference(params, x_nchw):
    prec = lax.Precision.HIGHEST

    def conv(x, w, b):
        dn = lax.conv_dimension_numbers(x.shape, w.shape,
                                        ("NCHW", "OIHW", "NCHW"))
        y = lax.conv_general_dilated(x, w, (1, 1), ((2, 2), (2, 2)),
                                     dimension_numbers=dn, precision=prec)
        return jax.nn.relu(y + b[None, :, None, None])

    def pool(y):
        return lax.reduce_window(y, -jnp.inf, lax.max,
                                 (1, 1, 2, 2), (1, 1, 2, 2), "VALID")

    p1 = pool(conv(x_nchw, params["w1"], params["b1"]))
    p2 = pool(conv(p1, params["w2"], params["b2"]))
    flat = p2.reshape(p2.shape[0], -1)
    out = jnp.dot(flat, params["w3"].T, precision=prec) + params["b3"]
    return out, flat


if __name__ == "__main__":
    key = jax.random.PRNGKey(0)
    pkey, xkey = jax.random.split(key)
    params = init_params(pkey)
    # MNIST-shaped input (fixed by Linear(32*7*7, 10)): batch=2, 1x28x28.
    x = jax.random.normal(xkey, (2, 1, 28, 28), jnp.float32)

    ref_out, ref_feat = cnn_reference(params, x)
    fwd = jax.jit(cnn_forward)

    # f32-operand path: validates the banded-conv / parity-pool decomposition
    # (tolerance bounded by the MXU's default f32 matmul precision).
    out32, feat32 = jax.block_until_ready(
        fwd(prepare_params(params, jnp.float32), x))
    assert out32.shape == (2, 10) and feat32.shape == (2, 32 * 7 * 7)
    assert jnp.allclose(out32, ref_out, rtol=2e-2, atol=2e-2)
    assert jnp.allclose(feat32, ref_feat, rtol=2e-2, atol=2e-2)

    # bf16-operand / f32-accumulation path: the optimized configuration.
    out16, feat16 = jax.block_until_ready(
        fwd(prepare_params(params, jnp.bfloat16), x))
    assert out16.shape == (2, 10) and feat16.shape == (2, 32 * 7 * 7)
    assert jnp.allclose(out16, ref_out, rtol=6e-2, atol=6e-2)
    assert jnp.allclose(feat16, ref_feat, rtol=6e-2, atol=6e-2)

    print("KERNEL_OK")
</pallas_src>

<mosaic_0001>
module attributes {stable_mosaic.version = 11 : i64} {
  func.func @_cnn_fused_kernel(%arg0: i32, %arg1: memref<1x32x128xf32, #tpu.memory_space<vmem>>, %arg2: memref<640x512xf32, #tpu.memory_space<vmem>>, %arg3: memref<1x512xf32, #tpu.memory_space<vmem>>, %arg4: memref<14x28xf32, #tpu.memory_space<vmem>>, %arg5: memref<14x28xf32, #tpu.memory_space<vmem>>, %arg6: memref<1280x512xf32, #tpu.memory_space<vmem>>, %arg7: memref<1x512xf32, #tpu.memory_space<vmem>>, %arg8: memref<7x14xf32, #tpu.memory_space<vmem>>, %arg9: memref<7x14xf32, #tpu.memory_space<vmem>>, %arg10: memref<7x256x128xf32, #tpu.memory_space<vmem>>, %arg11: memref<1x128xf32, #tpu.memory_space<vmem>>, %arg12: memref<1x7x256xf32, #tpu.memory_space<vmem>>, %arg13: memref<1x1x128xf32, #tpu.memory_space<vmem>>) attributes {dimension_semantics = [#tpu.dimension_semantics<parallel>], iteration_bounds = array<i64: 2>, scalar_prefetch = 0 : i64, scratch_operands = 0 : i64, tpu.core_type = #tpu.core_type<tc>, window_params = [{transform_indices = @transform_0, window_bounds = array<i64: 1, 32, 128>}, {pipeline_mode = #tpu.pipeline_mode<synchronous>, transform_indices = @transform_1, window_bounds = array<i64: 640, 512>}, {pipeline_mode = #tpu.pipeline_mode<synchronous>, transform_indices = @transform_2, window_bounds = array<i64: 1, 512>}, {pipeline_mode = #tpu.pipeline_mode<synchronous>, transform_indices = @transform_3, window_bounds = array<i64: 14, 28>}, {pipeline_mode = #tpu.pipeline_mode<synchronous>, transform_indices = @transform_4, window_bounds = array<i64: 14, 28>}, {pipeline_mode = #tpu.pipeline_mode<synchronous>, transform_indices = @transform_5, window_bounds = array<i64: 1280, 512>}, {pipeline_mode = #tpu.pipeline_mode<synchronous>, transform_indices = @transform_6, window_bounds = array<i64: 1, 512>}, {pipeline_mode = #tpu.pipeline_mode<synchronous>, transform_indices = @transform_7, window_bounds = array<i64: 7, 14>}, {pipeline_mode = #tpu.pipeline_mode<synchronous>, transform_indices = @transform_8, window_bounds = array<i64: 7, 14>}, {pipeline_mode = #tpu.pipeline_mode<synchronous>, transform_indices = @transform_9, window_bounds = array<i64: 7, 256, 128>}, {pipeline_mode = #tpu.pipeline_mode<synchronous>, transform_indices = @transform_10, window_bounds = array<i64: 1, 128>}, {transform_indices = @transform_11, window_bounds = array<i64: 1, 7, 256>}, {transform_indices = @transform_12, window_bounds = array<i64: 1, 1, 128>}]} {
    %c0 = arith.constant 0 : index
    %c0_0 = arith.constant 0 : index
    %c0_1 = arith.constant 0 : index
    %0 = vector.load %arg1[%c0, %c0_0, %c0_1] : memref<1x32x128xf32, #tpu.memory_space<vmem>>, vector<1x32x128xf32>
    %1 = vector.shape_cast %0 : vector<1x32x128xf32> to vector<32x128xf32>
    %2 = vector.extract_strided_slice %1 {offsets = [0, 0], sizes = [28, 128], strides = [1, 1]} : vector<32x128xf32> to vector<28x128xf32>
    %3 = vector.extract_strided_slice %1 {offsets = [1, 0], sizes = [28, 128], strides = [1, 1]} : vector<32x128xf32> to vector<28x128xf32>
    %4 = vector.extract_strided_slice %1 {offsets = [2, 0], sizes = [28, 128], strides = [1, 1]} : vector<32x128xf32> to vector<28x128xf32>
    %5 = vector.extract_strided_slice %1 {offsets = [3, 0], sizes = [28, 128], strides = [1, 1]} : vector<32x128xf32> to vector<28x128xf32>
    %6 = vector.extract_strided_slice %1 {offsets = [4, 0], sizes = [28, 128], strides = [1, 1]} : vector<32x128xf32> to vector<28x128xf32>
    %7 = tpu.concatenate %2, %3, %4, %5, %6 in 1 : vector<28x128xf32>, vector<28x128xf32>, vector<28x128xf32>, vector<28x128xf32>, vector<28x128xf32> -> vector<28x640xf32>
    %c0_2 = arith.constant 0 : index
    %c0_3 = arith.constant 0 : index
    %8 = vector.load %arg2[%c0_2, %c0_3] : memref<640x512xf32, #tpu.memory_space<vmem>>, vector<640x512xf32>
    %cst = arith.constant dense<0.000000e+00> : vector<28x512xf32>
    %9 = tpu.matmul %7, %8, %cst {dimension_numbers = #tpu.dot_dimension_numbers<[1], [0], [0], [1], [0, 0, 1, 1], [], []>} : vector<28x640xf32>, vector<640x512xf32>, vector<28x512xf32> -> vector<28x512xf32>
    %c0_4 = arith.constant 0 : index
    %c0_5 = arith.constant 0 : index
    %10 = vector.load %arg3[%c0_4, %c0_5] : memref<1x512xf32, #tpu.memory_space<vmem>>, vector<1x512xf32>
    %11 = vector.broadcast %10 : vector<1x512xf32> to vector<28x512xf32>
    %12 = arith.addf %9, %11 : vector<28x512xf32>
    %cst_6 = arith.constant 0.000000e+00 : f32
    %13 = vector.broadcast %cst_6 : f32 to vector<28x512xf32>
    %14 = arith.maximumf %12, %13 : vector<28x512xf32>
    %15 = vector.extract_strided_slice %14 {offsets = [0, 0], sizes = [28, 256], strides = [1, 1]} : vector<28x512xf32> to vector<28x256xf32>
    %16 = vector.extract_strided_slice %14 {offsets = [0, 256], sizes = [28, 256], strides = [1, 1]} : vector<28x512xf32> to vector<28x256xf32>
    %17 = arith.maximumf %15, %16 : vector<28x256xf32>
    %c0_7 = arith.constant 0 : index
    %c0_8 = arith.constant 0 : index
    %18 = vector.load %arg4[%c0_7, %c0_8] : memref<14x28xf32, #tpu.memory_space<vmem>>, vector<14x28xf32>
    %cst_9 = arith.constant dense<0.000000e+00> : vector<14x256xf32>
    %19 = tpu.matmul %18, %17, %cst_9 {dimension_numbers = #tpu.dot_dimension_numbers<[1], [0], [0], [1], [0, 0, 1, 1], [], []>} : vector<14x28xf32>, vector<28x256xf32>, vector<14x256xf32> -> vector<14x256xf32>
    %c0_10 = arith.constant 0 : index
    %c0_11 = arith.constant 0 : index
    %20 = vector.load %arg5[%c0_10, %c0_11] : memref<14x28xf32, #tpu.memory_space<vmem>>, vector<14x28xf32>
    %cst_12 = arith.constant dense<0.000000e+00> : vector<14x256xf32>
    %21 = tpu.matmul %20, %17, %cst_12 {dimension_numbers = #tpu.dot_dimension_numbers<[1], [0], [0], [1], [0, 0, 1, 1], [], []>} : vector<14x28xf32>, vector<28x256xf32>, vector<14x256xf32> -> vector<14x256xf32>
    %22 = arith.maximumf %19, %21 : vector<14x256xf32>
    %cst_13 = arith.constant 0.000000e+00 : f32
    %23 = vector.broadcast %cst_13 : f32 to vector<2x256xf32>
    %24 = tpu.concatenate %23, %22, %23 in 0 : vector<2x256xf32>, vector<14x256xf32>, vector<2x256xf32> -> vector<18x256xf32>
    %25 = vector.extract_strided_slice %24 {offsets = [0, 0], sizes = [14, 256], strides = [1, 1]} : vector<18x256xf32> to vector<14x256xf32>
    %26 = vector.extract_strided_slice %24 {offsets = [1, 0], sizes = [14, 256], strides = [1, 1]} : vector<18x256xf32> to vector<14x256xf32>
    %27 = vector.extract_strided_slice %24 {offsets = [2, 0], sizes = [14, 256], strides = [1, 1]} : vector<18x256xf32> to vector<14x256xf32>
    %28 = vector.extract_strided_slice %24 {offsets = [3, 0], sizes = [14, 256], strides = [1, 1]} : vector<18x256xf32> to vector<14x256xf32>
    %29 = vector.extract_strided_slice %24 {offsets = [4, 0], sizes = [14, 256], strides = [1, 1]} : vector<18x256xf32> to vector<14x256xf32>
    %30 = tpu.concatenate %25, %26, %27, %28, %29 in 1 : vector<14x256xf32>, vector<14x256xf32>, vector<14x256xf32>, vector<14x256xf32>, vector<14x256xf32> -> vector<14x1280xf32>
    %c0_14 = arith.constant 0 : index
    %c0_15 = arith.constant 0 : index
    %31 = vector.load %arg6[%c0_14, %c0_15] : memref<1280x512xf32, #tpu.memory_space<vmem>>, vector<1280x512xf32>
    %cst_16 = arith.constant dense<0.000000e+00> : vector<14x512xf32>
    %32 = tpu.matmul %30, %31, %cst_16 {dimension_numbers = #tpu.dot_dimension_numbers<[1], [0], [0], [1], [0, 0, 1, 1], [], []>} : vector<14x1280xf32>, vector<1280x512xf32>, vector<14x512xf32> -> vector<14x512xf32>
    %c0_17 = arith.constant 0 : index
    %c0_18 = arith.constant 0 : index
    %33 = vector.load %arg7[%c0_17, %c0_18] : memref<1x512xf32, #tpu.memory_space<vmem>>, vector<1x512xf32>
    %34 = vector.broadcast %33 : vector<1x512xf32> to vector<14x512xf32>
    %35 = arith.addf %32, %34 : vector<14x512xf32>
    %cst_19 = arith.constant 0.000000e+00 : f32
    %36 = vector.broadcast %cst_19 : f32 to vector<14x512xf32>
    %37 = arith.maximumf %35, %36 : vector<14x512xf32>
    %38 = vector.extract_strided_slice %37 {offsets = [0, 0], sizes = [14, 256], strides = [1, 1]} : vector<14x512xf32> to vector<14x256xf32>
    %39 = vector.extract_strided_slice %37 {offsets = [0, 256], sizes = [14, 256], strides = [1, 1]} : vector<14x512xf32> to vector<14x256xf32>
    %40 = arith.maximumf %38, %39 : vector<14x256xf32>
    %c0_20 = arith.constant 0 : index
    %c0_21 = arith.constant 0 : index
    %41 = vector.load %arg8[%c0_20, %c0_21] : memref<7x14xf32, #tpu.memory_space<vmem>>, vector<7x14xf32>
    %cst_22 = arith.constant dense<0.000000e+00> : vector<7x256xf32>
    %42 = tpu.matmul %41, %40, %cst_22 {dimension_numbers = #tpu.dot_dimension_numbers<[1], [0], [0], [1], [0, 0, 1, 1], [], []>} : vector<7x14xf32>, vector<14x256xf32>, vector<7x256xf32> -> vector<7x256xf32>
    %c0_23 = arith.constant 0 : index
    %c0_24 = arith.constant 0 : index
    %43 = vector.load %arg9[%c0_23, %c0_24] : memref<7x14xf32, #tpu.memory_space<vmem>>, vector<7x14xf32>
    %cst_25 = arith.constant dense<0.000000e+00> : vector<7x256xf32>
    %44 = tpu.matmul %43, %40, %cst_25 {dimension_numbers = #tpu.dot_dimension_numbers<[1], [0], [0], [1], [0, 0, 1, 1], [], []>} : vector<7x14xf32>, vector<14x256xf32>, vector<7x256xf32> -> vector<7x256xf32>
    %45 = arith.maximumf %42, %44 : vector<7x256xf32>
    %c0_26 = arith.constant 0 : index
    %c0_27 = arith.constant 0 : index
    %c0_28 = arith.constant 0 : index
    %46 = vector.load %arg12[%c0_26, %c0_27, %c0_28] : memref<1x7x256xf32, #tpu.memory_space<vmem>>, vector<1x7x256xf32>
    %47 = vector.shape_cast %46 : vector<1x7x256xf32> to vector<7x256xf32>
    %48 = vector.shape_cast %45 : vector<7x256xf32> to vector<1x7x256xf32>
    tpu.vector_store %arg12[%c0_26, %c0_27, %c0_28], %48 {strides = array<i32>} : memref<1x7x256xf32, #tpu.memory_space<vmem>>, vector<1x7x256xf32>,
    %c0_29 = arith.constant 0 : index
    %c0_30 = arith.constant 0 : index
    %49 = vector.load %arg11[%c0_29, %c0_30] : memref<1x128xf32, #tpu.memory_space<vmem>>, vector<1x128xf32>
    %50 = vector.extract_strided_slice %45 {offsets = [0, 0], sizes = [1, 256], strides = [1, 1]} : vector<7x256xf32> to vector<1x256xf32>
    %c0_31 = arith.constant 0 : index
    %c0_32 = arith.constant 0 : index
    %c0_33 = arith.constant 0 : index
    %51 = vector.load %arg10[%c0_31, %c0_32, %c0_33] : memref<7x256x128xf32, #tpu.memory_space<vmem>>, vector<1x256x128xf32>
    %52 = vector.shape_cast %51 : vector<1x256x128xf32> to vector<256x128xf32>
    %cst_34 = arith.constant dense<0.000000e+00> : vector<1x128xf32>
    %53 = tpu.matmul %50, %52, %cst_34 {dimension_numbers = #tpu.dot_dimension_numbers<[1], [0], [0], [1], [0, 0, 1, 1], [], []>} : vector<1x256xf32>, vector<256x128xf32>, vector<1x128xf32> -> vector<1x128xf32>
    %54 = arith.addf %49, %53 : vector<1x128xf32>
    %55 = vector.extract_strided_slice %45 {offsets = [1, 0], sizes = [1, 256], strides = [1, 1]} : vector<7x256xf32> to vector<1x256xf32>
    %c1 = arith.constant 1 : index
    %c0_35 = arith.constant 0 : index
    %c0_36 = arith.constant 0 : index
    %56 = vector.load %arg10[%c1, %c0_35, %c0_36] : memref<7x256x128xf32, #tpu.memory_space<vmem>>, vector<1x256x128xf32>
    %57 = vector.shape_cast %56 : vector<1x256x128xf32> to vector<256x128xf32>
    %cst_37 = arith.constant dense<0.000000e+00> : vector<1x128xf32>
    %58 = tpu.matmul %55, %57, %cst_37 {dimension_numbers = #tpu.dot_dimension_numbers<[1], [0], [0], [1], [0, 0, 1, 1], [], []>} : vector<1x256xf32>, vector<256x128xf32>, vector<1x128xf32> -> vector<1x128xf32>
    %59 = arith.addf %54, %58 : vector<1x128xf32>
    %60 = vector.extract_strided_slice %45 {offsets = [2, 0], sizes = [1, 256], strides = [1, 1]} : vector<7x256xf32> to vector<1x256xf32>
    %c2 = arith.constant 2 : index
    %c0_38 = arith.constant 0 : index
    %c0_39 = arith.constant 0 : index
    %61 = vector.load %arg10[%c2, %c0_38, %c0_39] : memref<7x256x128xf32, #tpu.memory_space<vmem>>, vector<1x256x128xf32>
    %62 = vector.shape_cast %61 : vector<1x256x128xf32> to vector<256x128xf32>
    %cst_40 = arith.constant dense<0.000000e+00> : vector<1x128xf32>
    %63 = tpu.matmul %60, %62, %cst_40 {dimension_numbers = #tpu.dot_dimension_numbers<[1], [0], [0], [1], [0, 0, 1, 1], [], []>} : vector<1x256xf32>, vector<256x128xf32>, vector<1x128xf32> -> vector<1x128xf32>
    %64 = arith.addf %59, %63 : vector<1x128xf32>
    %65 = vector.extract_strided_slice %45 {offsets = [3, 0], sizes = [1, 256], strides = [1, 1]} : vector<7x256xf32> to vector<1x256xf32>
    %c3 = arith.constant 3 : index
    %c0_41 = arith.constant 0 : index
    %c0_42 = arith.constant 0 : index
    %66 = vector.load %arg10[%c3, %c0_41, %c0_42] : memref<7x256x128xf32, #tpu.memory_space<vmem>>, vector<1x256x128xf32>
    %67 = vector.shape_cast %66 : vector<1x256x128xf32> to vector<256x128xf32>
    %cst_43 = arith.constant dense<0.000000e+00> : vector<1x128xf32>
    %68 = tpu.matmul %65, %67, %cst_43 {dimension_numbers = #tpu.dot_dimension_numbers<[1], [0], [0], [1], [0, 0, 1, 1], [], []>} : vector<1x256xf32>, vector<256x128xf32>, vector<1x128xf32> -> vector<1x128xf32>
    %69 = arith.addf %64, %68 : vector<1x128xf32>
    %70 = vector.extract_strided_slice %45 {offsets = [4, 0], sizes = [1, 256], strides = [1, 1]} : vector<7x256xf32> to vector<1x256xf32>
    %c4 = arith.constant 4 : index
    %c0_44 = arith.constant 0 : index
    %c0_45 = arith.constant 0 : index
    %71 = vector.load %arg10[%c4, %c0_44, %c0_45] : memref<7x256x128xf32, #tpu.memory_space<vmem>>, vector<1x256x128xf32>
    %72 = vector.shape_cast %71 : vector<1x256x128xf32> to vector<256x128xf32>
    %cst_46 = arith.constant dense<0.000000e+00> : vector<1x128xf32>
    %73 = tpu.matmul %70, %72, %cst_46 {dimension_numbers = #tpu.dot_dimension_numbers<[1], [0], [0], [1], [0, 0, 1, 1], [], []>} : vector<1x256xf32>, vector<256x128xf32>, vector<1x128xf32> -> vector<1x128xf32>
    %74 = arith.addf %69, %73 : vector<1x128xf32>
    %75 = vector.extract_strided_slice %45 {offsets = [5, 0], sizes = [1, 256], strides = [1, 1]} : vector<7x256xf32> to vector<1x256xf32>
    %c5 = arith.constant 5 : index
    %c0_47 = arith.constant 0 : index
    %c0_48 = arith.constant 0 : index
    %76 = vector.load %arg10[%c5, %c0_47, %c0_48] : memref<7x256x128xf32, #tpu.memory_space<vmem>>, vector<1x256x128xf32>
    %77 = vector.shape_cast %76 : vector<1x256x128xf32> to vector<256x128xf32>
    %cst_49 = arith.constant dense<0.000000e+00> : vector<1x128xf32>
    %78 = tpu.matmul %75, %77, %cst_49 {dimension_numbers = #tpu.dot_dimension_numbers<[1], [0], [0], [1], [0, 0, 1, 1], [], []>} : vector<1x256xf32>, vector<256x128xf32>, vector<1x128xf32> -> vector<1x128xf32>
    %79 = arith.addf %74, %78 : vector<1x128xf32>
    %80 = vector.extract_strided_slice %45 {offsets = [6, 0], sizes = [1, 256], strides = [1, 1]} : vector<7x256xf32> to vector<1x256xf32>
    %c6 = arith.constant 6 : index
    %c0_50 = arith.constant 0 : index
    %c0_51 = arith.constant 0 : index
    %81 = vector.load %arg10[%c6, %c0_50, %c0_51] : memref<7x256x128xf32, #tpu.memory_space<vmem>>, vector<1x256x128xf32>
    %82 = vector.shape_cast %81 : vector<1x256x128xf32> to vector<256x128xf32>
    %cst_52 = arith.constant dense<0.000000e+00> : vector<1x128xf32>
    %83 = tpu.matmul %80, %82, %cst_52 {dimension_numbers = #tpu.dot_dimension_numbers<[1], [0], [0], [1], [0, 0, 1, 1], [], []>} : vector<1x256xf32>, vector<256x128xf32>, vector<1x128xf32> -> vector<1x128xf32>
    %84 = arith.addf %79, %83 : vector<1x128xf32>
    %c0_53 = arith.constant 0 : index
    %c0_54 = arith.constant 0 : index
    %c0_55 = arith.constant 0 : index
    %85 = vector.load %arg13[%c0_53, %c0_54, %c0_55] : memref<1x1x128xf32, #tpu.memory_space<vmem>>, vector<1x1x128xf32>
    %86 = vector.shape_cast %85 : vector<1x1x128xf32> to vector<1x128xf32>
    %87 = vector.shape_cast %84 : vector<1x128xf32> to vector<1x1x128xf32>
    tpu.vector_store %arg13[%c0_53, %c0_54, %c0_55], %87 {strides = array<i32>} : memref<1x1x128xf32, #tpu.memory_space<vmem>>, vector<1x1x128xf32>,
    return
  }
  func.func @transform_0(%arg0: i32) -> (i32, i32, i32) {
    %c0_i32 = arith.constant 0 : i32
    %c0_i32_0 = arith.constant 0 : i32
    %c0_i32_1 = arith.constant 0 : i32
    return %arg0, %c0_i32, %c0_i32_0 : i32, i32, i32
  }
  func.func @transform_1(%arg0: i32) -> (i32, i32) {
    %c0_i32 = arith.constant 0 : i32
    %c0_i32_0 = arith.constant 0 : i32
    %c0_i32_1 = arith.constant 0 : i32
    return %c0_i32, %c0_i32_0 : i32, i32
  }
  func.func @transform_2(%arg0: i32) -> (i32, i32) {
    %c0_i32 = arith.constant 0 : i32
    %c0_i32_0 = arith.constant 0 : i32
    %c0_i32_1 = arith.constant 0 : i32
    return %c0_i32, %c0_i32_0 : i32, i32
  }
  func.func @transform_3(%arg0: i32) -> (i32, i32) {
    %c0_i32 = arith.constant 0 : i32
    %c0_i32_0 = arith.constant 0 : i32
    %c0_i32_1 = arith.constant 0 : i32
    return %c0_i32, %c0_i32_0 : i32, i32
  }
  func.func @transform_4(%arg0: i32) -> (i32, i32) {
    %c0_i32 = arith.constant 0 : i32
    %c0_i32_0 = arith.constant 0 : i32
    %c0_i32_1 = arith.constant 0 : i32
    return %c0_i32, %c0_i32_0 : i32, i32
  }
  func.func @transform_5(%arg0: i32) -> (i32, i32) {
    %c0_i32 = arith.constant 0 : i32
    %c0_i32_0 = arith.constant 0 : i32
    %c0_i32_1 = arith.constant 0 : i32
    return %c0_i32, %c0_i32_0 : i32, i32
  }
  func.func @transform_6(%arg0: i32) -> (i32, i32) {
    %c0_i32 = arith.constant 0 : i32
    %c0_i32_0 = arith.constant 0 : i32
    %c0_i32_1 = arith.constant 0 : i32
    return %c0_i32, %c0_i32_0 : i32, i32
  }
  func.func @transform_7(%arg0: i32) -> (i32, i32) {
    %c0_i32 = arith.constant 0 : i32
    %c0_i32_0 = arith.constant 0 : i32
    %c0_i32_1 = arith.constant 0 : i32
    return %c0_i32, %c0_i32_0 : i32, i32
  }
  func.func @transform_8(%arg0: i32) -> (i32, i32) {
    %c0_i32 = arith.constant 0 : i32
    %c0_i32_0 = arith.constant 0 : i32
    %c0_i32_1 = arith.constant 0 : i32
    return %c0_i32, %c0_i32_0 : i32, i32
  }
  func.func @transform_9(%arg0: i32) -> (i32, i32, i32) {
    %c0_i32 = arith.constant 0 : i32
    %c0_i32_0 = arith.constant 0 : i32
    %c0_i32_1 = arith.constant 0 : i32
    %c0_i32_2 = arith.constant 0 : i32
    return %c0_i32, %c0_i32_0, %c0_i32_1 : i32, i32, i32
  }
  func.func @transform_10(%arg0: i32) -> (i32, i32) {
    %c0_i32 = arith.constant 0 : i32
    %c0_i32_0 = arith.constant 0 : i32
    %c0_i32_1 = arith.constant 0 : i32
    return %c0_i32, %c0_i32_0 : i32, i32
  }
  func.func @transform_11(%arg0: i32) -> (i32, i32, i32) {
    %c0_i32 = arith.constant 0 : i32
    %c0_i32_0 = arith.constant 0 : i32
    %c0_i32_1 = arith.constant 0 : i32
    return %arg0, %c0_i32, %c0_i32_0 : i32, i32, i32
  }
  func.func @transform_12(%arg0: i32) -> (i32, i32, i32) {
    %c0_i32 = arith.constant 0 : i32
    %c0_i32_0 = arith.constant 0 : i32
    %c0_i32_1 = arith.constant 0 : i32
    return %arg0, %c0_i32, %c0_i32_0 : i32, i32, i32
  }
}

</mosaic_0001>

<bundles_post_ra>
// kernel: cnn_forward.1
= control target key start
LH: loop header
LB: loop body
LE: loop exit
PB: predicated region body
PF: predicated region fallthrough
CT: control target
= control target key end

     0   :  { %s7199_s0 = inlined_call_operand.vmem [shape: f32[2,32,128], index: 0, kind: input, shape index: {}]   ;;  %s7200_s1 = inlined_call_operand.hbm [shape: f32[640,512], index: 1, kind: input, shape index: {}]   ;;  %s7201_s2 = inlined_call_operand.hbm [shape: f32[1,512], index: 2, kind: input, shape index: {}]   ;;  %s7202_s3 = inlined_call_operand.hbm [shape: f32[14,28], index: 3, kind: input, shape index: {}]   ;;  %s7203_s4 = inlined_call_operand.hbm [shape: f32[14,28], index: 4, kind: input, shape index: {}]   ;;  %s7204_s5 = inlined_call_operand.hbm [shape: f32[1280,512], index: 5, kind: input, shape index: {}]   ;;  %s7205_s6 = inlined_call_operand.hbm [shape: f32[1,512], index: 6, kind: input, shape index: {}]   ;;  %s7206_s7 = inlined_call_operand.hbm [shape: f32[7,14], index: 7, kind: input, shape index: {}]   ;;  %s7207_s8 = inlined_call_operand.hbm [shape: f32[7,14], index: 8, kind: input, shape index: {}]   ;;  %s7208_s9 = inlined_call_operand.hbm [shape: f32[7,256,128], index: 9, kind: input, shape index: {}]   ;;  %s7209_s10 = inlined_call_operand.hbm [shape: f32[1,128], index: 10, kind: input, shape index: {}]   ;;  %s7210_s11 = inlined_call_operand.vmem [shape: f32[2,7,256], index: 11, kind: output, shape index: {0}]   ;;  %s7211_s12 = inlined_call_operand.hbm [shape: f32[2,1,128], index: 12, kind: output, shape index: {1}]  }
   0x1   :  { %7225 = sst [smem:[#allocation33_spill]] %s7200_s1 }
   0x2   :  { %7226 = sst [smem:[#allocation34_spill]] %s7201_s2 }
   0x3   :  { %7227 = sst [smem:[#allocation35_spill]] %s7203_s4 }
   0x4   :  { %7228 = sst [smem:[#allocation36_spill]] %s7205_s6 }
   0x5   :  { %7229 = sst [smem:[#allocation37_spill]] %s7207_s8 }
   0x6   :  { %18 = vsyncpa [#allocation3], 0 }
   0x7   :  { %19 = vsyncpa [#allocation6], 0 }
   0x8   :  { %20 = vsyncpa [#allocation9], 0 }
   0x9   :  { %21 = vsyncpa [#allocation12], 0 }
   0xa   :  { %22 = vsyncpa [#allocation15], 0 }
   0xb   :  { %23 = vsyncpa [#allocation18], 0 }
   0xc   :  { %24 = vsyncpa [#allocation4], 0 }
   0xd   :  { %26 = vsyncpa [#allocation4 + $0x1], 0  ;;  %s6522_s21 = smov 0   ;;  %s6524_s22 = smov 0  }
   0xe   :  { %s6526_s23 = smov 0   ;;  %s6528_s24 = smov 0  }
   0xf LB: > { %7230 = sst [smem:[#allocation27_spill]] %s6426_s21  ;;  %s6543_s25 = sadd.s32 4294967295, %s6438_s24   ;;  %s6438_s24 = sphi %s6528_s24, %s7270_s24   ;;  %s6434_s23 = sphi %s6526_s23, %s7272_s23   ;;  %s6430_s22 = sphi %s6524_s22, %s7274_s22   ;;  %s6426_s21 = sphi %s6522_s21, %s7273_s21  }
  0x10   : > { %7231 = sst [smem:[#allocation28_spill]] %s6434_s23  ;;  %s4322_s26 = sadd.s32 4294967294, %s6438_s24  }
  0x11   : > { %7232 = sst [smem:[#allocation29_spill]] %s6438_s24  ;;  %s6547_s27 = sadd.s32 1, %s6438_s24  }
  0x12   : > { %7233 = sst [smem:[#allocation30_spill]] %s6547_s27  ;;  %s301_s28 = sadd.s32 1, %s6434_s23 }
  0x13   : > { %s298_s29 = ssub.s32 %s6438_s24, %s6547_s27  ;;  %p311_p0 = scmp.ne.s32.totalorder %s6434_s23, %s6430_s22 }
  0x14   : > { %p299_p1 = scmp.eq.s32.totalorder %s298_s29, 0  ;;  %p312_p2 = scmp.eq.s32.totalorder %s6543_s25, 1 }
  0x15   : > { %p317_p3 = scmp.ne.s32.totalorder %s6430_s22, %s6426_s21  ;;  %p318_p4 = scmp.eq.s32.totalorder %s4322_s26, 1 }
  0x16   : > { %s6558_s30 = scalar_select %p299_p1, %s6434_s23, %s301_s28  }
  0x17   : > { %p6560_p5 = por %p312_p2, %p311_p0  ;;  %p6564_p6 = por %p318_p4, %p317_p3 }
  0x18   : > { %7234 = sst [smem:[#allocation31_spill]] %s6558_s30  ;;  %p4323_p7 = scmp.ge.s32.totalorder %s6438_s24, 1 }
  0x19   : > { %s7235_s13 = scalar_select %p6560_p5, 1, 0 }
  0x1a   : > { %s7236_s14 = scalar_select %p6564_p6, 1, 0 }
  0x1b   : > { %p325_p8 = scmp.lt.s32.totalorder %s6438_s24, 3  ;;  %p7216_p9 = scmp.eq.s32.totalorder %s6543_s25, 0 }
  0x1c   : > { %7237 = sst [smem:[#allocation32_spill]] %s7236_s14  ;;  %s6440_s16 = smov [#allocation5]  }
  0x1d   : > { %p6571_p10 = pnand %p4323_p7, %p325_p8  ;;  %s351_s17 = sshll.u32 %s6440_s16, 4  ;;  %s352_s17 = int_to_ptr.vmem [resolvable:$true] %s351_s17 }
  0x1e   : > { %s6441_s19 = smov [#allocation8]   ;;  %s6442_s26 = smov [#allocation11]  }
  0x1f   : > { %s7238_s15 = scalar_select %p6571_p10, 1, 0 }
  0x20   : > { %p5968_p11 = pneg %p6571_p10  ;;  %s374_s20 = sshll.u32 %s6441_s19, 4  ;;  %s6583_s20 = int_to_ptr.vmem [resolvable:$true] %s374_s20 }
  0x21   : > { %s6585_s28 = sshll.u32 %s6442_s26, 4  ;;  %s7240_s2 = sld [smem:[#allocation34_spill]]  ;;  %s402_s28 = int_to_ptr.vmem [resolvable:$true] %s6585_s28 }
  0x22   : > { %p6579_p12 = pnand %p7216_p9, %p5968_p11 }
  0x24   : > { %p6595_p0 = pneg %p6579_p12 }
  0x27   : > { %s6072_s16 = scalar_lea.hbm %s7240_s2, 64 }
  0x28   : > { %p6073_p13 = scmp.ne.s32.totalorder %s7240_s2, %s6072_s16  ;;  %p6079_p3 = scmp.lt.u32.totalorder %s6072_s16, %s7240_s2 }
  0x2a   : > { %p6075_p1 = pnand %p6595_p0, %p6073_p13 }
  0x2c   : > { %p6076_p2 = pneg %p6075_p1 }
  0x2e   : > { %p6081_p4 = pnand %p6079_p3, %p6076_p2 }
  0x30   : > { %6084 = shalt.err (!%p6081_p4)
}
  0x31   : > { %s6085_s30 = scalar_lea.vmem %s352_s17, 64  ;;  %p6093_p9 = scmp.lt.s32.totalorder %s352_s17, %s352_s17 }
  0x32   : > { %p6086_p7 = scmp.ne.s32.totalorder %s352_s17, %s6085_s30  ;;  %p6094_p6 = scmp.lt.s32.totalorder %s6085_s30, %s6085_s30 }
  0x34   : > { %p6088_p8 = pnand %p6086_p7, %p6595_p0  ;;  %p6095_p5 = por %p6094_p6, %p6093_p9 }
  0x36   : > { %p6089_p11 = pneg %p6088_p8 }
  0x38   : > { %p6096_p10 = pnand %p6095_p5, %p6089_p11 }
  0x3a   : > { %6099 = shalt.err (!%p6096_p10)
}
  0x3b   : > { %5974 = dma.hbm_to_vmem [thread:$0]  (!%p6579_p12), %s7240_s2, 64, %s352_s17, [#allocation6]  }
  0x3c   : > { %s7242_s4 = sld [smem:[#allocation35_spill]] }
  0x42   : > { %s6100_s19 = scalar_lea.hbm %s7242_s4, 256 }
  0x43   : > { %p6101_p13 = scmp.ne.s32.totalorder %s7242_s4, %s6100_s19  ;;  %p6107_p5 = scmp.lt.u32.totalorder %s6100_s19, %s7242_s4 }
  0x45   : > { %p6103_p1 = pnand %p6101_p13, %p6595_p0 }
  0x47   : > { %p6104_p6 = pneg %p6103_p1 }
  0x49   : > { %p6109_p9 = pnand %p6107_p5, %p6104_p6 }
  0x4b   : > { %6112 = shalt.err (!%p6109_p9)
}
  0x4c   : > { %s6113_s17 = scalar_lea.vmem %s6583_s20, 256  ;;  %p6121_p4 = scmp.lt.s32.totalorder %s6583_s20, %s6583_s20 }
  0x4d   : > { %p6114_p10 = scmp.ne.s32.totalorder %s6583_s20, %s6113_s17  ;;  %p6122_p7 = scmp.lt.s32.totalorder %s6113_s17, %s6113_s17 }
  0x4f   : > { %p6116_p2 = pnand %p6114_p10, %p6595_p0  ;;  %p6123_p8 = por %p6122_p7, %p6121_p4 }
  0x51   : > { %p6117_p3 = pneg %p6116_p2 }
  0x53   : > { %p6124_p11 = pnand %p6123_p8, %p6117_p3 }
  0x55   : > { %6127 = shalt.err (!%p6124_p11)
}
  0x56   : > { %s7221_s21 = smov 128   ;;  %s7223_s24 = smov 8  }
  0x57   : > { %5980 = dma.hbm_to_vmem [thread:$0]  (!%p6579_p12), %s7242_s4, 256, %s6583_s20, [#allocation9], %s7221_s21, %s7221_s21, %s7223_s24  }
  0x58   : > { %s7243_s6 = sld [smem:[#allocation36_spill]] }
  0x5e   : > { %s6128_s19 = scalar_lea.hbm %s7243_s6, 64 }
  0x5f   : > { %p6129_p13 = scmp.ne.s32.totalorder %s7243_s6, %s6128_s19  ;;  %p6135_p5 = scmp.lt.u32.totalorder %s6128_s19, %s7243_s6 }
  0x61   : > { %p6131_p1 = pnand %p6129_p13, %p6595_p0 }
  0x63   : > { %p6132_p6 = pneg %p6131_p1 }
  0x65   : > { %p6137_p9 = pnand %p6135_p5, %p6132_p6 }
  0x67   : > { %6140 = shalt.err (!%p6137_p9)
}
  0x68   : > { %s6141_s23 = scalar_lea.vmem %s402_s28, 64  ;;  %p6149_p4 = scmp.lt.s32.totalorder %s402_s28, %s402_s28 }
  0x69   : > { %p6142_p10 = scmp.ne.s32.totalorder %s402_s28, %s6141_s23  ;;  %p6150_p7 = scmp.lt.s32.totalorder %s6141_s23, %s6141_s23 }
  0x6b   : > { %p6144_p2 = pnand %p6142_p10, %p6595_p0  ;;  %p6151_p8 = por %p6150_p7, %p6149_p4 }
  0x6d   : > { %p6145_p3 = pneg %p6144_p2 }
  0x6f   : > { %p6152_p11 = pnand %p6151_p8, %p6145_p3 }
  0x71   : > { %6155 = shalt.err (!%p6152_p11)
}
  0x72   : > { %5986 = dma.hbm_to_vmem [thread:$0]  (!%p6579_p12), %s7243_s6, 64, %s402_s28, [#allocation12]  }
  0x73   : > { %s6445_s2 = smov [#allocation14]   ;;  %s6446_s16 = smov [#allocation2]  }
  0x74   : > { %s423_s29 = sshll.u32 %s6445_s2, 4  ;;  %s337_s19 = sshll.u32 %s6446_s16, 4  ;;  %s424_s29 = int_to_ptr.vmem [resolvable:$true] %s423_s29  ;;  %s338_s19 = int_to_ptr.vmem [resolvable:$true] %s337_s19 }
  0x75   : > { %s7244_s8 = sld [smem:[#allocation37_spill]] }
  0x7b   : > { %s6156_s17 = scalar_lea.hbm %s7244_s8, 128 }
  0x7c   : > { %p6157_p13 = scmp.ne.s32.totalorder %s7244_s8, %s6156_s17  ;;  %p6163_p5 = scmp.lt.u32.totalorder %s6156_s17, %s7244_s8 }
  0x7e   : > { %p6159_p1 = pnand %p6157_p13, %p6595_p0 }
  0x80   : > { %p6160_p6 = pneg %p6159_p1 }
  0x82   : > { %p6165_p9 = pnand %p6163_p5, %p6160_p6 }
  0x84   : > { %6168 = shalt.err (!%p6165_p9)
}
  0x85   : > { %s6169_s28 = scalar_lea.vmem %s424_s29, 128  ;;  %p6177_p4 = scmp.lt.s32.totalorder %s424_s29, %s424_s29 }
  0x86   : > { %p6170_p10 = scmp.ne.s32.totalorder %s424_s29, %s6169_s28  ;;  %p6178_p7 = scmp.lt.s32.totalorder %s6169_s28, %s6169_s28 }
  0x88   : > { %p6172_p2 = pnand %p6170_p10, %p6595_p0  ;;  %p6179_p8 = por %p6178_p7, %p6177_p4 }
  0x8a   : > { %p6173_p3 = pneg %p6172_p2 }
  0x8c   : > { %p6180_p11 = pnand %p6179_p8, %p6173_p3 }
  0x8e   : > { %6183 = shalt.err (!%p6180_p11)
}
  0x8f   : > { %5992 = dma.hbm_to_vmem [thread:$0]  (!%p6579_p12), %s7244_s8, 128, %s424_s29, [#allocation15]  }
  0x90   : > { %s7245_s1 = sld [smem:[#allocation33_spill]] }
  0x96   : > { %s6184_s16 = scalar_lea.hbm %s7245_s1, 40960 }
  0x97   : > { %p6185_p13 = scmp.ne.s32.totalorder %s7245_s1, %s6184_s16  ;;  %p6191_p5 = scmp.lt.u32.totalorder %s6184_s16, %s7245_s1 }
  0x99   : > { %p6187_p1 = pnand %p6185_p13, %p6595_p0 }
  0x9b   : > { %p6188_p6 = pneg %p6187_p1 }
  0x9d   : > { %p6193_p9 = pnand %p6191_p5, %p6188_p6 }
  0x9f   : > { %6196 = shalt.err (!%p6193_p9)
}
  0xa0   : > { %s6197_s20 = scalar_lea.vmem %s338_s19, 40960  ;;  %p6205_p4 = scmp.lt.s32.totalorder %s338_s19, %s338_s19 }
  0xa1   : > { %p6198_p10 = scmp.ne.s32.totalorder %s338_s19, %s6197_s20  ;;  %p6206_p7 = scmp.lt.s32.totalorder %s6197_s20, %s6197_s20 }
  0xa3   : > { %p6200_p2 = pnand %p6198_p10, %p6595_p0  ;;  %p6207_p8 = por %p6206_p7, %p6205_p4 }
  0xa5   : > { %p6201_p3 = pneg %p6200_p2 }
  0xa7   : > { %p6208_p11 = pnand %p6207_p8, %p6201_p3 }
  0xa9   : > { %6211 = shalt.err (!%p6208_p11)
}
  0xaa   : > { %s6447_s29 = smov 512   ;;  %s6448_s28 = smov 32  }
  0xab   : > { %5971 = dma.hbm_to_vmem [thread:$0]  (!%p6579_p12), %s7245_s1, 40960, %s338_s19, [#allocation3], %s6447_s29, %s6447_s29, %s6448_s28  }
  0xac   : > { %s6449_s24 = smov [#allocation7]   ;;  %s6450_s16 = smov [#allocation10]  }
  0xad   : > { %s361_s2 = sshll.u32 %s6449_s24, 4  ;;  %s387_s26 = sshll.u32 %s6450_s16, 4  ;;  %s362_s2 = int_to_ptr.vmem [resolvable:$true] %s361_s2  ;;  %s388_s26 = int_to_ptr.vmem [resolvable:$true] %s387_s26 }
  0xae   : > { %s6212_s23 = scalar_lea.hbm %s7202_s3, 256 }
  0xaf   : > { %p6213_p13 = scmp.ne.s32.totalorder %s7202_s3, %s6212_s23  ;;  %p6219_p5 = scmp.lt.u32.totalorder %s6212_s23, %s7202_s3 }
  0xb1   : > { %p6215_p1 = pnand %p6213_p13, %p6595_p0 }
  0xb3   : > { %p6216_p6 = pneg %p6215_p1 }
  0xb5   : > { %p6221_p9 = pnand %p6219_p5, %p6216_p6 }
  0xb7   : > { %6224 = shalt.err (!%p6221_p9)
}
  0xb8   : > { %s6225_s19 = scalar_lea.vmem %s362_s2, 256  ;;  %p6233_p4 = scmp.lt.s32.totalorder %s362_s2, %s362_s2 }
  0xb9   : > { %p6226_p10 = scmp.ne.s32.totalorder %s362_s2, %s6225_s19  ;;  %p6234_p7 = scmp.lt.s32.totalorder %s6225_s19, %s6225_s19 }
  0xbb   : > { %p6228_p2 = pnand %p6226_p10, %p6595_p0  ;;  %p6235_p8 = por %p6234_p7, %p6233_p4 }
  0xbd   : > { %p6229_p3 = pneg %p6228_p2 }
  0xbf   : > { %p6236_p11 = pnand %p6235_p8, %p6229_p3 }
  0xc1   : > { %6239 = shalt.err (!%p6236_p11)
}
  0xc2   : > { %s7246_s4 = smov 8   ;;  %s7247_s21 = smov 128  }
  0xc3   : > { %5977 = dma.hbm_to_vmem [thread:$0]  (!%p6579_p12), %s7202_s3, 256, %s362_s2, [#allocation6], %s7247_s21, %s7247_s21, %s7246_s4  }
  0xc4   : > { %s6240_s16 = scalar_lea.hbm %s7204_s5, 81920 }
  0xc5   : > { %p6241_p13 = scmp.ne.s32.totalorder %s7204_s5, %s6240_s16  ;;  %p6247_p5 = scmp.lt.u32.totalorder %s6240_s16, %s7204_s5 }
  0xc7   : > { %p6243_p1 = pnand %p6241_p13, %p6595_p0 }
  0xc9   : > { %p6244_p6 = pneg %p6243_p1 }
  0xcb   : > { %p6249_p9 = pnand %p6247_p5, %p6244_p6 }
  0xcd   : > { %6252 = shalt.err (!%p6249_p9)
}
  0xce   : > { %s6253_s19 = scalar_lea.vmem %s388_s26, 81920  ;;  %p6261_p4 = scmp.lt.s32.totalorder %s388_s26, %s388_s26 }
  0xcf   : > { %p6254_p10 = scmp.ne.s32.totalorder %s388_s26, %s6253_s19  ;;  %p6262_p7 = scmp.lt.s32.totalorder %s6253_s19, %s6253_s19 }
  0xd1   : > { %p6256_p2 = pnand %p6254_p10, %p6595_p0  ;;  %p6263_p8 = por %p6262_p7, %p6261_p4 }
  0xd3   : > { %p6257_p3 = pneg %p6256_p2 }
  0xd5   : > { %p6264_p11 = pnand %p6263_p8, %p6257_p3 }
  0xd7   : > { %6267 = shalt.err (!%p6264_p11)
}
  0xd8   : > { %5983 = dma.hbm_to_vmem [thread:$0]  (!%p6579_p12), %s7204_s5, 81920, %s388_s26, [#allocation9], %s6447_s29, %s6447_s29, %s6448_s28  }
  0xd9   : > { %s6451_s8 = smov [#allocation13]   ;;  %s6452_s24 = smov [#allocation16]  }
  0xda   : > { %s412_s27 = sshll.u32 %s6451_s8, 4  ;;  %s433_s16 = sshll.u32 %s6452_s24, 4  ;;  %s413_s27 = int_to_ptr.vmem [resolvable:$true] %s412_s27  ;;  %s434_s16 = int_to_ptr.vmem [resolvable:$true] %s433_s16 }
  0xdb   : > { %s6268_s23 = scalar_lea.hbm %s7206_s7, 128 }
  0xdc   : > { %p6269_p13 = scmp.ne.s32.totalorder %s7206_s7, %s6268_s23  ;;  %p6275_p5 = scmp.lt.u32.totalorder %s6268_s23, %s7206_s7 }
  0xde   : > { %p6271_p1 = pnand %p6269_p13, %p6595_p0 }
  0xe0   : > { %p6272_p6 = pneg %p6271_p1 }
  0xe2   : > { %p6277_p9 = pnand %p6275_p5, %p6272_p6 }
  0xe4   : > { %6280 = shalt.err (!%p6277_p9)
}
  0xe5   : > { %s6281_s29 = scalar_lea.vmem %s413_s27, 128  ;;  %p6289_p4 = scmp.lt.s32.totalorder %s413_s27, %s413_s27 }
  0xe6   : > { %p6282_p10 = scmp.ne.s32.totalorder %s413_s27, %s6281_s29  ;;  %p6290_p7 = scmp.lt.s32.totalorder %s6281_s29, %s6281_s29 }
  0xe8   : > { %p6284_p2 = pnand %p6282_p10, %p6595_p0  ;;  %p6291_p8 = por %p6290_p7, %p6289_p4 }
  0xea   : > { %p6285_p3 = pneg %p6284_p2 }
  0xec   : > { %p6292_p11 = pnand %p6291_p8, %p6285_p3 }
  0xee   : > { %6295 = shalt.err (!%p6292_p11)
}
  0xef   : > { %5989 = dma.hbm_to_vmem [thread:$0]  (!%p6579_p12), %s7206_s7, 128, %s413_s27, [#allocation12]  }
  0xf0   : > { %s6296_s8 = scalar_lea.hbm %s7208_s9, 28672 }
  0xf1   : > { %p6297_p13 = scmp.ne.s32.totalorder %s7208_s9, %s6296_s8  ;;  %p6303_p5 = scmp.lt.u32.totalorder %s6296_s8, %s7208_s9 }
  0xf3   : > { %p6299_p1 = pnand %p6297_p13, %p6595_p0 }
  0xf5   : > { %p6300_p6 = pneg %p6299_p1 }
  0xf7   : > { %p6305_p9 = pnand %p6303_p5, %p6300_p6 }
  0xf9   : > { %6308 = shalt.err (!%p6305_p9)
}
  0xfa   : > { %s6309_s20 = scalar_lea.vmem %s434_s16, 28672  ;;  %p6317_p4 = scmp.lt.s32.totalorder %s434_s16, %s434_s16 }
  0xfb   : > { %p6310_p10 = scmp.ne.s32.totalorder %s434_s16, %s6309_s20  ;;  %p6318_p7 = scmp.lt.s32.totalorder %s6309_s20, %s6309_s20 }
  0xfd   : > { %p6312_p2 = pnand %p6310_p10, %p6595_p0  ;;  %p6319_p8 = por %p6318_p7, %p6317_p4 }
  0xff   : > { %p6313_p3 = pneg %p6312_p2 }
 0x101   : > { %p6320_p11 = pnand %p6319_p8, %p6313_p3 }
 0x103   : > { %6323 = shalt.err (!%p6320_p11)
}
 0x104   : > { %5995 = dma.hbm_to_vmem [thread:$0]  (!%p6579_p12), %s7208_s9, 28672, %s434_s16, [#allocation15], %s7247_s21, %s7247_s21, %s7246_s4  }
 0x105   : > { %s6453_s2 = smov [#allocation17]   ;;  %s6324_s1 = scalar_lea.hbm %s7209_s10, 16 }
 0x106   : > { %s447_s29 = sshll.u32 %s6453_s2, 4  ;;  %p6325_p13 = scmp.ne.s32.totalorder %s7209_s10, %s6324_s1  ;;  %s448_s29 = int_to_ptr.vmem [resolvable:$true] %s447_s29 }
 0x107   : > { %p6331_p5 = scmp.lt.u32.totalorder %s6324_s1, %s7209_s10 }
 0x108   : > { %p6327_p1 = pnand %p6325_p13, %p6595_p0 }
 0x10a   : > { %p6328_p6 = pneg %p6327_p1 }
 0x10c   : > { %p6333_p9 = pnand %p6331_p5, %p6328_p6 }
 0x10e   : > { %6336 = shalt.err (!%p6333_p9)
}
 0x10f   : > { %s6337_s4 = scalar_lea.vmem %s448_s29, 16  ;;  %s6344_s21 = scalar_lea.vmem %s448_s29, 32 }
 0x110   : > { %p6338_p10 = scmp.ne.s32.totalorder %s448_s29, %s6337_s4  ;;  %p6345_p4 = scmp.lt.s32.totalorder %s448_s29, %s448_s29 }
 0x111   : > { %p6346_p7 = scmp.lt.s32.totalorder %s6344_s21, %s6337_s4 }
 0x112   : > { %p6340_p2 = pnand %p6338_p10, %p6595_p0 }
 0x113   : > { %p6347_p8 = por %p6346_p7, %p6345_p4 }
 0x114   : > { %p6341_p3 = pneg %p6340_p2 }
 0x116   : > { %p6348_p11 = pnand %p6347_p8, %p6341_p3 }
 0x118   : > { %6351 = shalt.err (!%p6348_p11)
}
 0x119   : > { %5998 = dma.hbm_to_vmem [thread:$0]  (!%p6579_p12), %s7209_s10, 16, %s448_s29, [#allocation18]  }
 0x11a   : > { %p7248_p13 = scmp.ne.s32.totalorder %s7238_s15, 0 }
 0x11b   : > { %p7249_p1 = scmp.eq.s32.totalorder (!%p7248_p13), %s6543_s25, 0 }
 0x11c   : > { %468 = sbr.rel (%p7248_p13) target bundleno = 1971 (0x7b3), region = 64 }
 0x123   : > { %6397 = dma.done.wait (%p7249_p1), [#allocation3], 40960   ;;  %p7250_p0 = pmov %p7249_p1 }
 0x125   : > { %6399 = vsyncadd (%p7250_p0), [#allocation3], 4294926336  ;;  %p7251_p6 = pmov %p7250_p0 }
 0x126   : > { %p7252_p5 = pmov %p7250_p0 }
 0x127   : > { %6401 = dma.done.wait (%p7251_p6), [#allocation6], 320  }
 0x128   : > { %6403 = vsyncadd (%p7252_p5), [#allocation6], 4294966976  ;;  %p7253_p9 = pmov %p7250_p0 }
 0x129   : > { %p7254_p12 = pmov %p7250_p0 }
 0x12a   : > { %6405 = dma.done.wait (%p7253_p9), [#allocation9], 82176  }
 0x12b   : > { %6407 = vsyncadd (%p7254_p12), [#allocation9], 4294885120  ;;  %p7255_p10 = pmov %p7250_p0 }
 0x12c   : > { %p7256_p2 = pmov %p7250_p0 }
 0x12d   : > { %6409 = dma.done.wait (%p7255_p10), [#allocation12], 192  }
 0x12e   : > { %6411 = vsyncadd (%p7256_p2), [#allocation12], 4294967104  ;;  %p7257_p3 = pmov %p7250_p0 }
 0x12f   : > { %p7258_p4 = pmov %p7250_p0 }
 0x130   : > { %6413 = dma.done.wait (%p7257_p3), [#allocation15], 28800  }
 0x131   : > { %6415 = vsyncadd (%p7258_p4), [#allocation15], 4294938496  ;;  %p7259_p7 = pmov %p7250_p0 }
 0x132   : > { %p7260_p8 = pmov %p7250_p0 }
 0x133   : > { %6417 = dma.done.wait (%p7259_p7), [#allocation18], 16  }
 0x134   : > { %6419 = vsyncadd (%p7260_p8), [#allocation18], 4294967280  ;;  %v617_v0 = vld [vmem:[#allocation2 + $0x8] sm:$0xff]  ;;  %v619_v2 = vld [vmem:[#allocation2 + $0x18] sm:$0xff]  ;;  %p550_p11 = scmp.lt.s32.totalorder %s6543_s25, 1  ;;  %vm568_vm0 = vcmask 1046528  }
 0x135   : > { %v621_v1 = vld [vmem:[#allocation2 + $0x28] sm:$0xff]  ;;  %v623_v4 = vld [vmem:[#allocation2 + $0x38] sm:$0xff]  ;;  %v616_v5 = vld [vmem:[#allocation2] sm:$0xff]  ;;  %vm580_vm1 = vcmask 1045504   ;;  %vm604_vm2 = vcmask 1043456   ;;  %vm592_vm3 = vcmask 1044480  }
 0x136   : > { %v4622_v3 = vpack.c.bf16 %v621_v1, %v617_v0  ;;  %v620_v6 = vld [vmem:[#allocation2 + $0x20] sm:$0xff]  ;;  %v4782_v7 = vpack.c.bf16 %v623_v4, %v619_v2  ;;  %v618_v9 = vld [vmem:[#allocation2 + $0x10] sm:$0xff]  ;;  %v625_v11 = vld [vmem:[#allocation2 + $0x48] sm:$0xff]  ;;  %s6824_s14 = scalar_select %p550_p11, %s6543_s25, 1  ;;  %vm6455_vm4 = vmmov 1   ;;  %vm1518_vm6 = vcmask 228352  }
 0x137   : > { %v4624_v8 = vpack.c.bf16 %v620_v6, %v616_v5  ;;  %v622_v10 = vld [vmem:[#allocation2 + $0x30] sm:$0xff]  ;;  %v629_v13 = vld [vmem:[#allocation2 + $0x68] sm:$0xff]  ;;  %v627_v14 = vld [vmem:[#allocation2 + $0x58] sm:$0xff]  ;;  %vm1701_vm7 = vcmask 1041408   ;;  %vm3208_vm10 = vcmask 113664   ;;  %s548_s28 = sand.u32 1, %s6430_s22  }
 0x138   : > { %4623 = vmatprep.subr.bf16.mxu0 %v4622_v3  ;;  %v4784_v12 = vpack.c.bf16 %v622_v10, %v618_v9  ;;  %v631_v15 = vld [vmem:[#allocation2 + $0x78] sm:$0xff]  ;;  %4783 = vmatprep.subr.bf16.mxu1 %v4782_v7  ;;  %v4626_v16 = vpack.c.bf16 %v629_v13, %v625_v11  ;;  %v624_v18 = vld [vmem:[#allocation2 + $0x40] sm:$0xff]  ;;  %v626_v20 = vld [vmem:[#allocation2 + $0x50] sm:$0xff]  ;;  %s4375_s15 = sshll.u32 %s6824_s14, 5  ;;  %s4376_s27 = sshll.u32 %s6824_s14, 4 }
 0x139   : > { %4625 = vmatpush1.bf16.msra.mxu0 %v4624_v8  ;;  %v4786_v17 = vpack.c.bf16 %v631_v15, %v627_v14  ;;  %v628_v19 = vld [vmem:[#allocation2 + $0x60] sm:$0xff]  ;;  %v630_v22 = vld [vmem:[#allocation2 + $0x70] sm:$0xff]  ;;  %v633_v23 = vld [vmem:[#allocation2 + $0x88] sm:$0xff]  ;;  %s6830_s20 = scalar_lea.vmem %s7199_s0, %s4375_s15  ;;  %s559_s29 = scalar_lea.vmem %s7210_s11, %s4376_s27 }
 0x13a   : > { %4785 = vmatpush1.bf16.msra.mxu1 %v4784_v12  ;;  %v4628_v21 = vpack.c.bf16 %v628_v19, %v624_v18  ;;  %v637_v24 = vld [vmem:[#allocation2 + $0xa8] sm:$0xff]  ;;  %4627 = vmatprep.subr.bf16.mxu0 %v4626_v16  ;;  %v4788_v25 = vpack.c.bf16 %v630_v22, %v626_v20  ;;  %v635_v27 = vld [vmem:[#allocation2 + $0x98] sm:$0xff]  ;;  %v632_v29 = vld [vmem:[#allocation2 + $0x80] sm:$0xff]  ;;  %s4372_s26 = sshll.u32 %s6543_s25, 4  ;;  %s549_s1 = scalar_lea.vmem [#allocation19], %s548_s28 }
 0x13b   : > { %4787 = vmatprep.subr.bf16.mxu1 %v4786_v17  ;;  %v4630_v26 = vpack.c.bf16 %v637_v24, %v633_v23  ;;  %v639_v28 = vld [vmem:[#allocation2 + $0xb8] sm:$0xff]  ;;  %v636_v31 = vld [vmem:[#allocation2 + $0xa0] sm:$0xff]  ;;  %v634_v32 = vld [vmem:[#allocation2 + $0x90] sm:$0xff]  ;;  %s4144_s6 = sshll.u32 %s549_s1, 4  ;;  %s7157_s30 = scalar_lea.hbm %s7211_s12, %s4372_s26  ;;  %s7159_s6 = int_to_ptr.vmem [resolvable:$true] %s4144_s6 }
 0x13c   : > { %v4790_v30 = vpack.c.bf16 %v639_v28, %v635_v27  ;;  %v638_v33 = vld [vmem:[#allocation2 + $0xb0] sm:$0xff]  ;;  %v4632_v34 = vpack.c.bf16 %v636_v31, %v632_v29  ;;  %v641_v35 = vld [vmem:[#allocation2 + $0xc8] sm:$0xff]  ;;  %v643_v37 = vld [vmem:[#allocation2 + $0xd8] sm:$0xff]  ;;  %s4129_s4 = scalar_lea.sflag [#allocation4], %s548_s28  ;;  %s6352_s21 = scalar_lea.vmem %s7159_s6, 16 }
 0x13d   : > { %4629 = vmatpush1.bf16.msra.mxu0 %v4628_v21  ;;  %v645_v36 = vld [vmem:[#allocation2 + $0xe8] sm:$0xff]  ;;  %v4792_v38 = vpack.c.bf16 %v638_v33, %v634_v32  ;;  %v647_v40 = vld [vmem:[#allocation2 + $0xf8] sm:$0xff]  ;;  %v640_v41 = vld [vmem:[#allocation2 + $0xc0] sm:$0xff]  ;;  %p6353_p13 = scmp.ne.s32.totalorder %s7159_s6, %s6352_s21  ;;  %p7265_p1 = scmp.ne.s32.totalorder %s7235_s13, 0 }
 0x13e   : > { %4789 = vmatpush1.bf16.msra.mxu1 %v4788_v25  ;;  %4631 = vmatprep.subr.bf16.mxu0 %v4630_v26  ;;  %v4634_v39 = vpack.c.bf16 %v645_v36, %v641_v35  ;;  %v644_v42 = vld [vmem:[#allocation2 + $0xe0] sm:$0xff]  ;;  %v4794_v43 = vpack.c.bf16 %v647_v40, %v643_v37  ;;  %v642_v44 = vld [vmem:[#allocation2 + $0xd0] sm:$0xff]  ;;  %v649_v46 = vld [vmem:[#allocation2 + $0x108] sm:$0xff]  ;;  %s6456_s25 = smov [#allocation19]  }
 0x13f   : > { %4791 = vmatprep.subr.bf16.mxu1 %v4790_v30  ;;  %v646_v45 = vld [vmem:[#allocation2 + $0xf0] sm:$0xff]  ;;  %v653_v47 = vld [vmem:[#allocation2 + $0x128] sm:$0xff]  ;;  %v651_v48 = vld [vmem:[#allocation2 + $0x118] sm:$0xff]  ;;  %v4636_v50 = vpack.c.bf16 %v644_v42, %v640_v41  ;;  %p6354_p0 = pnand %p6353_p13, %p7265_p1  ;;  %s6356_s16 = sshll.u32 %s6456_s25, 4  ;;  %s6357_s16 = int_to_ptr.vmem [resolvable:$false] %s6356_s16 }
 0x140   : > { %v655_v49 = vld [vmem:[#allocation2 + $0x138] sm:$0xff]  ;;  %v4796_v51 = vpack.c.bf16 %v646_v45, %v642_v44  ;;  %v4638_v52 = vpack.c.bf16 %v653_v47, %v649_v46  ;;  %v648_v53 = vld [vmem:[#allocation2 + $0x100] sm:$0xff]  ;;  %v650_v55 = vld [vmem:[#allocation2 + $0x110] sm:$0xff]  ;;  %s6358_s17 = scalar_lea.vmem %s6357_s16, 32  ;;  %p6359_p5 = scmp.lt.s32.totalorder %s7159_s6, %s6357_s16 }
 0x141   : > { %4633 = vmatpush1.bf16.msra.mxu0 %v4632_v34  ;;  %v652_v54 = vld [vmem:[#allocation2 + $0x120] sm:$0xff]  ;;  %v4798_v56 = vpack.c.bf16 %v655_v49, %v651_v48  ;;  %v654_v57 = vld [vmem:[#allocation2 + $0x130] sm:$0xff]  ;;  %v657_v58 = vld [vmem:[#allocation2 + $0x148] sm:$0xff]  ;;  %p6355_p6 = pneg %p6354_p0  ;;  %p6360_p9 = scmp.lt.s32.totalorder %s6358_s17, %s6352_s21 }
 0x142   : > { %4793 = vmatpush1.bf16.msra.mxu1 %v4792_v38  ;;  %4635 = vmatprep.subr.bf16.mxu0 %v4634_v39  ;;  %v661_v59 = vld [vmem:[#allocation2 + $0x168] sm:$0xff]  ;;  %v659_v60 = vld [vmem:[#allocation2 + $0x158] sm:$0xff]  ;;  %v4640_v62 = vpack.c.bf16 %v652_v54, %v648_v53  ;;  %v4800_v63 = vpack.c.bf16 %v654_v57, %v650_v55  ;;  %v656_v1 = vld [vmem:[#allocation2 + $0x140] sm:$0xff] }
 0x143   : > { %4795 = vmatprep.subr.bf16.mxu1 %v4794_v43  ;;  %v663_v61 = vld [vmem:[#allocation2 + $0x178] sm:$0xff]  ;;  %v4642_v0 = vpack.c.bf16 %v661_v59, %v657_v58  ;;  %v660_v2 = vld [vmem:[#allocation2 + $0x160] sm:$0xff]  ;;  %v658_v3 = vld [vmem:[#allocation2 + $0x150] sm:$0xff]  ;;  %p6361_p12 = por %p6360_p9, %p6359_p5 }
 0x144   : > { %v4802_v4 = vpack.c.bf16 %v663_v61, %v659_v60  ;;  %v662_v5 = vld [vmem:[#allocation2 + $0x170] sm:$0xff]  ;;  %v665_v6 = vld [vmem:[#allocation2 + $0x188] sm:$0xff]  ;;  %v667_v8 = vld [vmem:[#allocation2 + $0x198] sm:$0xff]  ;;  %v4644_v10 = vpack.c.bf16 %v660_v2, %v656_v1 }
 0x145   : > { %4637 = vmatpush1.bf16.msra.mxu0 %v4636_v50  ;;  %v669_v7 = vld [vmem:[#allocation2 + $0x1a8] sm:$0xff]  ;;  %v671_v9 = vld [vmem:[#allocation2 + $0x1b8] sm:$0xff]  ;;  %v4804_v11 = vpack.c.bf16 %v662_v5, %v658_v3  ;;  %v664_v13 = vld [vmem:[#allocation2 + $0x180] sm:$0xff]  ;;  %p6362_p10 = pnand %p6361_p12, %p6355_p6 }
 0x146   : > { %4797 = vmatpush1.bf16.msra.mxu1 %v4796_v51  ;;  %4639 = vmatprep.subr.bf16.mxu0 %v4638_v52  ;;  %v4646_v12 = vpack.c.bf16 %v669_v7, %v665_v6  ;;  %v668_v14 = vld [vmem:[#allocation2 + $0x1a0] sm:$0xff]  ;;  %v666_v15 = vld [vmem:[#allocation2 + $0x190] sm:$0xff]  ;;  %v4806_v16 = vpack.c.bf16 %v671_v9, %v667_v8  ;;  %v673_v18 = vld [vmem:[#allocation2 + $0x1c8] sm:$0xff] }
 0x147   : > { %4799 = vmatprep.subr.bf16.mxu1 %v4798_v56  ;;  %v670_v17 = vld [vmem:[#allocation2 + $0x1b0] sm:$0xff]  ;;  %v677_v19 = vld [vmem:[#allocation2 + $0x1e8] sm:$0xff]  ;;  %v675_v20 = vld [vmem:[#allocation2 + $0x1d8] sm:$0xff]  ;;  %v4648_v22 = vpack.c.bf16 %v668_v14, %v664_v13 }
 0x148   : > { %v679_v21 = vld [vmem:[#allocation2 + $0x1f8] sm:$0xff]  ;;  %v4808_v23 = vpack.c.bf16 %v670_v17, %v666_v15  ;;  %v4650_v24 = vpack.c.bf16 %v677_v19, %v673_v18  ;;  %v672_v25 = vld [vmem:[#allocation2 + $0x1c0] sm:$0xff]  ;;  %v674_v27 = vld [vmem:[#allocation2 + $0x1d0] sm:$0xff] }
 0x149   : > { %4641 = vmatpush1.bf16.msra.mxu0 %v4640_v62  ;;  %v676_v26 = vld [vmem:[#allocation2 + $0x1e0] sm:$0xff]  ;;  %v4810_v28 = vpack.c.bf16 %v679_v21, %v675_v20  ;;  %v678_v29 = vld [vmem:[#allocation2 + $0x1f0] sm:$0xff]  ;;  %v681_v30 = vld [vmem:[#allocation2 + $0x208] sm:$0xff] }
 0x14a   : > { %4801 = vmatpush1.bf16.msra.mxu1 %v4800_v63  ;;  %4643 = vmatprep.subr.bf16.mxu0 %v4642_v0  ;;  %v685_v31 = vld [vmem:[#allocation2 + $0x228] sm:$0xff]  ;;  %v683_v32 = vld [vmem:[#allocation2 + $0x218] sm:$0xff]  ;;  %v4652_v34 = vpack.c.bf16 %v676_v26, %v672_v25  ;;  %v4812_v35 = vpack.c.bf16 %v678_v29, %v674_v27  ;;  %v680_v37 = vld [vmem:[#allocation2 + $0x200] sm:$0xff] }
 0x14b   : > { %4803 = vmatprep.subr.bf16.mxu1 %v4802_v4  ;;  %v687_v33 = vld [vmem:[#allocation2 + $0x238] sm:$0xff]  ;;  %v4654_v36 = vpack.c.bf16 %v685_v31, %v681_v30  ;;  %v684_v38 = vld [vmem:[#allocation2 + $0x220] sm:$0xff]  ;;  %v682_v39 = vld [vmem:[#allocation2 + $0x210] sm:$0xff] }
 0x14c   : > { %v4814_v40 = vpack.c.bf16 %v687_v33, %v683_v32  ;;  %v686_v41 = vld [vmem:[#allocation2 + $0x230] sm:$0xff]  ;;  %v689_v42 = vld [vmem:[#allocation2 + $0x248] sm:$0xff]  ;;  %v691_v44 = vld [vmem:[#allocation2 + $0x258] sm:$0xff]  ;;  %v4656_v46 = vpack.c.bf16 %v684_v38, %v680_v37 }
 0x14d   : > { %4645 = vmatpush1.bf16.msra.mxu0 %v4644_v10  ;;  %v693_v43 = vld [vmem:[#allocation2 + $0x268] sm:$0xff]  ;;  %v695_v45 = vld [vmem:[#allocation2 + $0x278] sm:$0xff]  ;;  %v4816_v47 = vpack.c.bf16 %v686_v41, %v682_v39  ;;  %v688_v49 = vld [vmem:[#allocation2 + $0x240] sm:$0xff] }
 0x14e   : > { %4805 = vmatpush1.bf16.msra.mxu1 %v4804_v11  ;;  %4647 = vmatprep.subr.bf16.mxu0 %v4646_v12  ;;  %v4658_v48 = vpack.c.bf16 %v693_v43, %v689_v42  ;;  %v692_v50 = vld [vmem:[#allocation2 + $0x260] sm:$0xff]  ;;  %v690_v51 = vld [vmem:[#allocation2 + $0x250] sm:$0xff]  ;;  %v4818_v52 = vpack.c.bf16 %v695_v45, %v691_v44  ;;  %v697_v54 = vld [vmem:[#allocation2 + $0x288] sm:$0xff] }
 0x14f   : > { %4807 = vmatprep.subr.bf16.mxu1 %v4806_v16  ;;  %v694_v53 = vld [vmem:[#allocation2 + $0x270] sm:$0xff]  ;;  %v701_v55 = vld [vmem:[#allocation2 + $0x2a8] sm:$0xff]  ;;  %v699_v56 = vld [vmem:[#allocation2 + $0x298] sm:$0xff]  ;;  %v4660_v58 = vpack.c.bf16 %v692_v50, %v688_v49 }
 0x150   : > { %v703_v57 = vld [vmem:[#allocation2 + $0x2b8] sm:$0xff]  ;;  %v4820_v59 = vpack.c.bf16 %v694_v53, %v690_v51  ;;  %v4662_v60 = vpack.c.bf16 %v701_v55, %v697_v54  ;;  %v696_v61 = vld [vmem:[#allocation2 + $0x280] sm:$0xff]  ;;  %v698_v63 = vld [vmem:[#allocation2 + $0x290] sm:$0xff] }
 0x151   : > { %4649 = vmatpush1.bf16.msra.mxu0 %v4648_v22  ;;  %v700_v62 = vld [vmem:[#allocation2 + $0x2a0] sm:$0xff]  ;;  %v4822_v0 = vpack.c.bf16 %v703_v57, %v699_v56  ;;  %v702_v1 = vld [vmem:[#allocation2 + $0x2b0] sm:$0xff]  ;;  %v705_v2 = vld [vmem:[#allocation2 + $0x2c8] sm:$0xff] }
 0x152   : > { %4809 = vmatpush1.bf16.msra.mxu1 %v4808_v23  ;;  %4651 = vmatprep.subr.bf16.mxu0 %v4650_v24  ;;  %v709_v3 = vld [vmem:[#allocation2 + $0x2e8] sm:$0xff]  ;;  %v707_v4 = vld [vmem:[#allocation2 + $0x2d8] sm:$0xff]  ;;  %v4664_v6 = vpack.c.bf16 %v700_v62, %v696_v61  ;;  %v704_v7 = vld [vmem:[#allocation2 + $0x2c0] sm:$0xff]  ;;  %v4824_v8 = vpack.c.bf16 %v702_v1, %v698_v63 }
 0x153   : > { %4811 = vmatprep.subr.bf16.mxu1 %v4810_v28  ;;  %v711_v5 = vld [vmem:[#allocation2 + $0x2f8] sm:$0xff]  ;;  %v4666_v9 = vpack.c.bf16 %v709_v3, %v705_v2  ;;  %v708_v10 = vld [vmem:[#allocation2 + $0x2e0] sm:$0xff]  ;;  %v706_v11 = vld [vmem:[#allocation2 + $0x2d0] sm:$0xff] }
 0x154   : > { %v710_v12 = vld [vmem:[#allocation2 + $0x2f0] sm:$0xff]  ;;  %v4826_v13 = vpack.c.bf16 %v711_v5, %v707_v4  ;;  %v713_v14 = vld [vmem:[#allocation2 + $0x308] sm:$0xff]  ;;  %v6833_v16 = vld [vmem:[%s6830_s20] sm:$0xff]  ;;  %v4668_v22 = vpack.c.bf16 %v708_v10, %v704_v7 }
 0x155   : > { %4653 = vmatpush1.bf16.msra.mxu0 %v4652_v34  ;;  %v717_v15 = vld [vmem:[#allocation2 + $0x328] sm:$0xff]  ;;  %v715_v17 = vld [vmem:[#allocation2 + $0x318] sm:$0xff]  ;;  %v569_v20 = vrot.slane %v6833_v16, 1  ;;  %v581_v21 = vrot.slane %v6833_v16, 2  ;;  %v4828_v25 = vpack.c.bf16 %v710_v12, %v706_v11  ;;  %v712_v27 = vld [vmem:[#allocation2 + $0x300] sm:$0xff]  ;;  %v605_v30 = vrot.slane %v6833_v16, 4 }
 0x156   : > { %4813 = vmatpush1.bf16.msra.mxu1 %v4812_v35  ;;  %4655 = vmatprep.subr.bf16.mxu0 %v4654_v36  ;;  %v719_v18 = vld [vmem:[#allocation2 + $0x338] sm:$0xff]  ;;  %v6836_v19 = vld [vmem:[%s6830_s20 + $0x8] sm:$0xff]  ;;  %v4670_v26 = vpack.c.bf16 %v717_v15, %v713_v14  ;;  %v716_v28 = vld [vmem:[#allocation2 + $0x320] sm:$0xff] }
 0x157   : > { %4815 = vmatprep.subr.bf16.mxu1 %v4814_v40  ;;  %v570_v23 = vrot.slane %v6836_v19, 1  ;;  %v582_v24 = vrot.slane %v6836_v19, 2  ;;  %v714_v29 = vld [vmem:[#allocation2 + $0x310] sm:$0xff]  ;;  %v606_v31 = vrot.slane %v6836_v19, 4  ;;  %v4830_v32 = vpack.c.bf16 %v719_v18, %v715_v17  ;;  %v721_v34 = vld [vmem:[#allocation2 + $0x348] sm:$0xff]  ;;  %v723_v37 = vld [vmem:[#allocation2 + $0x358] sm:$0xff] }
 0x158   : > { %v718_v33 = vld [vmem:[#allocation2 + $0x330] sm:$0xff]  ;;  %v725_v35 = vld [vmem:[#allocation2 + $0x368] sm:$0xff]  ;;  %v727_v38 = vld [vmem:[#allocation2 + $0x378] sm:$0xff]  ;;  %v4672_v41 = vpack.c.bf16 %v716_v28, %v712_v27 }
 0x159   : > { %4657 = vmatpush1.bf16.msra.mxu0 %v4656_v46  ;;  %v571_v36 = vsel %vm568_vm0, %v569_v20, %v570_v23  ;;  %v6850_v39 = vsel %vm580_vm1, %v581_v21, %v582_v24  ;;  %v6855_v40 = vsel %vm604_vm2, %v605_v30, %v606_v31  ;;  %v4832_v42 = vpack.c.bf16 %v718_v33, %v714_v29  ;;  %v720_v44 = vld [vmem:[#allocation2 + $0x340] sm:$0xff]  ;;  %v722_v46 = vld [vmem:[#allocation2 + $0x350] sm:$0xff]  ;;  %v729_v49 = vld [vmem:[#allocation2 + $0x388] sm:$0xff] }
 0x15a   : > { %4817 = vmatpush1.bf16.msra.mxu1 %v4816_v47  ;;  %4659 = vmatprep.subr.bf16.mxu0 %v4658_v48  ;;  %v4674_v43 = vpack.c.bf16 %v725_v35, %v721_v34  ;;  %v724_v45 = vld [vmem:[#allocation2 + $0x360] sm:$0xff]  ;;  %v4834_v47 = vpack.c.bf16 %v727_v38, %v723_v37  ;;  %v726_v48 = vld [vmem:[#allocation2 + $0x370] sm:$0xff]  ;;  %v733_v50 = vld [vmem:[#allocation2 + $0x3a8] sm:$0xff] }
 0x15b   : > { %4819 = vmatprep.subr.bf16.mxu1 %v4818_v52  ;;  %1022 = vmatprep.mubr.f32.mxu0 %v571_v36  ;;  %v731_v51 = vld [vmem:[#allocation2 + $0x398] sm:$0xff]  ;;  %v4676_v53 = vpack.c.bf16 %v724_v45, %v720_v44  ;;  %v4836_v54 = vpack.c.bf16 %v726_v48, %v722_v46  ;;  %v4678_v55 = vpack.c.bf16 %v733_v50, %v729_v49  ;;  %v728_v56 = vld [vmem:[#allocation2 + $0x380] sm:$0xff]  ;;  %v737_v61 = vld [vmem:[#allocation2 + $0x3c8] sm:$0xff] }
 0x15c   : > { %1289 = vmatprep.mubr.f32.mxu1 %v571_v36  ;;  %v735_v52 = vld [vmem:[#allocation2 + $0x3b8] sm:$0xff]  ;;  %v732_v57 = vld [vmem:[#allocation2 + $0x3a0] sm:$0xff]  ;;  %v741_v62 = vld [vmem:[#allocation2 + $0x3e8] sm:$0xff] }
 0x15d   : > { %4661 = vmatpush1.bf16.msra.mxu0 %v4660_v58  ;;  %v730_v58 = vld [vmem:[#allocation2 + $0x390] sm:$0xff]  ;;  %v739_v63 = vld [vmem:[#allocation2 + $0x3d8] sm:$0xff]  ;;  %v4680_v1 = vpack.c.bf16 %v732_v57, %v728_v56  ;;  %v4682_v3 = vpack.c.bf16 %v741_v62, %v737_v61  ;;  %v736_v4 = vld [vmem:[#allocation2 + $0x3c0] sm:$0xff] }
 0x15e   : > { %4821 = vmatpush1.bf16.msra.mxu1 %v4820_v59  ;;  %4663 = vmatprep.subr.bf16.mxu0 %v4662_v60  ;;  %v4838_v59 = vpack.c.bf16 %v735_v52, %v731_v51  ;;  %v734_v60 = vld [vmem:[#allocation2 + $0x3b0] sm:$0xff]  ;;  %v740_v5 = vld [vmem:[#allocation2 + $0x3e0] sm:$0xff]  ;;  %v749_v10 = vld [vmem:[#allocation2 + $0x428] sm:$0xff] }
 0x15f   : > { %4823 = vmatprep.subr.bf16.mxu1 %v4822_v0  ;;  %v743_v0 = vld [vmem:[#allocation2 + $0x3f8] sm:$0xff]  ;;  %v4840_v2 = vpack.c.bf16 %v734_v60, %v730_v58  ;;  %v744_v17 = vld [vmem:[#allocation2 + $0x400] sm:$0xff]  ;;  %v746_v20 = vld [vmem:[#allocation2 + $0x410] sm:$0xff] }
 0x160   : > { %v4842_v7 = vpack.c.bf16 %v743_v0, %v739_v63  ;;  %v747_v11 = vld [vmem:[#allocation2 + $0x418] sm:$0xff]  ;;  %v748_v18 = vld [vmem:[#allocation2 + $0x420] sm:$0xff]  ;;  %v754_v35 = vld [vmem:[#allocation2 + $0x450] sm:$0xff] }
 0x161   : > { %4665 = vmatpush1.bf16.msra.mxu0 %v4664_v6  ;;  %v738_v6 = vld [vmem:[#allocation2 + $0x3d0] sm:$0xff]  ;;  %v751_v12 = vld [vmem:[#allocation2 + $0x438] sm:$0xff]  ;;  %v4688_v29 = vpack.c.bf16 %v748_v18, %v744_v17  ;;  %v752_v33 = vld [vmem:[#allocation2 + $0x440] sm:$0xff] }
 0x162   : > { %4825 = vmatpush1.bf16.msra.mxu1 %v4824_v8  ;;  %4667 = vmatprep.subr.bf16.mxu0 %v4666_v9  ;;  %v742_v8 = vld [vmem:[#allocation2 + $0x3f0] sm:$0xff]  ;;  %v745_v9 = vld [vmem:[#allocation2 + $0x408] sm:$0xff]  ;;  %v4846_v21 = vpack.c.bf16 %v751_v12, %v747_v11  ;;  %v755_v27 = vld [vmem:[#allocation2 + $0x458] sm:$0xff] }
 0x163   : > { %4827 = vmatprep.subr.bf16.mxu1 %v4826_v13  ;;  %v4684_v13 = vpack.c.bf16 %v740_v5, %v736_v4  ;;  %v4844_v14 = vpack.c.bf16 %v742_v8, %v738_v6  ;;  %v4686_v15 = vpack.c.bf16 %v749_v10, %v745_v9  ;;  %v759_v28 = vld [vmem:[#allocation2 + $0x478] sm:$0xff]  ;;  %v756_v34 = vld [vmem:[#allocation2 + $0x460] sm:$0xff]  ;;  %v758_v37 = vld [vmem:[#allocation2 + $0x470] sm:$0xff] }
 0x164   : > { %v4850_v36 = vpack.c.bf16 %v759_v28, %v755_v27  ;;  %v761_v38 = vld [vmem:[#allocation2 + $0x488] sm:$0xff]  ;;  %v4692_v44 = vpack.c.bf16 %v756_v34, %v752_v33  ;;  %v4852_v45 = vpack.c.bf16 %v758_v37, %v754_v35  ;;  %v764_v48 = vld [vmem:[#allocation2 + $0x4a0] sm:$0xff]  ;;  %v762_v49 = vld [vmem:[#allocation2 + $0x490] sm:$0xff] }
 0x165   : > { %4669 = vmatpush1.bf16.msra.mxu0 %v4668_v22  ;;  %v750_v22 = vld [vmem:[#allocation2 + $0x430] sm:$0xff]  ;;  %v769_v52 = vld [vmem:[#allocation2 + $0x4c8] sm:$0xff]  ;;  %v772_v60 = vld [vmem:[#allocation2 + $0x4e0] sm:$0xff] }
 0x166   : > { %4829 = vmatpush1.bf16.msra.mxu1 %v4828_v25  ;;  %4671 = vmatprep.subr.bf16.mxu0 %v4670_v26  ;;  %v753_v25 = vld [vmem:[#allocation2 + $0x448] sm:$0xff]  ;;  %v4848_v30 = vpack.c.bf16 %v750_v22, %v746_v20  ;;  %v766_v51 = vld [vmem:[#allocation2 + $0x4b0] sm:$0xff]  ;;  %v776_v5 = vld [vmem:[#allocation2 + $0x500] sm:$0xff] }
 0x167   : > { %4831 = vmatprep.subr.bf16.mxu1 %v4830_v32  ;;  %v757_v26 = vld [vmem:[#allocation2 + $0x468] sm:$0xff]  ;;  %v4856_v57 = vpack.c.bf16 %v766_v51, %v762_v49  ;;  %v770_v61 = vld [vmem:[#allocation2 + $0x4d0] sm:$0xff]  ;;  %v780_v8 = vld [vmem:[#allocation2 + $0x520] sm:$0xff] }
 0x168   : > { %v4690_v32 = vpack.c.bf16 %v757_v26, %v753_v25  ;;  %v774_v63 = vld [vmem:[#allocation2 + $0x4f0] sm:$0xff]  ;;  %v777_v0 = vld [vmem:[#allocation2 + $0x508] sm:$0xff]  ;;  %v791_v17 = vld [vmem:[#allocation2 + $0x578] sm:$0xff]  ;;  %v4704_v20 = vpack.c.bf16 %v780_v8, %v776_v5 }
 0x169   : > { %4673 = vmatpush1.bf16.msra.mxu0 %v4672_v41  ;;  %v765_v41 = vld [vmem:[#allocation2 + $0x4a8] sm:$0xff]  ;;  %v4860_v6 = vpack.c.bf16 %v774_v63, %v770_v61  ;;  %v778_v9 = vld [vmem:[#allocation2 + $0x510] sm:$0xff]  ;;  %v788_v27 = vld [vmem:[#allocation2 + $0x560] sm:$0xff] }
 0x16a   : > { %4833 = vmatpush1.bf16.msra.mxu1 %v4832_v42  ;;  %4675 = vmatprep.subr.bf16.mxu0 %v4674_v43  ;;  %v763_v42 = vld [vmem:[#allocation2 + $0x498] sm:$0xff]  ;;  %v4694_v46 = vpack.c.bf16 %v765_v41, %v761_v38  ;;  %v782_v10 = vld [vmem:[#allocation2 + $0x530] sm:$0xff]  ;;  %v785_v12 = vld [vmem:[#allocation2 + $0x548] sm:$0xff] }
 0x16b   : > { %4835 = vmatprep.subr.bf16.mxu1 %v4834_v47  ;;  %v767_v43 = vld [vmem:[#allocation2 + $0x4b8] sm:$0xff]  ;;  %v760_v47 = vld [vmem:[#allocation2 + $0x480] sm:$0xff]  ;;  %v4864_v25 = vpack.c.bf16 %v782_v10, %v778_v9  ;;  %v786_v28 = vld [vmem:[#allocation2 + $0x550] sm:$0xff] }
 0x16c   : > { %v4854_v50 = vpack.c.bf16 %v767_v43, %v763_v42  ;;  %v4696_v56 = vpack.c.bf16 %v764_v48, %v760_v47  ;;  %v790_v33 = vld [vmem:[#allocation2 + $0x570] sm:$0xff]  ;;  %v793_v34 = vld [vmem:[#allocation2 + $0x588] sm:$0xff]  ;;  %v795_v37 = vld [vmem:[#allocation2 + $0x598] sm:$0xff] }
 0x16d   : > { %4677 = vmatpush1.bf16.msra.mxu0 %v4676_v53  ;;  %v773_v53 = vld [vmem:[#allocation2 + $0x4e8] sm:$0xff]  ;;  %v799_v38 = vld [vmem:[#allocation2 + $0x5b8] sm:$0xff]  ;;  %v796_v47 = vld [vmem:[#allocation2 + $0x5a0] sm:$0xff] }
 0x16e   : > { %4837 = vmatpush1.bf16.msra.mxu1 %v4836_v54  ;;  %4679 = vmatprep.subr.bf16.mxu0 %v4678_v55  ;;  %v771_v54 = vld [vmem:[#allocation2 + $0x4d8] sm:$0xff]  ;;  %v4698_v58 = vpack.c.bf16 %v773_v53, %v769_v52  ;;  %v797_v35 = vld [vmem:[#allocation2 + $0x5a8] sm:$0xff]  ;;  %v794_v48 = vld [vmem:[#allocation2 + $0x590] sm:$0xff]  ;;  %v4870_v49 = vpack.c.bf16 %v799_v38, %v795_v37 }
 0x16f   : > { %4839 = vmatprep.subr.bf16.mxu1 %v4838_v59  ;;  %v775_v55 = vld [vmem:[#allocation2 + $0x4f8] sm:$0xff]  ;;  %v768_v59 = vld [vmem:[#allocation2 + $0x4c0] sm:$0xff]  ;;  %v805_v51 = vld [vmem:[#allocation2 + $0x5e8] sm:$0xff] }
 0x170   : > { %v4858_v62 = vpack.c.bf16 %v775_v55, %v771_v54  ;;  %v4700_v4 = vpack.c.bf16 %v772_v60, %v768_v59  ;;  %v803_v53 = vld [vmem:[#allocation2 + $0x5d8] sm:$0xff]  ;;  %v593_v55 = vrot.slane %v6833_v16, 3  ;;  %v800_v60 = vld [vmem:[#allocation2 + $0x5c0] sm:$0xff]  ;;  %v810_v10 = vld [vmem:[#allocation2 + $0x610] sm:$0xff] }
 0x171   : > { %4681 = vmatpush1.bf16.msra.mxu0 %v4680_v1  ;;  %v781_v1 = vld [vmem:[#allocation2 + $0x528] sm:$0xff]  ;;  %v807_v54 = vld [vmem:[#allocation2 + $0x5f8] sm:$0xff]  ;;  %v804_v61 = vld [vmem:[#allocation2 + $0x5e0] sm:$0xff] }
 0x172   : > { %4841 = vmatpush1.bf16.msra.mxu1 %v4840_v2  ;;  %4683 = vmatprep.subr.bf16.mxu0 %v4682_v3  ;;  %v779_v2 = vld [vmem:[#allocation2 + $0x518] sm:$0xff]  ;;  %v4874_v63 = vpack.c.bf16 %v807_v54, %v803_v53  ;;  %v4716_v5 = vpack.c.bf16 %v804_v61, %v800_v60  ;;  %v808_v8 = vld [vmem:[#allocation2 + $0x600] sm:$0xff]  ;;  %v841_v60 = vld [vmem:[#allocation2 + $0x708] sm:$0xff] }
 0x173   : > { %4843 = vmatprep.subr.bf16.mxu1 %v4842_v7  ;;  %v783_v3 = vld [vmem:[#allocation2 + $0x538] sm:$0xff]  ;;  %v4702_v7 = vpack.c.bf16 %v781_v1, %v777_v0  ;;  %v806_v0 = vld [vmem:[#allocation2 + $0x5f0] sm:$0xff]  ;;  %v809_v1 = vld [vmem:[#allocation2 + $0x608] sm:$0xff] }
 0x174   : > { %v4862_v11 = vpack.c.bf16 %v783_v3, %v779_v2  ;;  %v813_v2 = vld [vmem:[#allocation2 + $0x628] sm:$0xff]  ;;  %v815_v3 = vld [vmem:[#allocation2 + $0x638] sm:$0xff]  ;;  %v812_v9 = vld [vmem:[#allocation2 + $0x620] sm:$0xff] }
 0x175   : > { %4685 = vmatpush1.bf16.msra.mxu0 %v4684_v13  ;;  %v789_v13 = vld [vmem:[#allocation2 + $0x568] sm:$0xff]  ;;  %v832_v54 = vld [vmem:[#allocation2 + $0x6c0] sm:$0xff]  ;;  %vm6942_vm5 = vmpackc.low %vm604_vm2, %vm6455_vm4 }
 0x176   : > { %4845 = vmatpush1.bf16.msra.mxu1 %v4844_v14  ;;  %4687 = vmatprep.subr.bf16.mxu0 %v4686_v15  ;;  %v6860_v14 = vld [vmem:[%s6830_s20 + $0x10] sm:$0xff]  ;;  %v787_v15 = vld [vmem:[#allocation2 + $0x558] sm:$0xff]  ;;  %v4706_v26 = vpack.c.bf16 %v789_v13, %v785_v12  ;;  %v817_v13 = vld [vmem:[#allocation2 + $0x648] sm:$0xff] }
 0x177   : > { %4847 = vmatprep.subr.bf16.mxu1 %v4846_v21  ;;  %v572_v18 = vrot.slane %v6860_v14, 1  ;;  %v784_v21 = vld [vmem:[#allocation2 + $0x540] sm:$0xff]  ;;  %v608_v22 = vrot.slane %v6860_v14, 4  ;;  %v814_v12 = vld [vmem:[#allocation2 + $0x630] sm:$0xff]  ;;  %v845_v61 = vld [vmem:[#allocation2 + $0x728] sm:$0xff] }
 0x178   : > { %1023 = vmatmul.mubr.f32.vlgmr.msra.gmra.mrb[0].mxu0 %v6833_v16  ;;  %vm6962_vm8 = vmneg %vm1701_vm7 }
 0x179   : > { %4689 = vmatpush1.bf16.msra.mxu0 %v4688_v29  ;;  %1290 = vmatmul.mubr.f32.vlgmr.msra.gmra.mrb[0].mxu1 %v6833_v16  ;;  %v573_v29 = vsel %vm568_vm0, %v570_v23, %v572_v18  ;;  %v6875_v41 = vsel %vm604_vm2, %v606_v31, %v608_v22  ;;  %v4708_v23 = vpack.c.bf16 %v788_v27, %v784_v21  ;;  %v798_v31 = vld [vmem:[#allocation2 + $0x5b0] sm:$0xff]  ;;  %v811_v16 = vld [vmem:[#allocation2 + $0x618] sm:$0xff]  ;;  %vm5603_vm9 = vmpackc.low %vm580_vm1, %vm6455_vm4 }
 0x17a   : > { %4849 = vmatpush1.bf16.msra.mxu1 %v4848_v30  ;;  %4691 = vmatprep.subr.bf16.mxu0 %v4690_v32  ;;  %v6868_v30 = vld [vmem:[%s6830_s20 + $0x18] sm:$0xff]  ;;  %v4866_v32 = vpack.c.bf16 %v791_v17, %v787_v15  ;;  %v821_v15 = vld [vmem:[#allocation2 + $0x668] sm:$0xff]  ;;  %v4880_v21 = vpack.c.bf16 %v814_v12, %v810_v10  ;;  %v818_v27 = vld [vmem:[#allocation2 + $0x650] sm:$0xff] }
 0x17b   : > { %4851 = vmatprep.subr.bf16.mxu1 %v4850_v36  ;;  %1028 = vmatprep.mubr.f32.mxu0 %v573_v29  ;;  %v574_v36 = vrot.slane %v6868_v30, 1  ;;  %v6880_v43 = vrot.slane %v6868_v30, 4  ;;  %v819_v17 = vld [vmem:[#allocation2 + $0x658] sm:$0xff] }
 0x17c   : > { %1295 = vmatprep.mubr.f32.mxu1 %v573_v29  ;;  %1029 = vmatmul.mubr.f32.gmra.mrb[2].mxu0 %v6836_v19  ;;  %v822_v29 = vld [vmem:[#allocation2 + $0x670] sm:$0xff]  ;;  %v855_v10 = vld [vmem:[#allocation2 + $0x778] sm:$0xff] }
 0x17d   : > { %4693 = vmatpush1.bf16.msra.mxu0 %v4692_v44  ;;  %1296 = vmatmul.mubr.f32.gmra.mrb[2].mxu1 %v6836_v19  ;;  %v575_v42 = vsel %vm568_vm0, %v572_v18, %v574_v36  ;;  %v4868_v44 = vpack.c.bf16 %v790_v33, %v786_v28  ;;  %v6884_v52 = vsel %vm604_vm2, %v608_v22, %v6880_v43  ;;  %v823_v18 = vld [vmem:[#allocation2 + $0x678] sm:$0xff]  ;;  %v829_v33 = vld [vmem:[#allocation2 + $0x6a8] sm:$0xff] }
 0x17e   : > { %4853 = vmatpush1.bf16.msra.mxu1 %v4852_v45  ;;  %4695 = vmatprep.subr.bf16.mxu0 %v4694_v46  ;;  %v4710_v45 = vpack.c.bf16 %v797_v35, %v793_v34  ;;  %v792_v46 = vld [vmem:[#allocation2 + $0x580] sm:$0xff]  ;;  %v4722_v22 = vpack.c.bf16 %v821_v15, %v817_v13  ;;  %v4882_v28 = vpack.c.bf16 %v823_v18, %v819_v17  ;;  %v827_v34 = vld [vmem:[#allocation2 + $0x698] sm:$0xff]  ;;  %v850_v18 = vld [vmem:[#allocation2 + $0x750] sm:$0xff] }
 0x17f   : > { %4855 = vmatprep.subr.bf16.mxu1 %v4854_v50  ;;  %v801_v50 = vld [vmem:[#allocation2 + $0x5c8] sm:$0xff]  ;;  %1034 = vmatprep.mubr.f32.mxu0 %v575_v42  ;;  %v831_v35 = vld [vmem:[#allocation2 + $0x6b8] sm:$0xff]  ;;  %v4884_v37 = vpack.c.bf16 %v822_v29, %v818_v27  ;;  %v848_v15 = vld [vmem:[#allocation2 + $0x740] sm:$0xff] }
 0x180   : > { %1301 = vmatprep.mubr.f32.mxu1 %v575_v42  ;;  %1035 = vmatmul.mubr.f32.gmra.mrb[4].mxu0 %v6860_v14  ;;  %v4714_v59 = vpack.c.bf16 %v805_v51, %v801_v50  ;;  %v828_v42 = vld [vmem:[#allocation2 + $0x6a0] sm:$0xff]  ;;  %v863_v27 = vld [vmem:[#allocation2 + $0x7b8] sm:$0xff] }
 0x181   : > { %4697 = vmatpush1.bf16.msra.mxu0 %v4696_v56  ;;  %v594_v56 = vrot.slane %v6836_v19, 3  ;;  %1302 = vmatmul.mubr.f32.gmra.mrb[4].mxu1 %v6860_v14  ;;  %v852_v17 = vld [vmem:[#allocation2 + $0x760] sm:$0xff] }
 0x182   : > { %4857 = vmatpush1.bf16.msra.mxu1 %v4856_v57  ;;  %4699 = vmatprep.subr.bf16.mxu0 %v4698_v58  ;;  %v4712_v57 = vpack.c.bf16 %v796_v47, %v792_v46  ;;  %v4872_v58 = vpack.c.bf16 %v798_v31, %v794_v48  ;;  %v830_v46 = vld [vmem:[#allocation2 + $0x6b0] sm:$0xff]  ;;  %v833_v47 = vld [vmem:[#allocation2 + $0x6c8] sm:$0xff]  ;;  %v839_v31 = vld [vmem:[#allocation2 + $0x6f8] sm:$0xff] }
 0x183   : > { %4859 = vmatprep.subr.bf16.mxu1 %v4858_v62  ;;  %v802_v62 = vld [vmem:[#allocation2 + $0x5d0] sm:$0xff]  ;;  %1040 = vmatprep.mubr.f32.mxu0 %v574_v36  ;;  %v837_v48 = vld [vmem:[#allocation2 + $0x6e8] sm:$0xff] }
 0x184   : > { %1307 = vmatprep.mubr.f32.mxu1 %v574_v36  ;;  %1041 = vmatmul.mubr.f32.gmra.mrb[6].mxu0 %v6868_v30  ;;  %v4730_v53 = vpack.c.bf16 %v837_v48, %v833_v47  ;;  %v864_v48 = vld [vmem:[#allocation2 + $0x7c0] sm:$0xff] }
 0x185   : > { %4701 = vmatpush1.bf16.msra.mxu0 %v4700_v4  ;;  %v595_v4 = vsel %vm592_vm3, %v593_v55, %v594_v56  ;;  %1308 = vmatmul.mubr.f32.gmra.mrb[6].mxu1 %v6868_v30  ;;  %v836_v55 = vld [vmem:[#allocation2 + $0x6e0] sm:$0xff] }
 0x186   : > { %4861 = vmatpush1.bf16.msra.mxu1 %v4860_v6  ;;  %4703 = vmatprep.subr.bf16.mxu0 %v4702_v7  ;;  %v4876_v6 = vpack.c.bf16 %v806_v0, %v802_v62  ;;  %v4718_v7 = vpack.c.bf16 %v813_v2, %v809_v1  ;;  %v843_v62 = vld [vmem:[#allocation2 + $0x718] sm:$0xff]  ;;  %v4732_v0 = vpack.c.bf16 %v836_v55, %v832_v54  ;;  %v877_v54 = vld [vmem:[#allocation2 + $0x828] sm:$0xff] }
 0x187   : > { %4863 = vmatprep.subr.bf16.mxu1 %v4862_v11  ;;  %v4878_v11 = vpack.c.bf16 %v815_v3, %v811_v16  ;;  %1111 = vmatprep.mubr.f32.mxu0 %v595_v4  ;;  %v4734_v2 = vpack.c.bf16 %v845_v61, %v841_v60  ;;  %v840_v16 = vld [vmem:[#allocation2 + $0x700] sm:$0xff]  ;;  %v875_v55 = vld [vmem:[#allocation2 + $0x818] sm:$0xff] }
 0x188   : > { %1378 = vmatprep.mubr.f32.mxu1 %v595_v4  ;;  %v844_v3 = vld [vmem:[#allocation2 + $0x720] sm:$0xff]  ;;  %v842_v4 = vld [vmem:[#allocation2 + $0x710] sm:$0xff] }
 0x189   : > { %4705 = vmatpush1.bf16.msra.mxu0 %v4704_v20  ;;  %v4720_v20 = vpack.c.bf16 %v812_v9, %v808_v8  ;;  %v853_v8 = vld [vmem:[#allocation2 + $0x768] sm:$0xff]  ;;  %v851_v9 = vld [vmem:[#allocation2 + $0x758] sm:$0xff]  ;;  %v872_v61 = vld [vmem:[#allocation2 + $0x800] sm:$0xff] }
 0x18a   : > { %4865 = vmatpush1.bf16.msra.mxu1 %v4864_v25  ;;  %4707 = vmatprep.subr.bf16.mxu0 %v4706_v26  ;;  %v816_v25 = vld [vmem:[#allocation2 + $0x640] sm:$0xff] }
 0x18b   : > { %4867 = vmatprep.subr.bf16.mxu1 %v4866_v32  ;;  %v820_v26 = vld [vmem:[#allocation2 + $0x660] sm:$0xff]  ;;  %v825_v32 = vld [vmem:[#allocation2 + $0x688] sm:$0xff] }
 0x18c   : > { %v4724_v36 = vpack.c.bf16 %v820_v26, %v816_v25  ;;  %v4726_v38 = vpack.c.bf16 %v829_v33, %v825_v32  ;;  %v861_v25 = vld [vmem:[#allocation2 + $0x7a8] sm:$0xff]  ;;  %v859_v26 = vld [vmem:[#allocation2 + $0x798] sm:$0xff]  ;;  %v856_v33 = vld [vmem:[#allocation2 + $0x780] sm:$0xff] }
 0x18d   : > { %4709 = vmatpush1.bf16.msra.mxu0 %v4708_v23  ;;  %v824_v23 = vld [vmem:[#allocation2 + $0x680] sm:$0xff] }
 0x18e   : > { %4869 = vmatpush1.bf16.msra.mxu1 %v4868_v44  ;;  %4711 = vmatprep.subr.bf16.mxu0 %v4710_v45  ;;  %v826_v44 = vld [vmem:[#allocation2 + $0x690] sm:$0xff]  ;;  %v4886_v45 = vpack.c.bf16 %v831_v35, %v827_v34  ;;  %v4728_v50 = vpack.c.bf16 %v828_v42, %v824_v23  ;;  %v860_v34 = vld [vmem:[#allocation2 + $0x7a0] sm:$0xff]  ;;  %v869_v23 = vld [vmem:[#allocation2 + $0x7e8] sm:$0xff] }
 0x18f   : > { %4871 = vmatprep.subr.bf16.mxu1 %v4870_v49  ;;  %v835_v49 = vld [vmem:[#allocation2 + $0x6d8] sm:$0xff]  ;;  %v4888_v51 = vpack.c.bf16 %v830_v46, %v826_v44  ;;  %v858_v35 = vld [vmem:[#allocation2 + $0x790] sm:$0xff] }
 0x190   : > { %v867_v42 = vld [vmem:[#allocation2 + $0x7d8] sm:$0xff] }
 0x191   : > { %4713 = vmatpush1.bf16.msra.mxu0 %v4712_v57  ;;  %v834_v57 = vld [vmem:[#allocation2 + $0x6d0] sm:$0xff]  ;;  %v871_v44 = vld [vmem:[#allocation2 + $0x7f8] sm:$0xff] }
 0x192   : > { %4873 = vmatpush1.bf16.msra.mxu1 %v4872_v58  ;;  %4715 = vmatprep.subr.bf16.mxu0 %v4714_v59  ;;  %v4890_v58 = vpack.c.bf16 %v839_v31, %v835_v49  ;;  %v838_v59 = vld [vmem:[#allocation2 + $0x6f0] sm:$0xff]  ;;  %v868_v49 = vld [vmem:[#allocation2 + $0x7e0] sm:$0xff] }
 0x193   : > { %4875 = vmatprep.subr.bf16.mxu1 %v4874_v63  ;;  %v847_v63 = vld [vmem:[#allocation2 + $0x738] sm:$0xff]  ;;  %v4892_v1 = vpack.c.bf16 %v838_v59, %v834_v57  ;;  %v866_v31 = vld [vmem:[#allocation2 + $0x7d0] sm:$0xff] }
 0x194   : > { %v879_v57 = vld [vmem:[#allocation2 + $0x838] sm:$0xff] }
 0x195   : > { %4717 = vmatpush1.bf16.msra.mxu0 %v4716_v5  ;;  %v4894_v5 = vpack.c.bf16 %v847_v63, %v843_v62  ;;  %v876_v62 = vld [vmem:[#allocation2 + $0x820] sm:$0xff]  ;;  %v874_v63 = vld [vmem:[#allocation2 + $0x810] sm:$0xff] }
 0x196   : > { %4877 = vmatpush1.bf16.msra.mxu1 %v4876_v6  ;;  %4719 = vmatprep.subr.bf16.mxu0 %v4718_v7  ;;  %v846_v6 = vld [vmem:[#allocation2 + $0x730] sm:$0xff]  ;;  %v849_v7 = vld [vmem:[#allocation2 + $0x748] sm:$0xff] }
 0x197   : > { %4879 = vmatprep.subr.bf16.mxu1 %v4878_v11  ;;  %v4736_v11 = vpack.c.bf16 %v844_v3, %v840_v16  ;;  %v4896_v12 = vpack.c.bf16 %v846_v6, %v842_v4  ;;  %v4738_v13 = vpack.c.bf16 %v853_v8, %v849_v7  ;;  %v885_v16 = vld [vmem:[#allocation2 + $0x868] sm:$0xff]  ;;  %v883_v3 = vld [vmem:[#allocation2 + $0x858] sm:$0xff]  ;;  %v4752_v6 = vpack.c.bf16 %v876_v62, %v872_v61  ;;  %v910_v61 = vld [vmem:[#allocation2 + $0x930] sm:$0xff] }
 0x198   : > { %v887_v4 = vld [vmem:[#allocation2 + $0x878] sm:$0xff]  ;;  %v584_v7 = vrot.slane %v6860_v14, 2  ;;  %v913_v62 = vld [vmem:[#allocation2 + $0x948] sm:$0xff] }
 0x199   : > { %4721 = vmatpush1.bf16.msra.mxu0 %v4720_v20  ;;  %v4898_v20 = vpack.c.bf16 %v855_v10, %v851_v9  ;;  %v880_v10 = vld [vmem:[#allocation2 + $0x840] sm:$0xff] }
 0x19a   : > { %4881 = vmatpush1.bf16.msra.mxu1 %v4880_v21  ;;  %4723 = vmatprep.subr.bf16.mxu0 %v4722_v22  ;;  %v854_v21 = vld [vmem:[#allocation2 + $0x770] sm:$0xff]  ;;  %v857_v22 = vld [vmem:[#allocation2 + $0x788] sm:$0xff] }
 0x19b   : > { %4883 = vmatprep.subr.bf16.mxu1 %v4882_v28  ;;  %v4740_v28 = vpack.c.bf16 %v852_v17, %v848_v15  ;;  %v4900_v29 = vpack.c.bf16 %v854_v21, %v850_v18  ;;  %v4742_v32 = vpack.c.bf16 %v861_v25, %v857_v22  ;;  %v886_v15 = vld [vmem:[#allocation2 + $0x870] sm:$0xff]  ;;  %v889_v17 = vld [vmem:[#allocation2 + $0x888] sm:$0xff]  ;;  %v895_v21 = vld [vmem:[#allocation2 + $0x8b8] sm:$0xff]  ;;  %v598_v22 = vrot.slane %v6868_v30, 3 }
 0x19c   : > { %v893_v18 = vld [vmem:[#allocation2 + $0x8a8] sm:$0xff] }
 0x19d   : > { %4725 = vmatpush1.bf16.msra.mxu0 %v4724_v36  ;;  %v4902_v36 = vpack.c.bf16 %v863_v27, %v859_v26  ;;  %v585_v26 = vsel %vm580_vm1, %v582_v24, %v584_v7  ;;  %v586_v27 = vrot.slane %v6868_v30, 2 }
 0x19e   : > { %4885 = vmatpush1.bf16.msra.mxu1 %v4884_v37  ;;  %4727 = vmatprep.subr.bf16.mxu0 %v4726_v38  ;;  %v862_v37 = vld [vmem:[#allocation2 + $0x7b0] sm:$0xff]  ;;  %v865_v38 = vld [vmem:[#allocation2 + $0x7c8] sm:$0xff] }
 0x19f   : > { %4887 = vmatprep.subr.bf16.mxu1 %v4886_v45  ;;  %v4744_v45 = vpack.c.bf16 %v860_v34, %v856_v33  ;;  %v4904_v46 = vpack.c.bf16 %v862_v37, %v858_v35  ;;  %v4746_v47 = vpack.c.bf16 %v869_v23, %v865_v38  ;;  %v892_v33 = vld [vmem:[#allocation2 + $0x8a0] sm:$0xff]  ;;  %v890_v34 = vld [vmem:[#allocation2 + $0x890] sm:$0xff]  ;;  %v901_v37 = vld [vmem:[#allocation2 + $0x8e8] sm:$0xff]  ;;  %v587_v30 = vsel %vm580_vm1, %v584_v7, %v586_v27 }
 0x1a0   : > { %v894_v35 = vld [vmem:[#allocation2 + $0x8b0] sm:$0xff]  ;;  %v903_v38 = vld [vmem:[#allocation2 + $0x8f8] sm:$0xff] }
 0x1a1   : > { %4729 = vmatpush1.bf16.msra.mxu0 %v4728_v50  ;;  %v4906_v50 = vpack.c.bf16 %v871_v44, %v867_v42  ;;  %v4920_v23 = vpack.c.bf16 %v894_v35, %v890_v34  ;;  %v896_v44 = vld [vmem:[#allocation2 + $0x8c0] sm:$0xff] }
 0x1a2   : > { %4889 = vmatpush1.bf16.msra.mxu1 %v4888_v51  ;;  %4731 = vmatprep.subr.bf16.mxu0 %v4730_v53  ;;  %v870_v51 = vld [vmem:[#allocation2 + $0x7f0] sm:$0xff]  ;;  %v873_v53 = vld [vmem:[#allocation2 + $0x808] sm:$0xff]  ;;  %v932_v35 = vld [vmem:[#allocation2 + $0x9e0] sm:$0xff] }
 0x1a3   : > { %4891 = vmatprep.subr.bf16.mxu1 %v4890_v58  ;;  %v4748_v58 = vpack.c.bf16 %v868_v49, %v864_v48  ;;  %v4908_v59 = vpack.c.bf16 %v870_v51, %v866_v31  ;;  %v4750_v60 = vpack.c.bf16 %v877_v54, %v873_v53  ;;  %v902_v48 = vld [vmem:[#allocation2 + $0x8f0] sm:$0xff]  ;;  %v905_v49 = vld [vmem:[#allocation2 + $0x908] sm:$0xff]  ;;  %v911_v51 = vld [vmem:[#allocation2 + $0x938] sm:$0xff] }
 0x1a4   : > { %v909_v31 = vld [vmem:[#allocation2 + $0x928] sm:$0xff] }
 0x1a5   : > { %4733 = vmatpush1.bf16.msra.mxu0 %v4732_v0  ;;  %v4910_v0 = vpack.c.bf16 %v879_v57, %v875_v55  ;;  %v4766_v55 = vpack.c.bf16 %v909_v31, %v905_v49  ;;  %v904_v57 = vld [vmem:[#allocation2 + $0x900] sm:$0xff]  ;;  %v1780_v49 = vld [vmem:[#allocation10 + $0x88] sm:$0xff] }
 0x1a6   : > { %4893 = vmatpush1.bf16.msra.mxu1 %v4892_v1  ;;  %4735 = vmatprep.subr.bf16.mxu0 %v4734_v2  ;;  %v878_v1 = vld [vmem:[#allocation2 + $0x830] sm:$0xff]  ;;  %v881_v2 = vld [vmem:[#allocation2 + $0x848] sm:$0xff] }
 0x1a7   : > { %4895 = vmatprep.subr.bf16.mxu1 %v4894_v5  ;;  %v596_v5 = vrot.slane %v6860_v14, 3  ;;  %v4912_v8 = vpack.c.bf16 %v878_v1, %v874_v63  ;;  %v4754_v9 = vpack.c.bf16 %v885_v16, %v881_v2  ;;  %v917_v63 = vld [vmem:[#allocation2 + $0x968] sm:$0xff]  ;;  %v919_v1 = vld [vmem:[#allocation2 + $0x978] sm:$0xff] }
 0x1a8   : > { %v1784_v31 = vld [vmem:[#allocation10 + $0xa8] sm:$0xff] }
 0x1a9   : > { %4737 = vmatpush1.bf16.msra.mxu0 %v4736_v11  ;;  %v884_v11 = vld [vmem:[#allocation2 + $0x860] sm:$0xff]  ;;  %v597_v14 = vsel %vm592_vm3, %v594_v56, %v596_v5  ;;  %v599_v19 = vsel %vm592_vm3, %v596_v5, %v598_v22 }
 0x1aa   : > { %4897 = vmatpush1.bf16.msra.mxu1 %v4896_v12  ;;  %4739 = vmatprep.subr.bf16.mxu0 %v4738_v13  ;;  %v882_v12 = vld [vmem:[#allocation2 + $0x850] sm:$0xff]  ;;  %v4914_v13 = vpack.c.bf16 %v887_v4, %v883_v3  ;;  %v4756_v25 = vpack.c.bf16 %v884_v11, %v880_v10  ;;  %v4770_v3 = vpack.c.bf16 %v917_v63, %v913_v62  ;;  %v912_v4 = vld [vmem:[#allocation2 + $0x940] sm:$0xff]  ;;  %v925_v10 = vld [vmem:[#allocation2 + $0x9a8] sm:$0xff]  ;;  %v6454_v11 = vmov 0.0  }
 0x1ab   : > { %4899 = vmatprep.subr.bf16.mxu1 %v4898_v20  ;;  %v891_v20 = vld [vmem:[#allocation2 + $0x898] sm:$0xff]  ;;  %v916_v5 = vld [vmem:[#allocation2 + $0x960] sm:$0xff] }
 0x1ac   : > { %v4918_v56 = vpack.c.bf16 %v895_v21, %v891_v20  ;;  %v920_v20 = vld [vmem:[#allocation2 + $0x980] sm:$0xff] }
 0x1ad   : > { %4741 = vmatpush1.bf16.msra.mxu0 %v4740_v28  ;;  %v4916_v28 = vpack.c.bf16 %v886_v15, %v882_v12  ;;  %v923_v12 = vld [vmem:[#allocation2 + $0x998] sm:$0xff]  ;;  %v4772_v15 = vpack.c.bf16 %v916_v5, %v912_v4  ;;  %v924_v21 = vld [vmem:[#allocation2 + $0x9a0] sm:$0xff] }
 0x1ae   : > { %4901 = vmatpush1.bf16.msra.mxu1 %v4900_v29  ;;  %4743 = vmatprep.subr.bf16.mxu0 %v4742_v32  ;;  %v4758_v29 = vpack.c.bf16 %v893_v18, %v889_v17  ;;  %v888_v32 = vld [vmem:[#allocation2 + $0x880] sm:$0xff] }
 0x1af   : > { %4903 = vmatprep.subr.bf16.mxu1 %v4902_v36  ;;  %v897_v36 = vld [vmem:[#allocation2 + $0x8c8] sm:$0xff]  ;;  %v4760_v24 = vpack.c.bf16 %v892_v33, %v888_v32  ;;  %v4776_v32 = vpack.c.bf16 %v924_v21, %v920_v20 }
 0x1b0   : > { %v4762_v42 = vpack.c.bf16 %v901_v37, %v897_v36  ;;  %v930_v37 = vld [vmem:[#allocation2 + $0x9d0] sm:$0xff]  ;;  %v1803_v5 = vld [vmem:[#allocation10 + $0x140] sm:$0xff] }
 0x1b1   : > { %4745 = vmatpush1.bf16.msra.mxu0 %v4744_v45  ;;  %v900_v45 = vld [vmem:[#allocation2 + $0x8e0] sm:$0xff] }
 0x1b2   : > { %4905 = vmatpush1.bf16.msra.mxu1 %v4904_v46  ;;  %4747 = vmatprep.subr.bf16.mxu0 %v4746_v47  ;;  %v898_v46 = vld [vmem:[#allocation2 + $0x8d0] sm:$0xff]  ;;  %v4764_v53 = vpack.c.bf16 %v900_v45, %v896_v44  ;;  %v1819_v21 = vld [vmem:[#allocation10 + $0x1c0] sm:$0xff] }
 0x1b3   : > { %4907 = vmatprep.subr.bf16.mxu1 %v4906_v50  ;;  %v907_v50 = vld [vmem:[#allocation2 + $0x918] sm:$0xff]  ;;  %v4924_v54 = vpack.c.bf16 %v902_v48, %v898_v46  ;;  %v1772_v44 = vld [vmem:[#allocation10 + $0x48] sm:$0xff]  ;;  %v1771_v46 = vld [vmem:[#allocation10 + $0x40] sm:$0xff] }
 0x1b4   : > { %v1776_v45 = vld [vmem:[#allocation10 + $0x68] sm:$0xff] }
 0x1b5   : > { %4749 = vmatpush1.bf16.msra.mxu0 %v4748_v58  ;;  %v908_v58 = vld [vmem:[#allocation2 + $0x920] sm:$0xff] }
 0x1b6   : > { %4909 = vmatpush1.bf16.msra.mxu1 %v4908_v59  ;;  %4751 = vmatprep.subr.bf16.mxu0 %v4750_v60  ;;  %v906_v59 = vld [vmem:[#allocation2 + $0x910] sm:$0xff]  ;;  %v4926_v60 = vpack.c.bf16 %v911_v51, %v907_v50  ;;  %v4768_v2 = vpack.c.bf16 %v908_v58, %v904_v57  ;;  %v1779_v50 = vld [vmem:[#allocation10 + $0x80] sm:$0xff] }
 0x1b7   : > { %4911 = vmatprep.subr.bf16.mxu1 %v4910_v0  ;;  %v915_v0 = vld [vmem:[#allocation2 + $0x958] sm:$0xff]  ;;  %v4928_v16 = vpack.c.bf16 %v910_v61, %v906_v59  ;;  %v1783_v51 = vld [vmem:[#allocation10 + $0xa0] sm:$0xff]  ;;  %v1800_v61 = vld [vmem:[#allocation10 + $0x128] sm:$0xff] }
 0x1b8   : > { %1112 = vmatmul.mubr.f32.vlgmr.msra.gmra.mrb[0].mxu0 %v6850_v39  ;;  %v4930_v7 = vpack.c.bf16 %v919_v1, %v915_v0  ;;  %v1787_v58 = vld [vmem:[#allocation10 + $0xc0] sm:$0xff] }
 0x1b9   : > { %4753 = vmatpush1.bf16.msra.mxu0 %v4752_v6  ;;  %1379 = vmatmul.mubr.f32.vlgmr.msra.gmra.mrb[0].mxu1 %v6850_v39  ;;  %v899_v39 = vld [vmem:[#allocation2 + $0x8d8] sm:$0xff]  ;;  %v914_v6 = vld [vmem:[#allocation2 + $0x950] sm:$0xff]  ;;  %v1791_v59 = vld [vmem:[#allocation10 + $0xe0] sm:$0xff] }
 0x1ba   : > { %4913 = vmatpush1.bf16.msra.mxu1 %v4912_v8  ;;  %4755 = vmatprep.subr.bf16.mxu0 %v4754_v9  ;;  %v4922_v47 = vpack.c.bf16 %v903_v38, %v899_v39  ;;  %v918_v8 = vld [vmem:[#allocation2 + $0x970] sm:$0xff]  ;;  %v921_v9 = vld [vmem:[#allocation2 + $0x988] sm:$0xff]  ;;  %v4976_v62 = vpack.c.bf16 %v1791_v59, %v1787_v58 }
 0x1bb   : > { %4915 = vmatprep.subr.bf16.mxu1 %v4914_v13  ;;  %1117 = vmatprep.mubr.f32.mxu0 %v597_v14  ;;  %v927_v13 = vld [vmem:[#allocation2 + $0x9b8] sm:$0xff]  ;;  %v4932_v17 = vpack.c.bf16 %v918_v8, %v914_v6  ;;  %v4774_v18 = vpack.c.bf16 %v925_v10, %v921_v9  ;;  %v934_v39 = vld [vmem:[#allocation2 + $0x9f0] sm:$0xff]  ;;  %v1795_v0 = vld [vmem:[#allocation10 + $0x100] sm:$0xff] }
 0x1bc   : > { %1384 = vmatprep.mubr.f32.mxu1 %v597_v14  ;;  %1118 = vmatmul.mubr.f32.gmra.mrb[2].mxu0 %v585_v26  ;;  %v922_v14 = vld [vmem:[#allocation2 + $0x990] sm:$0xff]  ;;  %v1799_v1 = vld [vmem:[#allocation10 + $0x120] sm:$0xff] }
 0x1bd   : > { %4757 = vmatpush1.bf16.msra.mxu0 %v4756_v25  ;;  %1385 = vmatmul.mubr.f32.gmra.mrb[2].mxu1 %v585_v26  ;;  %v926_v25 = vld [vmem:[#allocation2 + $0x9b0] sm:$0xff]  ;;  %v929_v26 = vld [vmem:[#allocation2 + $0x9c8] sm:$0xff] }
 0x1be   : > { %4917 = vmatpush1.bf16.msra.mxu1 %v4916_v28  ;;  %4759 = vmatprep.subr.bf16.mxu0 %v4758_v29  ;;  %v931_v28 = vld [vmem:[#allocation2 + $0x9d8] sm:$0xff]  ;;  %v4936_v33 = vpack.c.bf16 %v926_v25, %v922_v14  ;;  %v1807_v6 = vld [vmem:[#allocation10 + $0x160] sm:$0xff]  ;;  %v1816_v8 = vld [vmem:[#allocation10 + $0x1a8] sm:$0xff] }
 0x1bf   : > { %4919 = vmatprep.subr.bf16.mxu1 %v4918_v56  ;;  %1123 = vmatprep.mubr.f32.mxu0 %v599_v19  ;;  %v935_v29 = vld [vmem:[#allocation2 + $0x9f8] sm:$0xff]  ;;  %v928_v56 = vld [vmem:[#allocation2 + $0x9c0] sm:$0xff]  ;;  %v4984_v9 = vpack.c.bf16 %v1807_v6, %v1803_v5  ;;  %v1832_v25 = vld [vmem:[#allocation10 + $0x228] sm:$0xff] }
 0x1c0   : > { %1390 = vmatprep.mubr.f32.mxu1 %v599_v19  ;;  %1124 = vmatmul.mubr.f32.gmra.mrb[4].mxu0 %v587_v30  ;;  %v4938_v36 = vpack.c.bf16 %v935_v29, %v931_v28  ;;  %v4780_v38 = vpack.c.bf16 %v932_v35, %v928_v56  ;;  %v4940_v19 = vpack.c.bf16 %v934_v39, %v930_v37  ;;  %v1823_v14 = vld [vmem:[#allocation10 + $0x1e0] sm:$0xff]  ;;  %v1844_v37 = vld [vmem:[#allocation10 + $0x288] sm:$0xff] }
 0x1c1   : > { %4761 = vmatpush1.bf16.msra.mxu0 %v4760_v24  ;;  %1391 = vmatmul.mubr.f32.gmra.mrb[4].mxu1 %v587_v30  ;;  %v1763_v30 = vld [vmem:[#allocation10] sm:$0xff]  ;;  %v1848_v39 = vld [vmem:[#allocation10 + $0x2a8] sm:$0xff] }
 0x1c2   : > { %4921 = vmatpush1.bf16.msra.mxu1 %v4920_v23  ;;  %4763 = vmatprep.subr.bf16.mxu0 %v4762_v42  ;;  %v1767_v23 = vld [vmem:[#allocation10 + $0x20] sm:$0xff] }
 0x1c3   : > { %4923 = vmatprep.subr.bf16.mxu1 %v4922_v47  ;;  %1129 = vmatprep.mubr.f32.mxu0 %v598_v22  ;;  %v4964_v42 = vpack.c.bf16 %v1767_v23, %v1763_v30  ;;  %v1775_v47 = vld [vmem:[#allocation10 + $0x60] sm:$0xff]  ;;  %v1856_v30 = vld [vmem:[#allocation10 + $0x2e8] sm:$0xff] }
 0x1c4   : > { %1396 = vmatprep.mubr.f32.mxu1 %v598_v22  ;;  %1130 = vmatmul.mubr.f32.gmra.mrb[6].mxu0 %v586_v27  ;;  %v4934_v22 = vpack.c.bf16 %v927_v13, %v923_v12  ;;  %v4968_v48 = vpack.c.bf16 %v1775_v47, %v1771_v46  ;;  %v1811_v12 = vld [vmem:[#allocation10 + $0x180] sm:$0xff]  ;;  %v1864_v46 = vld [vmem:[#allocation10 + $0x328] sm:$0xff] }
 0x1c5   : > { %4765 = vmatpush1.bf16.msra.mxu0 %v4764_v53  ;;  %1397 = vmatmul.mubr.f32.gmra.mrb[6].mxu1 %v586_v27  ;;  %v933_v27 = vld [vmem:[#allocation2 + $0x9e8] sm:$0xff]  ;;  %v4972_v53 = vpack.c.bf16 %v1783_v51, %v1779_v50  ;;  %v938_v50 = vlaneseq }
 0x1c6   : > { %4925 = vmatpush1.bf16.msra.mxu1 %v4924_v54  ;;  %4767 = vmatprep.subr.bf16.mxu0 %v4766_v55  ;;  %v4778_v34 = vpack.c.bf16 %v933_v27, %v929_v26  ;;  %v1788_v54 = vld [vmem:[#allocation10 + $0xc8] sm:$0xff]  ;;  %v1815_v13 = vld [vmem:[#allocation10 + $0x1a0] sm:$0xff]  ;;  %v4992_v26 = vpack.c.bf16 %v1823_v14, %v1819_v21 }
 0x1c7   : > { %4927 = vmatprep.subr.bf16.mxu1 %v4926_v60  ;;  %1200 = vmatprep.mubr.f32.mxu0 %v6454_v11  ;;  %v1792_v55 = vld [vmem:[#allocation10 + $0xe8] sm:$0xff]  ;;  %v1827_v28 = vld [vmem:[#allocation10 + $0x200] sm:$0xff]  ;;  %v6926_v51 = vshrl.u32 %v938_v50, 7 }
 0x1c8   : > { %1467 = vmatprep.mubr.f32.mxu1 %v6454_v11  ;;  %v4974_v57 = vpack.c.bf16 %v1792_v55, %v1788_v54  ;;  %v1796_v60 = vld [vmem:[#allocation10 + $0x108] sm:$0xff]  ;;  %v1831_v29 = vld [vmem:[#allocation10 + $0x220] sm:$0xff]  ;;  %v936_v54 = vld [vmem:[#allocation5] sm:$0xf] }
 0x1c9   : > { %4769 = vmatpush1.bf16.msra.mxu0 %v4768_v2  ;;  %v4978_v63 = vpack.c.bf16 %v1800_v61, %v1796_v60  ;;  %v1804_v2 = vld [vmem:[#allocation10 + $0x148] sm:$0xff]  ;;  %v1835_v35 = vld [vmem:[#allocation10 + $0x240] sm:$0xff]  ;;  %v948_v55 = vsub.s32 2, %v6926_v51  ;;  %v952_v58 = vsub.s32 3, %v6926_v51 }
 0x1ca   : > { %4929 = vmatpush1.bf16.msra.mxu1 %v4928_v16  ;;  %4771 = vmatprep.subr.bf16.mxu0 %v4770_v3  ;;  %v1808_v16 = vld [vmem:[#allocation10 + $0x168] sm:$0xff]  ;;  %v4980_v3 = vpack.c.bf16 %v1799_v1, %v1795_v0 }
 0x1cb   : > { %4931 = vmatprep.subr.bf16.mxu1 %v4930_v7  ;;  %v4982_v4 = vpack.c.bf16 %v1808_v16, %v1804_v2  ;;  %v1812_v7 = vld [vmem:[#allocation10 + $0x188] sm:$0xff]  ;;  %v949_v60 = vrot.slane %v936_v54, %v948_v55 }
 0x1cc   : > { %v4986_v10 = vpack.c.bf16 %v1816_v8, %v1812_v7 }
 0x1cd   : > { %4773 = vmatpush1.bf16.msra.mxu0 %v4772_v15  ;;  %v1820_v15 = vld [vmem:[#allocation10 + $0x1c8] sm:$0xff] }
 0x1ce   : > { %4933 = vmatpush1.bf16.msra.mxu1 %v4932_v17  ;;  %4775 = vmatprep.subr.bf16.mxu0 %v4774_v18  ;;  %v1824_v17 = vld [vmem:[#allocation10 + $0x1e8] sm:$0xff]  ;;  %v4988_v18 = vpack.c.bf16 %v1815_v13, %v1811_v12 }
 0x1cf   : > { %4935 = vmatprep.subr.bf16.mxu1 %v4934_v22  ;;  %v4990_v20 = vpack.c.bf16 %v1824_v17, %v1820_v15  ;;  %v1828_v22 = vld [vmem:[#allocation10 + $0x208] sm:$0xff] }
 0x1d0   : > { %v4994_v27 = vpack.c.bf16 %v1832_v25, %v1828_v22 }
 0x1d1   : > { %4777 = vmatpush1.bf16.msra.mxu0 %v4776_v32  ;;  %v1836_v32 = vld [vmem:[#allocation10 + $0x248] sm:$0xff] }
 0x1d2   : > { %4937 = vmatpush1.bf16.msra.mxu1 %v4936_v33  ;;  %4779 = vmatprep.subr.bf16.mxu0 %v4778_v34  ;;  %v1840_v33 = vld [vmem:[#allocation10 + $0x268] sm:$0xff]  ;;  %v4996_v34 = vpack.c.bf16 %v1831_v29, %v1827_v28 }
 0x1d3   : > { %4939 = vmatprep.subr.bf16.mxu1 %v4938_v36  ;;  %v4998_v56 = vpack.c.bf16 %v1840_v33, %v1836_v32  ;;  %v1839_v36 = vld [vmem:[#allocation10 + $0x260] sm:$0xff] }
 0x1d5   : > { %4781 = vmatpush1.bf16.msra.mxu0 %v4780_v38  ;;  %v5000_v38 = vpack.c.bf16 %v1839_v36, %v1835_v35 }
 0x1d6   : > { %4941 = vmatpush1.bf16.msra.mxu1 %v4940_v19  ;;  %v5002_v19 = vpack.c.bf16 %v1848_v39, %v1844_v37 }
 0x1d8   : > { %1201 = vmatmul.mubr.f32.vlgmr.msra.gmra.mrb[0].mxu0 %v6855_v40 }
 0x1d9   : > { %1468 = vmatmul.mubr.f32.vlgmr.msra.gmra.mrb[0].mxu1 %v6855_v40  ;;  %1206 = vmatprep.mubr.f32.mxu0 %v6454_v11  ;;  %v1764_v40 = vld [vmem:[#allocation10 + $0x8] sm:$0xff] }
 0x1da   : > { %1473 = vmatprep.mubr.f32.mxu1 %v6454_v11 }
 0x1dc   : > { %1207 = vmatmul.mubr.f32.gmra.mrb[2].mxu0 %v6875_v41 }
 0x1dd   : > { %1474 = vmatmul.mubr.f32.gmra.mrb[2].mxu1 %v6875_v41  ;;  %1212 = vmatprep.mubr.f32.mxu0 %v6454_v11  ;;  %v1768_v41 = vld [vmem:[#allocation10 + $0x28] sm:$0xff] }
 0x1de   : > { %1479 = vmatprep.mubr.f32.mxu1 %v6454_v11  ;;  %v4962_v24 = vpack.c.bf16 %v1768_v41, %v1764_v40  ;;  %v1843_v40 = vld [vmem:[#allocation10 + $0x280] sm:$0xff] }
 0x1df   : > { %v1847_v41 = vld [vmem:[#allocation10 + $0x2a0] sm:$0xff] }
 0x1e0   : > { %1213 = vmatmul.mubr.f32.gmra.mrb[4].mxu0 %v6884_v52  ;;  %4963 = vmatprep.subr.bf16.mxu0 %v4962_v24  ;;  %v1852_v24 = vld [vmem:[#allocation10 + $0x2c8] sm:$0xff]  ;;  %v5004_v23 = vpack.c.bf16 %v1847_v41, %v1843_v40 }
 0x1e1   : > { %1480 = vmatmul.mubr.f32.gmra.mrb[4].mxu1 %v6884_v52  ;;  %1218 = vmatprep.mubr.f32.mxu0 %v6454_v11  ;;  %v4966_v52 = vpack.c.bf16 %v1776_v45, %v1772_v44  ;;  %v1851_v44 = vld [vmem:[#allocation10 + $0x2c0] sm:$0xff] }
 0x1e2   : > { %1485 = vmatprep.mubr.f32.mxu1 %v6454_v11  ;;  %4965 = vmatpush1.bf16.msra.mxu0 %v4964_v42  ;;  %v5006_v42 = vpack.c.bf16 %v1856_v30, %v1852_v24  ;;  %v1855_v45 = vld [vmem:[#allocation10 + $0x2e0] sm:$0xff] }
 0x1e3   : > { %4967 = vmatprep.subr.bf16.mxu0 %v4966_v52  ;;  %v1860_v52 = vld [vmem:[#allocation10 + $0x308] sm:$0xff]  ;;  %v5008_v47 = vpack.c.bf16 %v1855_v45, %v1851_v44 }
 0x1e4   : > { %1219 = vmatmul.mubr.f32.gmra.mrb[6].mxu0 %v6880_v43 }
 0x1e5   : > { %1486 = vmatmul.mubr.f32.gmra.mrb[6].mxu1 %v6880_v43  ;;  %v4970_v43 = vpack.c.bf16 %v1784_v31, %v1780_v49  ;;  %v1859_v49 = vld [vmem:[#allocation10 + $0x300] sm:$0xff] }
 0x1e6   : > { %1595 = vmatprep.mubr.f32.mxu1 %v6454_v11  ;;  %4969 = vmatpush1.bf16.msra.mxu0 %v4968_v48  ;;  %v5010_v48 = vpack.c.bf16 %v1864_v46, %v1860_v52  ;;  %v1863_v31 = vld [vmem:[#allocation10 + $0x320] sm:$0xff] }
 0x1e7   : > { %4971 = vmatprep.subr.bf16.mxu0 %v4970_v43  ;;  %v5012_v43 = vpack.c.bf16 %v1863_v31, %v1859_v49 }
 0x1ea   : > { %4973 = vmatpush1.bf16.msra.mxu0 %v4972_v53  ;;  %v940_v53 = vsub.s32 0, %v6926_v51 }
 0x1eb   : > { %4975 = vmatprep.subr.bf16.mxu0 %v4974_v57  ;;  %v944_v57 = vsub.s32 1, %v6926_v51 }
 0x1ec   : > { %v941_v59 = vrot.slane %v936_v54, %v940_v53 }
 0x1ed   : > { %v945_v61 = vrot.slane %v936_v54, %v944_v57 }
 0x1ee   : > { %4977 = vmatpush1.bf16.msra.mxu0 %v4976_v62  ;;  %v953_v62 = vrot.slane %v936_v54, %v952_v58 }
 0x1ef   : > { %4979 = vmatprep.subr.bf16.mxu0 %v4978_v63 }
 0x1f2   : > { %4981 = vmatpush1.bf16.msra.mxu0 %v4980_v3 }
 0x1f3   : > { %4983 = vmatprep.subr.bf16.mxu0 %v4982_v4 }
 0x1f6   : > { %4985 = vmatpush1.bf16.msra.mxu0 %v4984_v9 }
 0x1f7   : > { %4987 = vmatprep.subr.bf16.mxu0 %v4986_v10 }
 0x1fa   : > { %4989 = vmatpush1.bf16.msra.mxu0 %v4988_v18 }
 0x1fb   : > { %4991 = vmatprep.subr.bf16.mxu0 %v4990_v20 }
 0x1fe   : > { %4993 = vmatpush1.bf16.msra.mxu0 %v4992_v26 }
 0x1ff   : > { %4995 = vmatprep.subr.bf16.mxu0 %v4994_v27 }
 0x202   : > { %4997 = vmatpush1.bf16.msra.mxu0 %v4996_v34 }
 0x203   : > { %4999 = vmatprep.subr.bf16.mxu0 %v4998_v56 }
 0x206   : > { %5001 = vmatpush1.bf16.msra.mxu0 %v5000_v38 }
 0x207   : > { %5003 = vmatprep.subr.bf16.mxu0 %v5002_v19 }
 0x20a   : > { %5005 = vmatpush1.bf16.msra.mxu0 %v5004_v23 }
 0x20b   : > { %5007 = vmatprep.subr.bf16.mxu0 %v5006_v42 }
 0x20e   : > { %5009 = vmatpush1.bf16.msra.mxu0 %v5008_v47 }
 0x20f   : > { %5011 = vmatprep.subr.bf16.mxu0 %v5010_v48 }
 0x212   : > { %5013 = vmatpush1.bf16.msra.mxu0 %v5012_v43 }
 0x2ab   : > { %v1202_v63 = vpop.f32.mrb[0].mxu0 }
 0x2ac   : > { %v5838_v0 = vadd.f32 %v1202_v63, %v941_v59  ;;  %v1469_v1 = vpop.f32.mrb[0].mxu1  ;;  %v1204_v2 = vpop.f32.mrb[1].mxu0 }
 0x2ad   : > { %v5846_v16 = vadd.f32 %v1469_v1, %v949_v60  ;;  %v5839_v3 = vadd.f32 %v1204_v2, %v945_v61  ;;  %v1471_v4 = vpop.f32.mrb[1].mxu1 }
 0x2ae   : > { %v1492_v5 = vmax.f32 %v5838_v0, 0.0  ;;  %v5847_v6 = vadd.f32 %v1471_v4, %v953_v62  ;;  %v1517_v4 = vld [vmem:[#allocation7 + $0x8] sm:$0x3f] }
 0x2af   : > { %v1494_v7 = vmax.f32 %v5846_v16, 0.0  ;;  %v1493_v8 = vmax.f32 %v5839_v3, 0.0  ;;  %v1208_v9 = vpop.f32.mrb[2].mxu0  ;;  %v1770_v3 = vld [vmem:[#allocation10 + $0x38] sm:$0xff] }
 0x2b0   : > { %v1495_v10 = vmax.f32 %v5847_v6, 0.0  ;;  %v5840_v12 = vadd.f32 %v1208_v9, %v941_v59  ;;  %v1475_v13 = vpop.f32.mrb[2].mxu1  ;;  %v1210_v15 = vpop.f32.mrb[3].mxu0  ;;  %v1765_v6 = vld [vmem:[#allocation10 + $0x10] sm:$0xff]  ;;  %v1778_v9 = vld [vmem:[#allocation10 + $0x78] sm:$0xff] }
 0x2b1   : > { %v1508_v17 = vmax.f32 %v1492_v5, %v1494_v7  ;;  %v5848_v18 = vadd.f32 %v1475_v13, %v949_v60  ;;  %v5841_v20 = vadd.f32 %v1210_v15, %v945_v61  ;;  %v1477_v21 = vpop.f32.mrb[3].mxu1  ;;  %v1769_v7 = vld [vmem:[#allocation10 + $0x30] sm:$0xff] }
 0x2b2   : > { %v1509_v14 = vmax.f32 %v1493_v8, %v1495_v10  ;;  %v1496_v22 = vmax.f32 %v5840_v12, 0.0  ;;  %v5849_v25 = vadd.f32 %v1477_v21, %v953_v62  ;;  %v1774_v8 = vld [vmem:[#allocation10 + $0x58] sm:$0xff]  ;;  %v1608_v10 = vld [vmem:[#allocation8] sm:$0xff]  ;;  %v5284_v12 = vpack.c.bf16 %v1769_v7, %v1765_v6 }
 0x2b3   : > { %v1498_v26 = vmax.f32 %v5848_v18, 0.0  ;;  %v1497_v27 = vmax.f32 %v5841_v20, 0.0  ;;  %v1214_v28 = vpop.f32.mrb[4].mxu0  ;;  %v5286_v13 = vpack.c.bf16 %v1778_v9, %v1774_v8  ;;  %v1773_v15 = vld [vmem:[#allocation10 + $0x50] sm:$0xff]  ;;  %v1782_v18 = vld [vmem:[#allocation10 + $0x98] sm:$0xff] }
 0x2b4   : > { %v1499_v29 = vmax.f32 %v5849_v25, 0.0  ;;  %v5842_v32 = vadd.f32 %v1214_v28, %v941_v59  ;;  %v1481_v33 = vpop.f32.mrb[4].mxu1  ;;  %v1216_v34 = vpop.f32.mrb[5].mxu0  ;;  %v1786_v20 = vld [vmem:[#allocation10 + $0xb8] sm:$0xff]  ;;  %v1781_v25 = vld [vmem:[#allocation10 + $0x90] sm:$0xff] }
 0x2b5   : > { %v1510_v56 = vmax.f32 %v1496_v22, %v1498_v26  ;;  %v5850_v35 = vadd.f32 %v1481_v33, %v949_v60  ;;  %v5843_v36 = vadd.f32 %v1216_v34, %v945_v61  ;;  %v1483_v37 = vpop.f32.mrb[5].mxu1  ;;  %v1609_v21 = vld [vmem:[#allocation8 + $0x8] sm:$0x3f]  ;;  %v5290_v22 = vpack.c.bf16 %v1786_v20, %v1782_v18  ;;  %v1785_v26 = vld [vmem:[#allocation10 + $0xb0] sm:$0xff] }
 0x2b6   : > { %v1511_v39 = vmax.f32 %v1497_v27, %v1499_v29  ;;  %v1500_v38 = vmax.f32 %v5842_v32, 0.0  ;;  %v5851_v19 = vadd.f32 %v1483_v37, %v953_v62  ;;  %v1790_v27 = vld [vmem:[#allocation10 + $0xd8] sm:$0xff]  ;;  %v5292_v29 = vpack.c.bf16 %v1785_v26, %v1781_v25  ;;  %v1789_v33 = vld [vmem:[#allocation10 + $0xd0] sm:$0xff] }
 0x2b7   : > { %v4944_v40 = vpack.c.bf16 %v1510_v56, %v1508_v17  ;;  %v1502_v41 = vmax.f32 %v5850_v35, 0.0  ;;  %v1501_v24 = vmax.f32 %v5843_v36, 0.0  ;;  %v1220_v30 = vpop.f32.mrb[6].mxu0  ;;  %v1777_v17 = vld [vmem:[#allocation10 + $0x70] sm:$0xff]  ;;  %v1794_v28 = vld [vmem:[#allocation10 + $0xf8] sm:$0xff] }
 0x2b8   : > { %v1503_v23 = vmax.f32 %v5851_v19, 0.0  ;;  %v5844_v42 = vadd.f32 %v1220_v30, %v941_v59  ;;  %v1487_v44 = vpop.f32.mrb[6].mxu1  ;;  %v1222_v45 = vpop.f32.mrb[7].mxu0  ;;  %v4942_v52 = vpack.c.bf16 %v1511_v39, %v1509_v14  ;;  %v5288_v14 = vpack.c.bf16 %v1777_v17, %v1773_v15  ;;  %v1793_v34 = vld [vmem:[#allocation10 + $0xf0] sm:$0xff]  ;;  %v1798_v56 = vld [vmem:[#allocation10 + $0x118] sm:$0xff] }
 0x2b9   : > { %v1512_v46 = vmax.f32 %v1500_v38, %v1502_v41  ;;  %v5852_v47 = vadd.f32 %v1487_v44, %v949_v60  ;;  %v5845_v48 = vadd.f32 %v1222_v45, %v945_v61  ;;  %v1489_v49 = vpop.f32.mrb[7].mxu1  ;;  %v1516_v61 = vld [vmem:[#allocation7] sm:$0xff]  ;;  %v5294_v32 = vpack.c.bf16 %v1794_v28, %v1790_v27  ;;  %v1802_v35 = vld [vmem:[#allocation10 + $0x138] sm:$0xff]  ;;  %v1797_v39 = vld [vmem:[#allocation10 + $0x110] sm:$0xff] }
 0x2ba   : > { %v1513_v31 = vmax.f32 %v1501_v24, %v1503_v23  ;;  %v1504_v43 = vmax.f32 %v5844_v42, 0.0  ;;  %v5853_v50 = vadd.f32 %v1489_v49, %v953_v62  ;;  %4943 = vmatprep.subr.bf16.mxu1 %v4942_v52  ;;  %v1766_v62 = vld [vmem:[#allocation10 + $0x18] sm:$0xff]  ;;  %v5296_v36 = vpack.c.bf16 %v1793_v34, %v1789_v33  ;;  %v1801_v38 = vld [vmem:[#allocation10 + $0x130] sm:$0xff]  ;;  %v1872_v33 = vld [vmem:[#allocation10 + $0x368] sm:$0xff] }
 0x2bb   : > { %v1506_v54 = vmax.f32 %v5852_v47, 0.0  ;;  %v1505_v63 = vmax.f32 %v5845_v48, 0.0  ;;  %4945 = vmatpush1.bf16.msra.mxu1 %v4944_v40  ;;  %v5282_v5 = vpack.c.bf16 %v1770_v3, %v1766_v62  ;;  %v5298_v37 = vpack.c.bf16 %v1802_v35, %v1798_v56  ;;  %v1806_v19 = vld [vmem:[#allocation10 + $0x158] sm:$0xff]  ;;  %v1805_v30 = vld [vmem:[#allocation10 + $0x150] sm:$0xff] }
 0x2bc   : > { %v1507_v0 = vmax.f32 %v5853_v50, 0.0  ;;  %v5300_v41 = vpack.c.bf16 %v1801_v38, %v1797_v39  ;;  %v1809_v23 = vld [vmem:[#allocation10 + $0x170] sm:$0xff]  ;;  %v1814_v42 = vld [vmem:[#allocation10 + $0x198] sm:$0xff] }
 0x2bd   : > { %v1514_v1 = vmax.f32 %v1504_v43, %v1506_v54  ;;  %v1818_v44 = vld [vmem:[#allocation10 + $0x1b8] sm:$0xff]  ;;  %v5304_v45 = vpack.c.bf16 %v1809_v23, %v1805_v30  ;;  %v1817_v47 = vld [vmem:[#allocation10 + $0x1b0] sm:$0xff]  ;;  %v1880_v30 = vld [vmem:[#allocation10 + $0x3a8] sm:$0xff] }
 0x2be   : > { %v1515_v2 = vmax.f32 %v1505_v63, %v1507_v0  ;;  %v1822_v48 = vld [vmem:[#allocation10 + $0x1d8] sm:$0xff]  ;;  %v1821_v50 = vld [vmem:[#allocation10 + $0x1d0] sm:$0xff] }
 0x2bf   : > { %v4949_v16 = vpack.c.bf16 %v1514_v1, %v1512_v46  ;;  %v1813_v46 = vld [vmem:[#allocation10 + $0x190] sm:$0xff]  ;;  %v1826_v49 = vld [vmem:[#allocation10 + $0x1f8] sm:$0xff] }
 0x2c0   : > { %v4946_v60 = vpack.c.bf16 %v1515_v2, %v1513_v31  ;;  %v5308_v31 = vpack.c.bf16 %v1817_v47, %v1813_v46  ;;  %v5310_v43 = vpack.c.bf16 %v1826_v49, %v1822_v48  ;;  %v1825_v54 = vld [vmem:[#allocation10 + $0x1f0] sm:$0xff]  ;;  %v1830_v63 = vld [vmem:[#allocation10 + $0x218] sm:$0xff] }
 0x2c1   : > { %v1834_v0 = vld [vmem:[#allocation10 + $0x238] sm:$0xff]  ;;  %v5312_v1 = vpack.c.bf16 %v1825_v54, %v1821_v50  ;;  %v1833_v59 = vld [vmem:[#allocation10 + $0x230] sm:$0xff]  ;;  %v1888_v50 = vld [vmem:[#allocation10 + $0x3e8] sm:$0xff] }
 0x2c2   : > { %4948 = vmatprep.subr.msk.bf16.mxu1 %vm6942_vm5, %v4946_v60  ;;  %v5314_v2 = vpack.c.bf16 %v1834_v0, %v1830_v63  ;;  %v1846_v6 = vld [vmem:[#allocation10 + $0x298] sm:$0xff]  ;;  %v1853_v20 = vld [vmem:[#allocation10 + $0x2d0] sm:$0xff] }
 0x2c3   : > { %4951 = vmatpush1.bf16.msk.msra.mxu1 %vm6942_vm5, %v4949_v16  ;;  %v1850_v7 = vld [vmem:[#allocation10 + $0x2b8] sm:$0xff]  ;;  %v1861_v27 = vld [vmem:[#allocation10 + $0x310] sm:$0xff] }
 0x2c4   : > { %4953 = vmatprep.subr.bf16.mxu1 %v4942_v52  ;;  %v5306_v52 = vpack.c.bf16 %v1818_v44, %v1814_v42  ;;  %v5322_v9 = vpack.c.bf16 %v1850_v7, %v1846_v6  ;;  %v1858_v15 = vld [vmem:[#allocation10 + $0x2f8] sm:$0xff]  ;;  %v1865_v28 = vld [vmem:[#allocation10 + $0x330] sm:$0xff] }
 0x2c5   : > { %v1870_v34 = vld [vmem:[#allocation10 + $0x358] sm:$0xff]  ;;  %v1877_v48 = vld [vmem:[#allocation10 + $0x390] sm:$0xff] }
 0x2c6   : > { %4352 = vmatmul.mubr.msk.f32.vlgmr.msra.gmra.mrb[8].mxu1 %vm1518_vm6, %v1516_v61  ;;  %v1842_v61 = vld [vmem:[#allocation10 + $0x278] sm:$0xff]  ;;  %v1881_v49 = vld [vmem:[#allocation10 + $0x3b0] sm:$0xff] }
 0x2c7   : > { %4955 = vmatpush1.bf16.msra.mxu1 %v4944_v40  ;;  %1601 = vmatprep.mubr.f32.mxu1 %v6454_v11  ;;  %v1810_v40 = vld [vmem:[#allocation10 + $0x178] sm:$0xff] }
 0x2c8   : > { %4958 = vmatprep.subr.msk.bf16.mxu1 %vm6942_vm5, %v4946_v60  ;;  %v5302_v24 = vpack.c.bf16 %v1810_v40, %v1806_v19  ;;  %v1838_v60 = vld [vmem:[#allocation10 + $0x258] sm:$0xff]  ;;  %v1869_v19 = vld [vmem:[#allocation10 + $0x350] sm:$0xff] }
 0x2c9   : > { %v5318_v3 = vpack.c.bf16 %v1842_v61, %v1838_v60  ;;  %v1874_v35 = vld [vmem:[#allocation10 + $0x378] sm:$0xff]  ;;  %v1873_v40 = vld [vmem:[#allocation10 + $0x370] sm:$0xff] }
 0x2ca   : > { %4353 = vmatmul.mubr.msk.f32.gmra.mrb[10].mxu1 %vm1518_vm6, %v1517_v4  ;;  %v1837_v4 = vld [vmem:[#allocation10 + $0x250] sm:$0xff]  ;;  %v5334_v39 = vpack.c.bf16 %v1874_v35, %v1870_v34  ;;  %v1878_v23 = vld [vmem:[#allocation10 + $0x398] sm:$0xff] }
 0x2cb   : > { %4961 = vmatpush1.bf16.msk.msra.mxu1 %vm6942_vm5, %v4949_v16  ;;  %1680 = vmatprep.mubr.f32.mxu1 %v6454_v11  ;;  %v1829_v16 = vld [vmem:[#allocation10 + $0x210] sm:$0xff]  ;;  %v1882_v44 = vld [vmem:[#allocation10 + $0x3b8] sm:$0xff] }
 0x2cc   : > { %5283 = vmatprep.subr.bf16.mxu1 %v5282_v5  ;;  %v5316_v62 = vpack.c.bf16 %v1833_v59, %v1829_v16  ;;  %v1841_v5 = vld [vmem:[#allocation10 + $0x270] sm:$0xff]  ;;  %v5338_v46 = vpack.c.bf16 %v1882_v44, %v1878_v23  ;;  %v1886_v54 = vld [vmem:[#allocation10 + $0x3d8] sm:$0xff]  ;;  %v6974_v23 = vld [vmem:[#allocation10 + $0x480] sm:$0xff] }
 0x2cd   : > { %v5320_v8 = vpack.c.bf16 %v1841_v5, %v1837_v4  ;;  %v1890_v0 = vld [vmem:[#allocation10 + $0x3f8] sm:$0xff]  ;;  %v1885_v60 = vld [vmem:[#allocation10 + $0x3d0] sm:$0xff]  ;;  %v1896_v4 = vld [vmem:[#allocation10 + $0x428] sm:$0xff] }
 0x2ce   : > { %4356 = vmatmul.mubr.msk.f32.vlgmr.msra.gmra.mrb[12].mxu1 %vm1518_vm6, %v1608_v10  ;;  %v1845_v10 = vld [vmem:[#allocation10 + $0x290] sm:$0xff]  ;;  %v5342_v16 = vpack.c.bf16 %v1890_v0, %v1886_v54  ;;  %v1894_v5 = vld [vmem:[#allocation10 + $0x418] sm:$0xff] }
 0x2cf   : > { %1686 = vmatprep.mubr.f32.mxu1 %v6454_v11  ;;  %5285 = vmatpush1.bf16.msra.mxu1 %v5284_v12  ;;  %v1849_v12 = vld [vmem:[#allocation10 + $0x2b0] sm:$0xff]  ;;  %v1898_v7 = vld [vmem:[#allocation10 + $0x438] sm:$0xff] }
 0x2d0   : > { %5287 = vmatprep.subr.bf16.mxu1 %v5286_v13  ;;  %v1854_v13 = vld [vmem:[#allocation10 + $0x2d8] sm:$0xff]  ;;  %v5324_v17 = vpack.c.bf16 %v1849_v12, %v1845_v10  ;;  %v1889_v61 = vld [vmem:[#allocation10 + $0x3f0] sm:$0xff] }
 0x2d1   : > { %v5326_v18 = vpack.c.bf16 %v1858_v15, %v1854_v13  ;;  %v1905_v35 = vld [vmem:[#allocation10 + $0x470] sm:$0xff] }
 0x2d2   : > { %4357 = vmatmul.mubr.msk.f32.gmra.mrb[14].mxu1 %vm1518_vm6, %v1609_v21  ;;  %v1857_v21 = vld [vmem:[#allocation10 + $0x2f0] sm:$0xff] }
 0x2d3   : > { %5289 = vmatpush1.bf16.msra.mxu1 %v5288_v14  ;;  %v1862_v14 = vld [vmem:[#allocation10 + $0x318] sm:$0xff]  ;;  %v5328_v25 = vpack.c.bf16 %v1857_v21, %v1853_v20  ;;  %v1893_v20 = vld [vmem:[#allocation10 + $0x410] sm:$0xff] }
 0x2d4   : > { %5291 = vmatprep.subr.bf16.mxu1 %v5290_v22  ;;  %v1866_v22 = vld [vmem:[#allocation10 + $0x338] sm:$0xff]  ;;  %v1897_v21 = vld [vmem:[#allocation10 + $0x430] sm:$0xff] }
 0x2d5   : > { %v5330_v26 = vpack.c.bf16 %v1866_v22, %v1862_v14  ;;  %v1900_v22 = vld [vmem:[#allocation10 + $0x448] sm:$0xff]  ;;  %v6978_v44 = vld [vmem:[#allocation10 + $0x490] sm:$0xff] }
 0x2d7   : > { %5293 = vmatpush1.bf16.msra.mxu1 %v5292_v29  ;;  %v5332_v29 = vpack.c.bf16 %v1865_v28, %v1861_v27 }
 0x2d8   : > { %5295 = vmatprep.subr.bf16.mxu1 %v5294_v32  ;;  %v1868_v32 = vld [vmem:[#allocation10 + $0x348] sm:$0xff] }
 0x2d9   : > { %v5014_v56 = vpack.c.bf16 %v1872_v33, %v1868_v32  ;;  %v1899_v32 = vld [vmem:[#allocation10 + $0x440] sm:$0xff] }
 0x2da   : > { %v1903_v33 = vld [vmem:[#allocation10 + $0x460] sm:$0xff] }
 0x2db   : > { %5297 = vmatpush1.bf16.msra.mxu1 %v5296_v36  ;;  %v1867_v36 = vld [vmem:[#allocation10 + $0x340] sm:$0xff]  ;;  %5015 = vmatprep.subr.bf16.mxu0 %v5014_v56  ;;  %v1901_v56 = vld [vmem:[#allocation10 + $0x450] sm:$0xff] }
 0x2dc   : > { %5299 = vmatprep.subr.bf16.mxu1 %v5298_v37  ;;  %v1871_v37 = vld [vmem:[#allocation10 + $0x360] sm:$0xff]  ;;  %v5352_v0 = vpack.c.bf16 %v1905_v35, %v1901_v56  ;;  %v1924_v56 = vld [vmem:[#allocation10 + $0x508] sm:$0xff] }
 0x2dd   : > { %v5016_v38 = vpack.c.bf16 %v1871_v37, %v1867_v36  ;;  %v6966_v36 = vld [vmem:[#allocation10 + $0x488] sm:$0xff] }
 0x2df   : > { %5301 = vmatpush1.bf16.msra.mxu1 %v5300_v41  ;;  %v5336_v41 = vpack.c.bf16 %v1873_v40, %v1869_v19  ;;  %5017 = vmatpush1.bf16.msra.mxu0 %v5016_v38  ;;  %v6970_v38 = vld [vmem:[#allocation10 + $0x498] sm:$0xff] }
 0x2e0   : > { %5303 = vmatprep.subr.bf16.mxu1 %v5302_v24  ;;  %v1876_v24 = vld [vmem:[#allocation10 + $0x388] sm:$0xff]  ;;  %v6972_v19 = vld [vmem:[#allocation10 + $0x4b8] sm:$0xff] }
 0x2e1   : > { %v5018_v42 = vpack.c.bf16 %v1880_v30, %v1876_v24  ;;  %v5348_v30 = vpack.c.bf16 %v1897_v21, %v1893_v20 }
 0x2e3   : > { %5305 = vmatpush1.bf16.msra.mxu1 %v5304_v45  ;;  %v1875_v45 = vld [vmem:[#allocation10 + $0x380] sm:$0xff]  ;;  %5019 = vmatprep.subr.bf16.mxu0 %v5018_v42 }
 0x2e4   : > { %5307 = vmatprep.subr.bf16.mxu1 %v5306_v52  ;;  %v1879_v52 = vld [vmem:[#allocation10 + $0x3a0] sm:$0xff] }
 0x2e5   : > { %v5020_v47 = vpack.c.bf16 %v1879_v52, %v1875_v45  ;;  %v6976_v42 = vld [vmem:[#allocation10 + $0x4a0] sm:$0xff] }
 0x2e7   : > { %5309 = vmatpush1.bf16.msra.mxu1 %v5308_v31  ;;  %v5340_v31 = vpack.c.bf16 %v1881_v49, %v1877_v48  ;;  %5021 = vmatpush1.bf16.msra.mxu0 %v5020_v47  ;;  %v6983_v49 = vld [vmem:[#allocation10 + $0x4b0] sm:$0xff] }
 0x2e8   : > { %5311 = vmatprep.subr.bf16.mxu1 %v5310_v43  ;;  %v1884_v43 = vld [vmem:[#allocation10 + $0x3c8] sm:$0xff] }
 0x2e9   : > { %v5022_v63 = vpack.c.bf16 %v1888_v50, %v1884_v43  ;;  %v6987_v43 = vld [vmem:[#allocation10 + $0x4e8] sm:$0xff] }
 0x2eb   : > { %5313 = vmatpush1.bf16.msra.mxu1 %v5312_v1  ;;  %v1883_v1 = vld [vmem:[#allocation10 + $0x3c0] sm:$0xff]  ;;  %5023 = vmatprep.subr.bf16.mxu0 %v5022_v63  ;;  %v5032_v63 = vpack.c.bf16 %v1903_v33, %v1899_v32  ;;  %v1917_v33 = vld [vmem:[#allocation10 + $0x4d0] sm:$0xff] }
 0x2ec   : > { %5315 = vmatprep.subr.bf16.mxu1 %v5314_v2  ;;  %v1887_v2 = vld [vmem:[#allocation10 + $0x3e0] sm:$0xff] }
 0x2ed   : > { %v5024_v59 = vpack.c.bf16 %v1887_v2, %v1883_v1 }
 0x2ef   : > { %5317 = vmatpush1.bf16.msra.mxu1 %v5316_v62  ;;  %v5344_v62 = vpack.c.bf16 %v1889_v61, %v1885_v60  ;;  %5025 = vmatpush1.bf16.msra.mxu0 %v5024_v59  ;;  %v5036_v59 = vpack.c.bf16 %v6976_v42, %v6974_v23  ;;  %v5356_v61 = vpack.c.bf16 %v6983_v49, %v6978_v44  ;;  %v1923_v42 = vld [vmem:[#allocation10 + $0x500] sm:$0xff]  ;;  %v1929_v49 = vld [vmem:[#allocation10 + $0x530] sm:$0xff] }
 0x2f0   : > { %5319 = vmatprep.subr.bf16.mxu1 %v5318_v3  ;;  %v1892_v3 = vld [vmem:[#allocation10 + $0x408] sm:$0xff]  ;;  %v1927_v44 = vld [vmem:[#allocation10 + $0x520] sm:$0xff] }
 0x2f1   : > { %v5026_v6 = vpack.c.bf16 %v1896_v4, %v1892_v3 }
 0x2f3   : > { %5321 = vmatpush1.bf16.msra.mxu1 %v5320_v8  ;;  %v5346_v8 = vpack.c.bf16 %v1898_v7, %v1894_v5  ;;  %5027 = vmatprep.subr.bf16.mxu0 %v5026_v6 }
 0x2f4   : > { %5323 = vmatprep.subr.bf16.mxu1 %v5322_v9 }
 0x2f7   : > { %5325 = vmatpush1.bf16.msra.mxu1 %v5324_v17  ;;  %v1891_v17 = vld [vmem:[#allocation10 + $0x400] sm:$0xff] }
 0x2f8   : > { %5327 = vmatprep.subr.bf16.mxu1 %v5326_v18  ;;  %v1895_v18 = vld [vmem:[#allocation10 + $0x420] sm:$0xff] }
 0x2f9   : > { %v5028_v24 = vpack.c.bf16 %v1895_v18, %v1891_v17 }
 0x2fb   : > { %5329 = vmatpush1.bf16.msra.mxu1 %v5328_v25  ;;  %v1904_v25 = vld [vmem:[#allocation10 + $0x468] sm:$0xff] }
 0x2fc   : > { %5331 = vmatprep.subr.bf16.mxu1 %v5330_v26  ;;  %v1902_v26 = vld [vmem:[#allocation10 + $0x458] sm:$0xff]  ;;  %v5030_v47 = vpack.c.bf16 %v1904_v25, %v1900_v22  ;;  %v1919_v22 = vld [vmem:[#allocation10 + $0x4e0] sm:$0xff] }
 0x2ff   : > { %5333 = vmatpush1.bf16.msra.mxu1 %v5332_v29  ;;  %v1906_v29 = vld [vmem:[#allocation10 + $0x478] sm:$0xff] }
 0x300   : > { %5335 = vmatprep.subr.bf16.mxu1 %v5334_v39  ;;  %v6968_v39 = vld [vmem:[#allocation10 + $0x4a8] sm:$0xff]  ;;  %v5350_v48 = vpack.c.bf16 %v1906_v29, %v1902_v26 }
 0x301   : > { %v5034_v2 = vpack.c.bf16 %v6968_v39, %v6966_v36  ;;  %v1928_v36 = vld [vmem:[#allocation10 + $0x528] sm:$0xff]  ;;  %v1930_v39 = vld [vmem:[#allocation10 + $0x538] sm:$0xff] }
 0x303   : > { %5337 = vmatpush1.bf16.msra.mxu1 %v5336_v41 }
 0x304   : > { %5339 = vmatprep.subr.bf16.mxu1 %v5338_v46 }
 0x307   : > { %5341 = vmatpush1.bf16.msra.mxu1 %v5340_v31  ;;  %v6985_v31 = vld [vmem:[#allocation10 + $0x4c8] sm:$0xff] }
 0x308   : > { %5343 = vmatprep.subr.bf16.mxu1 %v5342_v16  ;;  %v5354_v16 = vpack.c.bf16 %v6972_v19, %v6970_v38 }
 0x30b   : > { %5345 = vmatpush1.bf16.msra.mxu1 %v5344_v62  ;;  %v5038_v62 = vpack.c.bf16 %v6987_v43, %v6985_v31  ;;  %v1932_v31 = vld [vmem:[#allocation10 + $0x548] sm:$0xff] }
 0x30c   : > { %5347 = vmatprep.subr.bf16.mxu1 %v5346_v8  ;;  %v1936_v43 = vld [vmem:[#allocation10 + $0x568] sm:$0xff] }
 0x399   : > { %v1597_v9 = vpop.f32.mrb[8].mxu1 }
 0x39a   : > { %v1599_v10 = vpop.f32.mrb[9].mxu1 }
 0x39d   : > { %v1603_v12 = vpop.f32.mrb[10].mxu1 }
 0x39e   : > { %v1605_v13 = vpop.f32.mrb[11].mxu1 }
 0x3a1   : > { %v1682_v14 = vpop.f32.mrb[12].mxu1 }
 0x3a2   : > { %v1693_v27 = vmax.f32 %v1597_v9, %v1682_v14  ;;  %v1684_v28 = vpop.f32.mrb[13].mxu1  ;;  %v1918_v9 = vld [vmem:[#allocation10 + $0x4d8] sm:$0xff]  ;;  %v1915_v14 = vld [vmem:[#allocation10 + $0x4c0] sm:$0xff] }
 0x3a3   : > { %v1694_v34 = vmax.f32 %v1599_v10, %v1684_v28  ;;  %v1922_v10 = vld [vmem:[#allocation10 + $0x4f8] sm:$0xff] }
 0x3a4   : > { %v1702_v37 = vrot.slane %v1693_v27, 6  ;;  %v5358_v32 = vpack.c.bf16 %v1922_v10, %v1918_v9  ;;  %v1939_v10 = vld [vmem:[#allocation10 + $0x580] sm:$0xff] }
 0x3a5   : > { %v1703_v40 = vrot.slane %v1694_v34, 6  ;;  %v1688_v41 = vpop.f32.mrb[14].mxu1  ;;  %v1921_v34 = vld [vmem:[#allocation10 + $0x4f0] sm:$0xff] }
 0x3a6   : > { %v6981_v45 = vsel %vm1701_vm7, 0.0, %v1702_v37  ;;  %v1695_v52 = vmax.f32 %v1603_v12, %v1688_v41  ;;  %v1690_v46 = vpop.f32.mrb[15].mxu1  ;;  %v5360_v23 = vpack.c.bf16 %v1921_v34, %v1917_v33  ;;  %v1952_v33 = vld [vmem:[#allocation10 + $0x5e8] sm:$0xff]  ;;  %v1950_v34 = vld [vmem:[#allocation10 + $0x5d8] sm:$0xff] }
 0x3a7   : > { %v6990_v50 = vsel %vm1701_vm7, 0.0, %v1703_v40  ;;  %v1696_v54 = vmax.f32 %v1605_v13, %v1690_v46  ;;  %4359 = vmatprep.mubr.msk.f32.mxu0 %vm6962_vm8, %v1703_v40  ;;  %4363 = vmatprep.mubr.msk.f32.mxu1 %vm6962_vm8, %v1703_v40  ;;  %v1716_v3 = vrot.slane %v6981_v45, 1  ;;  %v1726_v7 = vrot.slane %v6981_v45, 2 }
 0x3a8   : > { %v1704_v1 = vrot.slane %v1695_v52, 6  ;;  %4361 = vmatmul.mubr.msk.f32.vlgmr.msra.gmra.mrb[8].mxu0 %vm6962_vm8, %v1702_v37  ;;  %4365 = vmatmul.mubr.msk.f32.vlgmr.msra.gmra.mrb[16].mxu1 %vm6962_vm8, %v1702_v37  ;;  %v1719_v5 = vrot.slane %v6990_v50, 1  ;;  %v1729_v6 = vrot.slane %v6990_v50, 2  ;;  %v1740_v20 = vrot.slane %v6990_v50, 3 }
 0x3a9   : > { %v1706_v60 = vrot.slane %v1696_v54, 6  ;;  %5029 = vmatpush1.bf16.msra.mxu0 %v5028_v24  ;;  %5349 = vmatpush1.bf16.msra.mxu1 %v5348_v30  ;;  %v1737_v27 = vrot.slane %v6981_v45, 3  ;;  %v1750_v24 = vrot.slane %v6981_v45, 4  ;;  %v5040_v30 = vpack.c.bf16 %v1919_v22, %v1915_v14  ;;  %v1938_v54 = vld [vmem:[#allocation10 + $0x578] sm:$0xff] }
 0x3aa   : > { %v7012_v4 = vsel %vm1701_vm7, %v1702_v37, %v1704_v1  ;;  %5031 = vmatprep.subr.bf16.mxu0 %v5030_v47  ;;  %5351 = vmatprep.subr.bf16.mxu1 %v5350_v48  ;;  %v1926_v37 = vld [vmem:[#allocation10 + $0x518] sm:$0xff]  ;;  %v5042_v46 = vpack.c.bf16 %v1928_v36, %v1924_v56  ;;  %v1925_v48 = vld [vmem:[#allocation10 + $0x510] sm:$0xff]  ;;  %v1931_v1 = vld [vmem:[#allocation10 + $0x540] sm:$0xff] }
 0x3ab   : > { %v7018_v8 = vsel %vm1701_vm7, %v1703_v40, %v1706_v60  ;;  %v7021_v12 = vrot.slane %v7012_v4, 1  ;;  %v7024_v13 = vrot.slane %v7012_v4, 2  ;;  %v1738_v15 = vrot.slane %v7012_v4, 3  ;;  %v1933_v60 = vld [vmem:[#allocation10 + $0x550] sm:$0xff]  ;;  %v1954_v56 = vld [vmem:[#allocation10 + $0x5f8] sm:$0xff] }
 0x3ac   : > { %2495 = vmatprep.mubr.f32.mxu0 %v7018_v8  ;;  %2880 = vmatprep.mubr.f32.mxu1 %v7018_v8  ;;  %v7030_v17 = vrot.slane %v7018_v8, 1  ;;  %v7033_v18 = vrot.slane %v7018_v8, 2  ;;  %v1741_v21 = vrot.slane %v7018_v8, 3  ;;  %v1754_v28 = vrot.slane %v7018_v8, 4 }
 0x3ad   : > { %5033 = vmatpush1.bf16.msra.mxu0 %v5032_v63  ;;  %5353 = vmatpush1.bf16.msra.mxu1 %v5352_v0  ;;  %v7039_v25 = vsel %vm568_vm0, %v1716_v3, %v7021_v12  ;;  %v7043_v26 = vsel %vm580_vm1, %v1726_v7, %v7024_v13  ;;  %v7063_v19 = vsel %vm592_vm3, %v1737_v27, %v1738_v15  ;;  %v1753_v40 = vrot.slane %v6990_v50, 4  ;;  %v1934_v50 = vld [vmem:[#allocation10 + $0x558] sm:$0xff]  ;;  %v1944_v3 = vld [vmem:[#allocation10 + $0x5a8] sm:$0xff]  ;;  %v1941_v27 = vld [vmem:[#allocation10 + $0x590] sm:$0xff] }
 0x3ae   : > { %2496 = vmatmul.mubr.f32.gmra.mrb[10].mxu0 %v7012_v4  ;;  %2881 = vmatmul.mubr.f32.gmra.mrb[18].mxu1 %v7012_v4  ;;  %v1721_v29 = vsel %vm568_vm0, %v1719_v5, %v7030_v17  ;;  %v7053_v35 = vsel %vm580_vm1, %v1729_v6, %v7033_v18  ;;  %v7058_v38 = vsel %vm592_vm3, %v1740_v20, %v1741_v21  ;;  %v1751_v41 = vrot.slane %v7012_v4, 4  ;;  %v1942_v5 = vld [vmem:[#allocation10 + $0x598] sm:$0xff]  ;;  %v1943_v20 = vld [vmem:[#allocation10 + $0x5a0] sm:$0xff] }
 0x3af   : > { %5035 = vmatprep.subr.bf16.mxu0 %v5034_v2  ;;  %2566 = vmatprep.mubr.f32.mxu0 %v1721_v29  ;;  %v7071_v52 = vsel %vm604_vm2, %v1753_v40, %v1754_v28  ;;  %v5362_v47 = vpack.c.bf16 %v1930_v39, %v1926_v37  ;;  %v5044_v63 = vpack.c.bf16 %v1927_v44, %v1923_v42  ;;  %v1935_v2 = vld [vmem:[#allocation10 + $0x560] sm:$0xff]  ;;  %v1946_v6 = vld [vmem:[#allocation10 + $0x5b8] sm:$0xff]  ;;  %v1953_v42 = vld [vmem:[#allocation10 + $0x5f0] sm:$0xff] }
 0x3b0   : > { %5355 = vmatprep.subr.bf16.mxu1 %v5354_v16  ;;  %2951 = vmatprep.mubr.f32.mxu1 %v1721_v29  ;;  %v7076_v45 = vsel %vm604_vm2, %v1750_v24, %v1751_v41  ;;  %v5364_v0 = vpack.c.bf16 %v1929_v49, %v1925_v48  ;;  %v5046_v16 = vpack.c.bf16 %v1936_v43, %v1932_v31  ;;  %v1945_v29 = vld [vmem:[#allocation10 + $0x5b0] sm:$0xff]  ;;  %v1947_v39 = vld [vmem:[#allocation10 + $0x5c0] sm:$0xff]  ;;  %v1956_v44 = vld [vmem:[#allocation10 + $0x608] sm:$0xff] }
 0x3b1   : > { %5037 = vmatpush1.bf16.msra.mxu0 %v5036_v59  ;;  %5357 = vmatpush1.bf16.msra.mxu1 %v5356_v61  ;;  %v5366_v59 = vpack.c.bf16 %v1938_v54, %v1934_v50  ;;  %v1937_v61 = vld [vmem:[#allocation10 + $0x570] sm:$0xff]  ;;  %v5048_v7 = vpack.c.bf16 %v1935_v2, %v1931_v1  ;;  %v5370_v22 = vpack.c.bf16 %v1946_v6, %v1942_v5  ;;  %v1951_v40 = vld [vmem:[#allocation10 + $0x5e0] sm:$0xff]  ;;  %v1962_v48 = vld [vmem:[#allocation10 + $0x638] sm:$0xff] }
 0x3b2   : > { %5039 = vmatprep.subr.bf16.mxu0 %v5038_v62  ;;  %5359 = vmatprep.subr.bf16.mxu1 %v5358_v32  ;;  %v1940_v62 = vld [vmem:[#allocation10 + $0x588] sm:$0xff]  ;;  %v5368_v9 = vpack.c.bf16 %v1937_v61, %v1933_v60  ;;  %v5052_v36 = vpack.c.bf16 %v1943_v20, %v1939_v10  ;;  %v5372_v37 = vpack.c.bf16 %v1945_v29, %v1941_v27  ;;  %v1955_v43 = vld [vmem:[#allocation10 + $0x600] sm:$0xff]  ;;  %v1961_v1 = vld [vmem:[#allocation10 + $0x630] sm:$0xff] }
 0x3b3   : > { %v5050_v14 = vpack.c.bf16 %v1944_v3, %v1940_v62  ;;  %v1948_v32 = vld [vmem:[#allocation10 + $0x5c8] sm:$0xff]  ;;  %v5056_v49 = vpack.c.bf16 %v1951_v40, %v1947_v39  ;;  %v1959_v50 = vld [vmem:[#allocation10 + $0x620] sm:$0xff]  ;;  %v1970_v60 = vld [vmem:[#allocation10 + $0x678] sm:$0xff] }
 0x3b4   : > { %v5054_v24 = vpack.c.bf16 %v1952_v33, %v1948_v32  ;;  %v1964_v2 = vld [vmem:[#allocation10 + $0x648] sm:$0xff]  ;;  %v5060_v61 = vpack.c.bf16 %v1959_v50, %v1955_v43  ;;  %v1963_v3 = vld [vmem:[#allocation10 + $0x640] sm:$0xff]  ;;  %v1969_v10 = vld [vmem:[#allocation10 + $0x670] sm:$0xff] }
 0x3b5   : > { %5041 = vmatpush1.bf16.msra.mxu0 %v5040_v30  ;;  %5361 = vmatpush1.bf16.msra.mxu1 %v5360_v23  ;;  %v5374_v30 = vpack.c.bf16 %v1954_v56, %v1950_v34  ;;  %v1949_v23 = vld [vmem:[#allocation10 + $0x5d0] sm:$0xff]  ;;  %v1967_v5 = vld [vmem:[#allocation10 + $0x660] sm:$0xff]  ;;  %v1972_v20 = vld [vmem:[#allocation10 + $0x688] sm:$0xff] }
 0x3b6   : > { %5043 = vmatprep.subr.bf16.mxu0 %v5042_v46  ;;  %5363 = vmatprep.subr.bf16.mxu1 %v5362_v47  ;;  %v1960_v46 = vld [vmem:[#allocation10 + $0x628] sm:$0xff]  ;;  %v1958_v47 = vld [vmem:[#allocation10 + $0x618] sm:$0xff]  ;;  %v5376_v31 = vpack.c.bf16 %v1953_v42, %v1949_v23  ;;  %v5064_v29 = vpack.c.bf16 %v1967_v5, %v1963_v3  ;;  %v1971_v33 = vld [vmem:[#allocation10 + $0x680] sm:$0xff] }
 0x3b7   : > { %v5058_v54 = vpack.c.bf16 %v1960_v46, %v1956_v44  ;;  %v1978_v27 = vld [vmem:[#allocation10 + $0x6b8] sm:$0xff]  ;;  %v1975_v34 = vld [vmem:[#allocation10 + $0x6a0] sm:$0xff]  ;;  %v1977_v39 = vld [vmem:[#allocation10 + $0x6b0] sm:$0xff] }
 0x3b8   : > { %v1980_v40 = vld [vmem:[#allocation10 + $0x6c8] sm:$0xff]  ;;  %v1986_v23 = vld [vmem:[#allocation10 + $0x6f8] sm:$0xff]  ;;  %v5068_v42 = vpack.c.bf16 %v1975_v34, %v1971_v33  ;;  %v1979_v46 = vld [vmem:[#allocation10 + $0x6c0] sm:$0xff] }
 0x3b9   : > { %5045 = vmatpush1.bf16.msra.mxu0 %v5044_v63  ;;  %5365 = vmatpush1.bf16.msra.mxu1 %v5364_v0  ;;  %v5378_v63 = vpack.c.bf16 %v1962_v48, %v1958_v47  ;;  %v1957_v0 = vld [vmem:[#allocation10 + $0x610] sm:$0xff]  ;;  %v1983_v47 = vld [vmem:[#allocation10 + $0x6e0] sm:$0xff]  ;;  %v1988_v50 = vld [vmem:[#allocation10 + $0x708] sm:$0xff] }
 0x3ba   : > { %5047 = vmatprep.subr.bf16.mxu0 %v5046_v16  ;;  %5367 = vmatprep.subr.bf16.mxu1 %v5366_v59  ;;  %v1968_v16 = vld [vmem:[#allocation10 + $0x668] sm:$0xff]  ;;  %v1966_v59 = vld [vmem:[#allocation10 + $0x658] sm:$0xff]  ;;  %v5380_v62 = vpack.c.bf16 %v1961_v1, %v1957_v0  ;;  %v1985_v43 = vld [vmem:[#allocation10 + $0x6f0] sm:$0xff]  ;;  %v5072_v1 = vpack.c.bf16 %v1983_v47, %v1979_v46 }
 0x3bb   : > { %v5062_v6 = vpack.c.bf16 %v1968_v16, %v1964_v2  ;;  %v1994_v0 = vld [vmem:[#allocation10 + $0x738] sm:$0xff]  ;;  %v1987_v16 = vld [vmem:[#allocation10 + $0x700] sm:$0xff]  ;;  %v1993_v3 = vld [vmem:[#allocation10 + $0x730] sm:$0xff] }
 0x3bc   : > { %v1996_v5 = vld [vmem:[#allocation10 + $0x748] sm:$0xff]  ;;  %v2001_v33 = vld [vmem:[#allocation10 + $0x770] sm:$0xff] }
 0x3bd   : > { %5049 = vmatpush1.bf16.msra.mxu0 %v5048_v7  ;;  %5369 = vmatpush1.bf16.msra.mxu1 %v5368_v9  ;;  %v5382_v7 = vpack.c.bf16 %v1970_v60, %v1966_v59  ;;  %v1965_v9 = vld [vmem:[#allocation10 + $0x650] sm:$0xff]  ;;  %v1991_v59 = vld [vmem:[#allocation10 + $0x720] sm:$0xff]  ;;  %v2004_v34 = vld [vmem:[#allocation10 + $0x788] sm:$0xff] }
 0x3be   : > { %5051 = vmatprep.subr.bf16.mxu0 %v5050_v14  ;;  %5371 = vmatprep.subr.bf16.mxu1 %v5370_v22  ;;  %v1976_v14 = vld [vmem:[#allocation10 + $0x6a8] sm:$0xff]  ;;  %v1974_v22 = vld [vmem:[#allocation10 + $0x698] sm:$0xff]  ;;  %v5384_v32 = vpack.c.bf16 %v1969_v10, %v1965_v9  ;;  %v5076_v10 = vpack.c.bf16 %v1991_v59, %v1987_v16  ;;  %v2009_v46 = vld [vmem:[#allocation10 + $0x7b0] sm:$0xff] }
 0x3bf   : > { %v5066_v56 = vpack.c.bf16 %v1976_v14, %v1972_v20  ;;  %v2002_v9 = vld [vmem:[#allocation10 + $0x778] sm:$0xff]  ;;  %v1995_v14 = vld [vmem:[#allocation10 + $0x740] sm:$0xff]  ;;  %v2012_v47 = vld [vmem:[#allocation10 + $0x7c8] sm:$0xff] }
 0x3c0   : > { %v2017_v16 = vld [vmem:[#allocation10 + $0x7f0] sm:$0xff]  ;;  %v2020_v59 = vld [vmem:[#allocation10 + $0x808] sm:$0xff] }
 0x3c1   : > { %5053 = vmatpush1.bf16.msra.mxu0 %v5052_v36  ;;  %5373 = vmatpush1.bf16.msra.mxu1 %v5372_v37  ;;  %v5386_v36 = vpack.c.bf16 %v1978_v27, %v1974_v22  ;;  %v1973_v37 = vld [vmem:[#allocation10 + $0x690] sm:$0xff]  ;;  %v1999_v22 = vld [vmem:[#allocation10 + $0x760] sm:$0xff] }
 0x3c2   : > { %5055 = vmatprep.subr.bf16.mxu0 %v5054_v24  ;;  %5375 = vmatprep.subr.bf16.mxu1 %v5374_v30  ;;  %v1984_v24 = vld [vmem:[#allocation10 + $0x6e8] sm:$0xff]  ;;  %v1982_v30 = vld [vmem:[#allocation10 + $0x6d8] sm:$0xff]  ;;  %v5388_v44 = vpack.c.bf16 %v1977_v39, %v1973_v37  ;;  %v5080_v39 = vpack.c.bf16 %v1999_v22, %v1995_v14  ;;  %v2025_v14 = vld [vmem:[#allocation10 + $0x830] sm:$0xff] }
 0x3c3   : > { %v5070_v48 = vpack.c.bf16 %v1984_v24, %v1980_v40  ;;  %v2010_v37 = vld [vmem:[#allocation10 + $0x7b8] sm:$0xff]  ;;  %v2003_v24 = vld [vmem:[#allocation10 + $0x780] sm:$0xff]  ;;  %v2028_v22 = vld [vmem:[#allocation10 + $0x848] sm:$0xff] }
 0x3c5   : > { %5057 = vmatpush1.bf16.msra.mxu0 %v5056_v49  ;;  %5377 = vmatpush1.bf16.msra.mxu1 %v5376_v31  ;;  %v5390_v49 = vpack.c.bf16 %v1986_v23, %v1982_v30  ;;  %v1981_v31 = vld [vmem:[#allocation10 + $0x6d0] sm:$0xff]  ;;  %v2007_v30 = vld [vmem:[#allocation10 + $0x7a0] sm:$0xff] }
 0x3c6   : > { %5059 = vmatprep.subr.bf16.mxu0 %v5058_v54  ;;  %5379 = vmatprep.subr.bf16.mxu1 %v5378_v63  ;;  %v1992_v54 = vld [vmem:[#allocation10 + $0x728] sm:$0xff]  ;;  %v1990_v63 = vld [vmem:[#allocation10 + $0x718] sm:$0xff]  ;;  %v5392_v2 = vpack.c.bf16 %v1985_v43, %v1981_v31  ;;  %v5084_v43 = vpack.c.bf16 %v2007_v30, %v2003_v24  ;;  %v2033_v24 = vld [vmem:[#allocation10 + $0x870] sm:$0xff] }
 0x3c7   : > { %v5074_v60 = vpack.c.bf16 %v1992_v54, %v1988_v50  ;;  %v2018_v31 = vld [vmem:[#allocation10 + $0x7f8] sm:$0xff]  ;;  %v2011_v54 = vld [vmem:[#allocation10 + $0x7c0] sm:$0xff]  ;;  %v2036_v30 = vld [vmem:[#allocation10 + $0x888] sm:$0xff] }
 0x3c9   : > { %5061 = vmatpush1.bf16.msra.mxu0 %v5060_v61  ;;  %5381 = vmatpush1.bf16.msra.mxu1 %v5380_v62  ;;  %v5394_v61 = vpack.c.bf16 %v1994_v0, %v1990_v63  ;;  %v1989_v62 = vld [vmem:[#allocation10 + $0x710] sm:$0xff]  ;;  %v2015_v63 = vld [vmem:[#allocation10 + $0x7e0] sm:$0xff] }
 0x3ca   : > { %5063 = vmatprep.subr.bf16.mxu0 %v5062_v6  ;;  %5383 = vmatprep.subr.bf16.mxu1 %v5382_v7  ;;  %v2000_v6 = vld [vmem:[#allocation10 + $0x768] sm:$0xff]  ;;  %v1998_v7 = vld [vmem:[#allocation10 + $0x758] sm:$0xff]  ;;  %v5396_v20 = vpack.c.bf16 %v1993_v3, %v1989_v62  ;;  %v5088_v3 = vpack.c.bf16 %v2015_v63, %v2011_v54  ;;  %v2041_v54 = vld [vmem:[#allocation10 + $0x8b0] sm:$0xff] }
 0x3cb   : > { %v5078_v27 = vpack.c.bf16 %v2000_v6, %v1996_v5  ;;  %v2026_v62 = vld [vmem:[#allocation10 + $0x838] sm:$0xff]  ;;  %v2048_v63 = vld [vmem:[#allocation10 + $0x8e8] sm:$0xff] }
 0x3cd   : > { %5065 = vmatpush1.bf16.msra.mxu0 %v5064_v29  ;;  %5385 = vmatpush1.bf16.msra.mxu1 %v5384_v32  ;;  %v5398_v29 = vpack.c.bf16 %v2002_v9, %v1998_v7  ;;  %v1997_v32 = vld [vmem:[#allocation10 + $0x750] sm:$0xff]  ;;  %v2019_v9 = vld [vmem:[#allocation10 + $0x800] sm:$0xff] }
 0x3ce   : > { %5067 = vmatprep.subr.bf16.mxu0 %v5066_v56  ;;  %5387 = vmatprep.subr.bf16.mxu1 %v5386_v36  ;;  %v2008_v56 = vld [vmem:[#allocation10 + $0x7a8] sm:$0xff]  ;;  %v2006_v36 = vld [vmem:[#allocation10 + $0x798] sm:$0xff]  ;;  %v5400_v40 = vpack.c.bf16 %v2001_v33, %v1997_v32 }
 0x3cf   : > { %v5082_v23 = vpack.c.bf16 %v2008_v56, %v2004_v34  ;;  %v2034_v32 = vld [vmem:[#allocation10 + $0x878] sm:$0xff]  ;;  %v2027_v56 = vld [vmem:[#allocation10 + $0x840] sm:$0xff] }
 0x3d1   : > { %5069 = vmatpush1.bf16.msra.mxu0 %v5068_v42  ;;  %5389 = vmatpush1.bf16.msra.mxu1 %v5388_v44  ;;  %v5402_v42 = vpack.c.bf16 %v2010_v37, %v2006_v36  ;;  %v2005_v44 = vld [vmem:[#allocation10 + $0x790] sm:$0xff]  ;;  %v2031_v36 = vld [vmem:[#allocation10 + $0x860] sm:$0xff] }
 0x3d2   : > { %5071 = vmatprep.subr.bf16.mxu0 %v5070_v48  ;;  %5391 = vmatprep.subr.bf16.mxu1 %v5390_v49  ;;  %v2016_v48 = vld [vmem:[#allocation10 + $0x7e8] sm:$0xff]  ;;  %v2014_v49 = vld [vmem:[#allocation10 + $0x7d8] sm:$0xff]  ;;  %v5404_v50 = vpack.c.bf16 %v2009_v46, %v2005_v44  ;;  %v5096_v46 = vpack.c.bf16 %v2031_v36, %v2027_v56 }
 0x3d3   : > { %v5086_v0 = vpack.c.bf16 %v2016_v48, %v2012_v47  ;;  %v2042_v44 = vld [vmem:[#allocation10 + $0x8b8] sm:$0xff]  ;;  %v2035_v48 = vld [vmem:[#allocation10 + $0x880] sm:$0xff] }
 0x3d4   : > { %v2066_v56 = vld [vmem:[#allocation10 + $0x978] sm:$0xff] }
 0x3d5   : > { %5073 = vmatpush1.bf16.msra.mxu0 %v5072_v1  ;;  %5393 = vmatpush1.bf16.msra.mxu1 %v5392_v2  ;;  %v5406_v1 = vpack.c.bf16 %v2018_v31, %v2014_v49  ;;  %v2013_v2 = vld [vmem:[#allocation10 + $0x7d0] sm:$0xff]  ;;  %v2039_v49 = vld [vmem:[#allocation10 + $0x8a0] sm:$0xff] }
 0x3d6   : > { %5075 = vmatprep.subr.bf16.mxu0 %v5074_v60  ;;  %5395 = vmatprep.subr.bf16.mxu1 %v5394_v61  ;;  %v2024_v60 = vld [vmem:[#allocation10 + $0x828] sm:$0xff]  ;;  %v2022_v61 = vld [vmem:[#allocation10 + $0x818] sm:$0xff]  ;;  %v5408_v5 = vpack.c.bf16 %v2017_v16, %v2013_v2  ;;  %v2037_v31 = vld [vmem:[#allocation10 + $0x890] sm:$0xff] }
 0x3d7   : > { %v5090_v6 = vpack.c.bf16 %v2024_v60, %v2020_v59  ;;  %v5410_v7 = vpack.c.bf16 %v2026_v62, %v2022_v61  ;;  %v5420_v2 = vpack.c.bf16 %v2041_v54, %v2037_v31  ;;  %v2043_v59 = vld [vmem:[#allocation10 + $0x8c0] sm:$0xff]  ;;  %v2045_v61 = vld [vmem:[#allocation10 + $0x8d0] sm:$0xff] }
 0x3d8   : > { %v2047_v60 = vld [vmem:[#allocation10 + $0x8e0] sm:$0xff] }
 0x3d9   : > { %5077 = vmatpush1.bf16.msra.mxu0 %v5076_v10  ;;  %5397 = vmatpush1.bf16.msra.mxu1 %v5396_v20  ;;  %v2023_v10 = vld [vmem:[#allocation10 + $0x820] sm:$0xff]  ;;  %v2021_v20 = vld [vmem:[#allocation10 + $0x810] sm:$0xff] }
 0x3da   : > { %5079 = vmatprep.subr.bf16.mxu0 %v5078_v27  ;;  %5399 = vmatprep.subr.bf16.mxu1 %v5398_v29  ;;  %v2032_v27 = vld [vmem:[#allocation10 + $0x868] sm:$0xff]  ;;  %v2030_v29 = vld [vmem:[#allocation10 + $0x858] sm:$0xff]  ;;  %v5092_v33 = vpack.c.bf16 %v2023_v10, %v2019_v9  ;;  %v5412_v34 = vpack.c.bf16 %v2025_v14, %v2021_v20  ;;  %v5104_v9 = vpack.c.bf16 %v2047_v60, %v2043_v59  ;;  %v2055_v14 = vld [vmem:[#allocation10 + $0x920] sm:$0xff] }
 0x3db   : > { %v5094_v37 = vpack.c.bf16 %v2032_v27, %v2028_v22  ;;  %v2053_v22 = vld [vmem:[#allocation10 + $0x910] sm:$0xff]  ;;  %v2071_v54 = vld [vmem:[#allocation10 + $0x9a0] sm:$0xff] }
 0x3dd   : > { %5081 = vmatpush1.bf16.msra.mxu0 %v5080_v39  ;;  %5401 = vmatpush1.bf16.msra.mxu1 %v5400_v40  ;;  %v5414_v39 = vpack.c.bf16 %v2034_v32, %v2030_v29  ;;  %v2029_v40 = vld [vmem:[#allocation10 + $0x850] sm:$0xff]  ;;  %v2060_v32 = vld [vmem:[#allocation10 + $0x948] sm:$0xff] }
 0x3de   : > { %5083 = vmatprep.subr.bf16.mxu0 %v5082_v23  ;;  %5403 = vmatprep.subr.bf16.mxu1 %v5402_v42  ;;  %v2040_v23 = vld [vmem:[#allocation10 + $0x8a8] sm:$0xff]  ;;  %v2038_v42 = vld [vmem:[#allocation10 + $0x898] sm:$0xff]  ;;  %v5416_v47 = vpack.c.bf16 %v2033_v24, %v2029_v40  ;;  %v2057_v29 = vld [vmem:[#allocation10 + $0x930] sm:$0xff] }
 0x3df   : > { %v2059_v40 = vld [vmem:[#allocation10 + $0x940] sm:$0xff] }
 0x3e0   : > { %v2063_v24 = vld [vmem:[#allocation10 + $0x960] sm:$0xff] }
 0x3e1   : > { %5085 = vmatpush1.bf16.msra.mxu0 %v5084_v43  ;;  %5405 = vmatpush1.bf16.msra.mxu1 %v5404_v50  ;;  %v5098_v43 = vpack.c.bf16 %v2040_v23, %v2036_v30  ;;  %v5418_v50 = vpack.c.bf16 %v2042_v44, %v2038_v42  ;;  %v2061_v30 = vld [vmem:[#allocation10 + $0x950] sm:$0xff]  ;;  %v2068_v44 = vld [vmem:[#allocation10 + $0x988] sm:$0xff] }
 0x3e2   : > { %5087 = vmatprep.subr.bf16.mxu0 %v5086_v0  ;;  %5407 = vmatprep.subr.bf16.mxu1 %v5406_v1  ;;  %v2046_v0 = vld [vmem:[#allocation10 + $0x8d8] sm:$0xff]  ;;  %v2065_v42 = vld [vmem:[#allocation10 + $0x970] sm:$0xff] }
 0x3e3   : > { %v2050_v1 = vld [vmem:[#allocation10 + $0x8f8] sm:$0xff]  ;;  %v5432_v31 = vpack.c.bf16 %v2065_v42, %v2061_v30  ;;  %v2095_v42 = vld [vmem:[#allocation10 + $0xa60] sm:$0xff] }
 0x3e4   : > { %v5422_v62 = vpack.c.bf16 %v2050_v1, %v2046_v0  ;;  %v2073_v0 = vld [vmem:[#allocation10 + $0x9b0] sm:$0xff]  ;;  %v2076_v1 = vld [vmem:[#allocation10 + $0x9c8] sm:$0xff] }
 0x3e5   : > { %5089 = vmatpush1.bf16.msra.mxu0 %v5088_v3  ;;  %5409 = vmatpush1.bf16.msra.mxu1 %v5408_v5  ;;  %v2049_v3 = vld [vmem:[#allocation10 + $0x8f0] sm:$0xff]  ;;  %v2052_v5 = vld [vmem:[#allocation10 + $0x908] sm:$0xff] }
 0x3e6   : > { %5091 = vmatprep.subr.bf16.mxu0 %v5090_v6  ;;  %5411 = vmatprep.subr.bf16.mxu1 %v5410_v7  ;;  %v2054_v6 = vld [vmem:[#allocation10 + $0x918] sm:$0xff]  ;;  %v5424_v10 = vpack.c.bf16 %v2049_v3, %v2045_v61  ;;  %v2079_v3 = vld [vmem:[#allocation10 + $0x9e0] sm:$0xff] }
 0x3e7   : > { %v2058_v7 = vld [vmem:[#allocation10 + $0x938] sm:$0xff] }
 0x3e8   : > { %2567 = vmatmul.mubr.f32.vlgmr.msra.gmra.mrb[8].mxu0 %v7039_v25  ;;  %2952 = vmatmul.mubr.f32.vlgmr.msra.gmra.mrb[16].mxu1 %v7039_v25  ;;  %v2044_v25 = vld [vmem:[#allocation10 + $0x8c8] sm:$0xff]  ;;  %v5426_v27 = vpack.c.bf16 %v2058_v7, %v2054_v6  ;;  %v2081_v6 = vld [vmem:[#allocation10 + $0x9f0] sm:$0xff] }
 0x3e9   : > { %2572 = vmatprep.mubr.f32.mxu0 %v7030_v17  ;;  %5093 = vmatpush1.bf16.msra.mxu0 %v5092_v33  ;;  %v5102_v16 = vpack.c.bf16 %v2048_v63, %v2044_v25  ;;  %v2064_v33 = vld [vmem:[#allocation10 + $0x968] sm:$0xff]  ;;  %v2069_v25 = vld [vmem:[#allocation10 + $0x990] sm:$0xff] }
 0x3ea   : > { %2957 = vmatprep.mubr.f32.mxu1 %v7030_v17  ;;  %5413 = vmatpush1.bf16.msra.mxu1 %v5412_v34  ;;  %v5100_v17 = vpack.c.bf16 %v2039_v49, %v2035_v48  ;;  %v2062_v34 = vld [vmem:[#allocation10 + $0x958] sm:$0xff]  ;;  %v5112_v49 = vpack.c.bf16 %v2063_v24, %v2059_v40  ;;  %v5436_v60 = vpack.c.bf16 %v2073_v0, %v2069_v25  ;;  %v2084_v7 = vld [vmem:[#allocation10 + $0xa08] sm:$0xff]  ;;  %v2103_v0 = vld [vmem:[#allocation10 + $0xaa0] sm:$0xff] }
 0x3eb   : > { %5095 = vmatprep.subr.bf16.mxu0 %v5094_v37  ;;  %5415 = vmatprep.subr.bf16.mxu1 %v5414_v39  ;;  %v5428_v37 = vpack.c.bf16 %v2057_v29, %v2053_v22  ;;  %v5110_v39 = vpack.c.bf16 %v2064_v33, %v2060_v32  ;;  %v5430_v23 = vpack.c.bf16 %v2066_v56, %v2062_v34  ;;  %v2074_v48 = vld [vmem:[#allocation10 + $0x9b8] sm:$0xff]  ;;  %v2087_v29 = vld [vmem:[#allocation10 + $0xa20] sm:$0xff]  ;;  %v2085_v32 = vld [vmem:[#allocation10 + $0xa10] sm:$0xff] }
 0x3ec   : > { %2573 = vmatmul.mubr.f32.gmra.mrb[10].mxu0 %v7021_v12  ;;  %2958 = vmatmul.mubr.f32.gmra.mrb[18].mxu1 %v7021_v12  ;;  %v2056_v12 = vld [vmem:[#allocation10 + $0x928] sm:$0xff]  ;;  %v2089_v34 = vld [vmem:[#allocation10 + $0xa30] sm:$0xff] }
 0x3ed   : > { %5097 = vmatpush1.bf16.msra.mxu0 %v5096_v46  ;;  %2643 = vmatprep.mubr.f32.mxu0 %v7053_v35  ;;  %v5106_v20 = vpack.c.bf16 %v2056_v12, %v2052_v5  ;;  %v2072_v46 = vld [vmem:[#allocation10 + $0x9a8] sm:$0xff]  ;;  %v2077_v5 = vld [vmem:[#allocation10 + $0x9d0] sm:$0xff]  ;;  %v5444_v24 = vpack.c.bf16 %v2089_v34, %v2085_v32  ;;  %v2119_v34 = vld [vmem:[#allocation10 + $0xb20] sm:$0xff] }
 0x3ee   : > { %5417 = vmatpush1.bf16.msra.mxu1 %v5416_v47  ;;  %3028 = vmatprep.mubr.f32.mxu1 %v7053_v35  ;;  %v2051_v35 = vld [vmem:[#allocation10 + $0x900] sm:$0xff]  ;;  %v2070_v47 = vld [vmem:[#allocation10 + $0x998] sm:$0xff]  ;;  %v2092_v56 = vld [vmem:[#allocation10 + $0xa48] sm:$0xff] }
 0x3ef   : > { %5099 = vmatprep.subr.bf16.mxu0 %v5098_v43  ;;  %5419 = vmatprep.subr.bf16.mxu1 %v5418_v50  ;;  %v5108_v36 = vpack.c.bf16 %v2055_v14, %v2051_v35  ;;  %v5114_v43 = vpack.c.bf16 %v2072_v46, %v2068_v44  ;;  %v2067_v50 = vld [vmem:[#allocation10 + $0x980] sm:$0xff]  ;;  %v5434_v63 = vpack.c.bf16 %v2074_v48, %v2070_v47  ;;  %v2093_v44 = vld [vmem:[#allocation10 + $0xa50] sm:$0xff]  ;;  %v2100_v48 = vld [vmem:[#allocation10 + $0xa88] sm:$0xff] }
 0x3f0   : > { %v5116_v59 = vpack.c.bf16 %v2071_v54, %v2067_v50  ;;  %v5440_v14 = vpack.c.bf16 %v2081_v6, %v2077_v5  ;;  %v2097_v47 = vld [vmem:[#allocation10 + $0xa70] sm:$0xff]  ;;  %v2111_v6 = vld [vmem:[#allocation10 + $0xae0] sm:$0xff] }
 0x3f1   : > { %5101 = vmatpush1.bf16.msra.mxu0 %v5100_v17  ;;  %v2080_v17 = vld [vmem:[#allocation10 + $0x9e8] sm:$0xff]  ;;  %v5448_v54 = vpack.c.bf16 %v2097_v47, %v2093_v44  ;;  %v2127_v47 = vld [vmem:[#allocation10 + $0xb60] sm:$0xff] }
 0x3f2   : > { %5421 = vmatpush1.bf16.msra.mxu1 %v5420_v2  ;;  %5103 = vmatprep.subr.bf16.mxu0 %v5102_v16  ;;  %v2078_v2 = vld [vmem:[#allocation10 + $0x9d8] sm:$0xff]  ;;  %v5118_v61 = vpack.c.bf16 %v2080_v17, %v2076_v1  ;;  %v2101_v1 = vld [vmem:[#allocation10 + $0xa90] sm:$0xff] }
 0x3f3   : > { %5423 = vmatprep.subr.bf16.mxu1 %v5422_v62  ;;  %v2082_v16 = vld [vmem:[#allocation10 + $0x9f8] sm:$0xff]  ;;  %v2075_v62 = vld [vmem:[#allocation10 + $0x9c0] sm:$0xff] }
 0x3f4   : > { %v5438_v12 = vpack.c.bf16 %v2082_v16, %v2078_v2  ;;  %v5120_v35 = vpack.c.bf16 %v2079_v3, %v2075_v62  ;;  %v2105_v2 = vld [vmem:[#allocation10 + $0xab0] sm:$0xff]  ;;  %v2108_v16 = vld [vmem:[#allocation10 + $0xac8] sm:$0xff] }
 0x3f5   : > { %5105 = vmatpush1.bf16.msra.mxu0 %v5104_v9  ;;  %v2088_v9 = vld [vmem:[#allocation10 + $0xa28] sm:$0xff]  ;;  %v5452_v3 = vpack.c.bf16 %v2105_v2, %v2101_v1  ;;  %v2135_v2 = vld [vmem:[#allocation10 + $0xba0] sm:$0xff] }
 0x3f6   : > { %5425 = vmatpush1.bf16.msra.mxu1 %v5424_v10  ;;  %5107 = vmatprep.subr.bf16.mxu0 %v5106_v20  ;;  %v2086_v10 = vld [vmem:[#allocation10 + $0xa18] sm:$0xff]  ;;  %v5122_v22 = vpack.c.bf16 %v2088_v9, %v2084_v7  ;;  %v2109_v7 = vld [vmem:[#allocation10 + $0xad0] sm:$0xff] }
 0x3f7   : > { %5427 = vmatprep.subr.bf16.mxu1 %v5426_v27  ;;  %v2090_v20 = vld [vmem:[#allocation10 + $0xa38] sm:$0xff]  ;;  %v2083_v27 = vld [vmem:[#allocation10 + $0xa00] sm:$0xff] }
 0x3f8   : > { %v5442_v33 = vpack.c.bf16 %v2090_v20, %v2086_v10  ;;  %v5124_v40 = vpack.c.bf16 %v2087_v29, %v2083_v27  ;;  %v2113_v10 = vld [vmem:[#allocation10 + $0xaf0] sm:$0xff]  ;;  %v2116_v20 = vld [vmem:[#allocation10 + $0xb08] sm:$0xff] }
 0x3f9   : > { %5109 = vmatpush1.bf16.msra.mxu0 %v5108_v36  ;;  %v2096_v36 = vld [vmem:[#allocation10 + $0xa68] sm:$0xff]  ;;  %v5456_v29 = vpack.c.bf16 %v2113_v10, %v2109_v7  ;;  %v2143_v10 = vld [vmem:[#allocation10 + $0xbe0] sm:$0xff] }
 0x3fa   : > { %5429 = vmatpush1.bf16.msra.mxu1 %v5428_v37  ;;  %5111 = vmatprep.subr.bf16.mxu0 %v5110_v39  ;;  %v2094_v37 = vld [vmem:[#allocation10 + $0xa58] sm:$0xff]  ;;  %v5126_v30 = vpack.c.bf16 %v2096_v36, %v2092_v56  ;;  %v2117_v56 = vld [vmem:[#allocation10 + $0xb10] sm:$0xff] }
 0x3fb   : > { %5431 = vmatprep.subr.bf16.mxu1 %v5430_v23  ;;  %v2098_v39 = vld [vmem:[#allocation10 + $0xa78] sm:$0xff]  ;;  %v2091_v23 = vld [vmem:[#allocation10 + $0xa40] sm:$0xff] }
 0x3fc   : > { %v5446_v46 = vpack.c.bf16 %v2098_v39, %v2094_v37  ;;  %v5128_v50 = vpack.c.bf16 %v2095_v42, %v2091_v23  ;;  %v2121_v37 = vld [vmem:[#allocation10 + $0xb30] sm:$0xff]  ;;  %v2124_v39 = vld [vmem:[#allocation10 + $0xb48] sm:$0xff] }
 0x3fd   : > { %5113 = vmatpush1.bf16.msra.mxu0 %v5112_v49  ;;  %v2104_v49 = vld [vmem:[#allocation10 + $0xaa8] sm:$0xff]  ;;  %v5460_v42 = vpack.c.bf16 %v2121_v37, %v2117_v56  ;;  %v2147_v37 = vld [vmem:[#allocation10 + $0xc00] sm:$0xff] }
 0x3fe   : > { %5433 = vmatpush1.bf16.msra.mxu1 %v5432_v31  ;;  %5115 = vmatprep.subr.bf16.mxu0 %v5114_v43  ;;  %v2102_v31 = vld [vmem:[#allocation10 + $0xa98] sm:$0xff]  ;;  %v5130_v25 = vpack.c.bf16 %v2104_v49, %v2100_v48  ;;  %v2125_v48 = vld [vmem:[#allocation10 + $0xb50] sm:$0xff] }
 0x3ff   : > { %5435 = vmatprep.subr.bf16.mxu1 %v5434_v63  ;;  %v2106_v43 = vld [vmem:[#allocation10 + $0xab8] sm:$0xff]  ;;  %v2099_v63 = vld [vmem:[#allocation10 + $0xa80] sm:$0xff] }
 0x400   : > { %v5450_v17 = vpack.c.bf16 %v2106_v43, %v2102_v31  ;;  %v5132_v62 = vpack.c.bf16 %v2103_v0, %v2099_v63  ;;  %v2129_v31 = vld [vmem:[#allocation10 + $0xb70] sm:$0xff]  ;;  %v2132_v43 = vld [vmem:[#allocation10 + $0xb88] sm:$0xff] }
 0x401   : > { %5117 = vmatpush1.bf16.msra.mxu0 %v5116_v59  ;;  %v2112_v59 = vld [vmem:[#allocation10 + $0xae8] sm:$0xff]  ;;  %v5464_v0 = vpack.c.bf16 %v2129_v31, %v2125_v48  ;;  %v2159_v31 = vld [vmem:[#allocation10 + $0xc60] sm:$0xff] }
 0x402   : > { %5437 = vmatpush1.bf16.msra.mxu1 %v5436_v60  ;;  %5119 = vmatprep.subr.bf16.mxu0 %v5118_v61  ;;  %v2110_v60 = vld [vmem:[#allocation10 + $0xad8] sm:$0xff]  ;;  %v5134_v5 = vpack.c.bf16 %v2112_v59, %v2108_v16  ;;  %v2133_v16 = vld [vmem:[#allocation10 + $0xb90] sm:$0xff] }
 0x403   : > { %5439 = vmatprep.subr.bf16.mxu1 %v5438_v12  ;;  %v2114_v61 = vld [vmem:[#allocation10 + $0xaf8] sm:$0xff]  ;;  %v2107_v12 = vld [vmem:[#allocation10 + $0xac0] sm:$0xff] }
 0x404   : > { %v5454_v9 = vpack.c.bf16 %v2114_v61, %v2110_v60  ;;  %v5136_v27 = vpack.c.bf16 %v2111_v6, %v2107_v12  ;;  %v2137_v60 = vld [vmem:[#allocation10 + $0xbb0] sm:$0xff]  ;;  %v2140_v61 = vld [vmem:[#allocation10 + $0xbc8] sm:$0xff] }
 0x405   : > { %5121 = vmatpush1.bf16.msra.mxu0 %v5120_v35  ;;  %v2120_v35 = vld [vmem:[#allocation10 + $0xb28] sm:$0xff]  ;;  %v5468_v6 = vpack.c.bf16 %v2137_v60, %v2133_v16  ;;  %v2167_v60 = vld [vmem:[#allocation10 + $0xca0] sm:$0xff] }
 0x406   : > { %5441 = vmatpush1.bf16.msra.mxu1 %v5440_v14  ;;  %5123 = vmatprep.subr.bf16.mxu0 %v5122_v22  ;;  %v2118_v14 = vld [vmem:[#allocation10 + $0xb18] sm:$0xff]  ;;  %v5138_v32 = vpack.c.bf16 %v2120_v35, %v2116_v20  ;;  %v2141_v20 = vld [vmem:[#allocation10 + $0xbd0] sm:$0xff] }
 0x407   : > { %5443 = vmatprep.subr.bf16.mxu1 %v5442_v33  ;;  %v2122_v22 = vld [vmem:[#allocation10 + $0xb38] sm:$0xff]  ;;  %v2115_v33 = vld [vmem:[#allocation10 + $0xb00] sm:$0xff] }
 0x408   : > { %v5458_v36 = vpack.c.bf16 %v2122_v22, %v2118_v14  ;;  %v5140_v23 = vpack.c.bf16 %v2119_v34, %v2115_v33  ;;  %v2145_v14 = vld [vmem:[#allocation10 + $0xbf0] sm:$0xff]  ;;  %v2148_v22 = vld [vmem:[#allocation10 + $0xc08] sm:$0xff] }
 0x409   : > { %5125 = vmatpush1.bf16.msra.mxu0 %v5124_v40  ;;  %v2128_v40 = vld [vmem:[#allocation10 + $0xb68] sm:$0xff]  ;;  %v5472_v34 = vpack.c.bf16 %v2145_v14, %v2141_v20  ;;  %v2175_v20 = vld [vmem:[#allocation10 + $0xce0] sm:$0xff] }
 0x40a   : > { %5445 = vmatpush1.bf16.msra.mxu1 %v5444_v24  ;;  %5127 = vmatprep.subr.bf16.mxu0 %v5126_v30  ;;  %v2126_v24 = vld [vmem:[#allocation10 + $0xb58] sm:$0xff]  ;;  %v5142_v44 = vpack.c.bf16 %v2128_v40, %v2124_v39  ;;  %v2151_v39 = vld [vmem:[#allocation10 + $0xc20] sm:$0xff]  ;;  %v2149_v40 = vld [vmem:[#allocation10 + $0xc10] sm:$0xff] }
 0x40b   : > { %5447 = vmatprep.subr.bf16.mxu1 %v5446_v46  ;;  %v2130_v30 = vld [vmem:[#allocation10 + $0xb78] sm:$0xff]  ;;  %v2123_v46 = vld [vmem:[#allocation10 + $0xb40] sm:$0xff] }
 0x40c   : > { %v5462_v49 = vpack.c.bf16 %v2130_v30, %v2126_v24  ;;  %v5144_v63 = vpack.c.bf16 %v2127_v47, %v2123_v46  ;;  %v2153_v24 = vld [vmem:[#allocation10 + $0xc30] sm:$0xff]  ;;  %v2156_v30 = vld [vmem:[#allocation10 + $0xc48] sm:$0xff]  ;;  %v5156_v46 = vpack.c.bf16 %v2151_v39, %v2147_v37 }
 0x40d   : > { %5129 = vmatpush1.bf16.msra.mxu0 %v5128_v50  ;;  %v2136_v50 = vld [vmem:[#allocation10 + $0xba8] sm:$0xff]  ;;  %v5476_v47 = vpack.c.bf16 %v2153_v24, %v2149_v40  ;;  %v2181_v37 = vld [vmem:[#allocation10 + $0xd10] sm:$0xff] }
 0x40e   : > { %5449 = vmatpush1.bf16.msra.mxu1 %v5448_v54  ;;  %5131 = vmatprep.subr.bf16.mxu0 %v5130_v25  ;;  %v2134_v54 = vld [vmem:[#allocation10 + $0xb98] sm:$0xff]  ;;  %v5146_v1 = vpack.c.bf16 %v2136_v50, %v2132_v43  ;;  %v2157_v43 = vld [vmem:[#allocation10 + $0xc50] sm:$0xff]  ;;  %v2188_v24 = vld [vmem:[#allocation10 + $0xd48] sm:$0xff] }
 0x40f   : > { %5451 = vmatprep.subr.bf16.mxu1 %v5450_v17  ;;  %v2138_v25 = vld [vmem:[#allocation10 + $0xbb8] sm:$0xff]  ;;  %v2131_v17 = vld [vmem:[#allocation10 + $0xb80] sm:$0xff]  ;;  %v2185_v40 = vld [vmem:[#allocation10 + $0xd30] sm:$0xff] }
 0x410   : > { %v5466_v59 = vpack.c.bf16 %v2138_v25, %v2134_v54  ;;  %v5148_v12 = vpack.c.bf16 %v2135_v2, %v2131_v17  ;;  %v2161_v54 = vld [vmem:[#allocation10 + $0xc70] sm:$0xff]  ;;  %v2164_v25 = vld [vmem:[#allocation10 + $0xc88] sm:$0xff] }
 0x411   : > { %5133 = vmatpush1.bf16.msra.mxu0 %v5132_v62  ;;  %v2144_v62 = vld [vmem:[#allocation10 + $0xbe8] sm:$0xff]  ;;  %v5480_v2 = vpack.c.bf16 %v2161_v54, %v2157_v43 }
 0x412   : > { %5453 = vmatpush1.bf16.msra.mxu1 %v5452_v3  ;;  %5135 = vmatprep.subr.bf16.mxu0 %v5134_v5  ;;  %v2142_v3 = vld [vmem:[#allocation10 + $0xbd8] sm:$0xff]  ;;  %v5150_v7 = vpack.c.bf16 %v2144_v62, %v2140_v61  ;;  %v2165_v61 = vld [vmem:[#allocation10 + $0xc90] sm:$0xff]  ;;  %v2196_v54 = vld [vmem:[#allocation10 + $0xd88] sm:$0xff] }
 0x413   : > { %5455 = vmatprep.subr.bf16.mxu1 %v5454_v9  ;;  %v2146_v5 = vld [vmem:[#allocation10 + $0xbf8] sm:$0xff]  ;;  %v2139_v9 = vld [vmem:[#allocation10 + $0xbc0] sm:$0xff] }
 0x414   : > { %v5470_v35 = vpack.c.bf16 %v2146_v5, %v2142_v3  ;;  %v5152_v33 = vpack.c.bf16 %v2143_v10, %v2139_v9  ;;  %v2172_v3 = vld [vmem:[#allocation10 + $0xcc8] sm:$0xff]  ;;  %v2171_v10 = vld [vmem:[#allocation10 + $0xcc0] sm:$0xff] }
 0x415   : > { %5137 = vmatpush1.bf16.msra.mxu0 %v5136_v27  ;;  %v2152_v27 = vld [vmem:[#allocation10 + $0xc28] sm:$0xff] }
 0x416   : > { %5457 = vmatpush1.bf16.msra.mxu1 %v5456_v29  ;;  %5139 = vmatprep.subr.bf16.mxu0 %v5138_v32  ;;  %v2150_v29 = vld [vmem:[#allocation10 + $0xc18] sm:$0xff]  ;;  %v5154_v56 = vpack.c.bf16 %v2152_v27, %v2148_v22  ;;  %v2176_v5 = vld [vmem:[#allocation10 + $0xce8] sm:$0xff]  ;;  %v2177_v22 = vld [vmem:[#allocation10 + $0xcf0] sm:$0xff] }
 0x417   : > { %5459 = vmatprep.subr.bf16.mxu1 %v5458_v36  ;;  %v2154_v32 = vld [vmem:[#allocation10 + $0xc38] sm:$0xff]  ;;  %v5166_v9 = vpack.c.bf16 %v2176_v5, %v2172_v3  ;;  %v2180_v27 = vld [vmem:[#allocation10 + $0xd08] sm:$0xff] }
 0x418   : > { %v5474_v36 = vpack.c.bf16 %v2154_v32, %v2150_v29  ;;  %v2182_v29 = vld [vmem:[#allocation10 + $0xd18] sm:$0xff]  ;;  %v2208_v3 = vld [vmem:[#allocation10 + $0xde8] sm:$0xff] }
 0x419   : > { %5141 = vmatpush1.bf16.msra.mxu0 %v5140_v23  ;;  %v2160_v23 = vld [vmem:[#allocation10 + $0xc68] sm:$0xff]  ;;  %v2186_v32 = vld [vmem:[#allocation10 + $0xd38] sm:$0xff] }
 0x41a   : > { %5461 = vmatpush1.bf16.msra.mxu1 %v5460_v42  ;;  %5143 = vmatprep.subr.bf16.mxu0 %v5142_v44  ;;  %v2158_v42 = vld [vmem:[#allocation10 + $0xc58] sm:$0xff]  ;;  %v5158_v48 = vpack.c.bf16 %v2160_v23, %v2156_v30  ;;  %v5490_v39 = vpack.c.bf16 %v2186_v32, %v2182_v29  ;;  %v2192_v30 = vld [vmem:[#allocation10 + $0xd68] sm:$0xff] }
 0x41b   : > { %5463 = vmatprep.subr.bf16.mxu1 %v5462_v49  ;;  %v2162_v44 = vld [vmem:[#allocation10 + $0xc78] sm:$0xff]  ;;  %v2155_v49 = vld [vmem:[#allocation10 + $0xc40] sm:$0xff] }
 0x41c   : > { %v5478_v50 = vpack.c.bf16 %v2162_v44, %v2158_v42  ;;  %v5160_v17 = vpack.c.bf16 %v2159_v31, %v2155_v49  ;;  %v2190_v23 = vld [vmem:[#allocation10 + $0xd58] sm:$0xff]  ;;  %v2191_v49 = vld [vmem:[#allocation10 + $0xd60] sm:$0xff]  ;;  %v2189_v31 = vld [vmem:[#allocation10 + $0xd50] sm:$0xff] }
 0x41d   : > { %5145 = vmatpush1.bf16.msra.mxu0 %v5144_v63  ;;  %v2168_v63 = vld [vmem:[#allocation10 + $0xca8] sm:$0xff]  ;;  %v2194_v42 = vld [vmem:[#allocation10 + $0xd78] sm:$0xff] }
 0x41e   : > { %5465 = vmatpush1.bf16.msra.mxu1 %v5464_v0  ;;  %5147 = vmatprep.subr.bf16.mxu0 %v5146_v1  ;;  %v2166_v0 = vld [vmem:[#allocation10 + $0xc98] sm:$0xff]  ;;  %v5162_v16 = vpack.c.bf16 %v2168_v63, %v2164_v25  ;;  %v5494_v43 = vpack.c.bf16 %v2194_v42, %v2190_v23  ;;  %v2200_v25 = vld [vmem:[#allocation10 + $0xda8] sm:$0xff] }
 0x41f   : > { %5467 = vmatprep.subr.bf16.mxu1 %v5466_v59  ;;  %v2170_v1 = vld [vmem:[#allocation10 + $0xcb8] sm:$0xff]  ;;  %v2163_v59 = vld [vmem:[#allocation10 + $0xc80] sm:$0xff] }
 0x420   : > { %v5482_v62 = vpack.c.bf16 %v2170_v1, %v2166_v0  ;;  %v2198_v63 = vld [vmem:[#allocation10 + $0xd98] sm:$0xff] }
 0x421   : > { %5149 = vmatpush1.bf16.msra.mxu0 %v5148_v12  ;;  %v2178_v12 = vld [vmem:[#allocation10 + $0xcf8] sm:$0xff] }
 0x422   : > { %5469 = vmatpush1.bf16.msra.mxu1 %v5468_v6  ;;  %5151 = vmatprep.subr.bf16.mxu0 %v5150_v7  ;;  %v5164_v6 = vpack.c.bf16 %v2167_v60, %v2163_v59  ;;  %v2202_v0 = vld [vmem:[#allocation10 + $0xdb8] sm:$0xff]  ;;  %v2199_v59 = vld [vmem:[#allocation10 + $0xda0] sm:$0xff]  ;;  %v2197_v60 = vld [vmem:[#allocation10 + $0xd90] sm:$0xff] }
 0x423   : > { %5471 = vmatprep.subr.bf16.mxu1 %v5470_v35  ;;  %v2173_v35 = vld [vmem:[#allocation10 + $0xcd0] sm:$0xff]  ;;  %v2206_v5 = vld [vmem:[#allocation10 + $0xdd8] sm:$0xff] }
 0x424   : > { %v2218_v29 = vld [vmem:[#allocation10 + $0xe38] sm:$0xff] }
 0x425   : > { %5153 = vmatpush1.bf16.msra.mxu0 %v5152_v33  ;;  %v5168_v33 = vpack.c.bf16 %v2175_v20, %v2171_v10  ;;  %v2207_v10 = vld [vmem:[#allocation10 + $0xde0] sm:$0xff]  ;;  %v2205_v20 = vld [vmem:[#allocation10 + $0xdd0] sm:$0xff]  ;;  %v2226_v23 = vld [vmem:[#allocation10 + $0xe78] sm:$0xff] }
 0x426   : > { %5473 = vmatpush1.bf16.msra.mxu1 %v5472_v34  ;;  %5155 = vmatprep.subr.bf16.mxu0 %v5154_v56  ;;  %v2179_v56 = vld [vmem:[#allocation10 + $0xd00] sm:$0xff] }
 0x427   : > { %5475 = vmatprep.subr.bf16.mxu1 %v5474_v36  ;;  %v2183_v36 = vld [vmem:[#allocation10 + $0xd20] sm:$0xff] }
 0x428   : > { %2644 = vmatmul.mubr.f32.vlgmr.msra.gmra.mrb[8].mxu0 %v7043_v26  ;;  %v5172_v44 = vpack.c.bf16 %v2183_v36, %v2179_v56  ;;  %v2215_v56 = vld [vmem:[#allocation10 + $0xe20] sm:$0xff]  ;;  %v2213_v36 = vld [vmem:[#allocation10 + $0xe10] sm:$0xff] }
 0x429   : > { %3029 = vmatmul.mubr.f32.vlgmr.msra.gmra.mrb[16].mxu1 %v7043_v26  ;;  %2649 = vmatprep.mubr.f32.mxu0 %v7033_v18  ;;  %v2169_v26 = vld [vmem:[#allocation10 + $0xcb0] sm:$0xff] }
 0x42a   : > { %5157 = vmatpush1.bf16.msra.mxu0 %v5156_v46  ;;  %3034 = vmatprep.mubr.f32.mxu1 %v7033_v18  ;;  %v2174_v18 = vld [vmem:[#allocation10 + $0xcd8] sm:$0xff]  ;;  %v5484_v7 = vpack.c.bf16 %v2169_v26, %v2165_v61  ;;  %v5492_v46 = vpack.c.bf16 %v2185_v40, %v2181_v37  ;;  %v5498_v61 = vpack.c.bf16 %v2202_v0, %v2198_v63  ;;  %v2204_v26 = vld [vmem:[#allocation10 + $0xdc8] sm:$0xff] }
 0x42b   : > { %5477 = vmatpush1.bf16.msra.mxu1 %v5476_v47  ;;  %5159 = vmatprep.subr.bf16.mxu0 %v5158_v48  ;;  %v5486_v14 = vpack.c.bf16 %v2178_v12, %v2174_v18  ;;  %v5174_v47 = vpack.c.bf16 %v2192_v30, %v2188_v24  ;;  %v2187_v48 = vld [vmem:[#allocation10 + $0xd40] sm:$0xff]  ;;  %v2210_v18 = vld [vmem:[#allocation10 + $0xdf8] sm:$0xff]  ;;  %v2220_v40 = vld [vmem:[#allocation10 + $0xe48] sm:$0xff] }
 0x42c   : > { %2650 = vmatmul.mubr.f32.gmra.mrb[10].mxu0 %v7024_v13  ;;  %5479 = vmatprep.subr.bf16.mxu1 %v5478_v50  ;;  %v2193_v50 = vld [vmem:[#allocation10 + $0xd70] sm:$0xff]  ;;  %v5176_v1 = vpack.c.bf16 %v2191_v49, %v2187_v48  ;;  %v2224_v24 = vld [vmem:[#allocation10 + $0xe68] sm:$0xff]  ;;  %v2222_v30 = vld [vmem:[#allocation10 + $0xe58] sm:$0xff] }
 0x42d   : > { %3035 = vmatmul.mubr.f32.gmra.mrb[18].mxu1 %v7024_v13  ;;  %2720 = vmatprep.mubr.f32.mxu0 %v7058_v38  ;;  %v2184_v13 = vld [vmem:[#allocation10 + $0xd28] sm:$0xff]  ;;  %v2223_v48 = vld [vmem:[#allocation10 + $0xe60] sm:$0xff]  ;;  %v2221_v49 = vld [vmem:[#allocation10 + $0xe50] sm:$0xff] }
 0x42e   : > { %5161 = vmatpush1.bf16.msra.mxu0 %v5160_v17  ;;  %3105 = vmatprep.mubr.f32.mxu1 %v7058_v38  ;;  %v5488_v38 = vpack.c.bf16 %v2177_v22, %v2173_v35  ;;  %v5170_v34 = vpack.c.bf16 %v2184_v13, %v2180_v27  ;;  %v5496_v17 = vpack.c.bf16 %v2193_v50, %v2189_v31  ;;  %v2212_v22 = vld [vmem:[#allocation10 + $0xe08] sm:$0xff]  ;;  %v2214_v13 = vld [vmem:[#allocation10 + $0xe18] sm:$0xff] }
 0x42f   : > { %5481 = vmatpush1.bf16.msra.mxu1 %v5480_v2  ;;  %5163 = vmatprep.subr.bf16.mxu0 %v5162_v16  ;;  %v5178_v2 = vpack.c.bf16 %v2200_v25, %v2196_v54  ;;  %v2195_v16 = vld [vmem:[#allocation10 + $0xd80] sm:$0xff]  ;;  %v5502_v35 = vpack.c.bf16 %v2210_v18, %v2206_v5  ;;  %v2216_v27 = vld [vmem:[#allocation10 + $0xe28] sm:$0xff]  ;;  %v5506_v37 = vpack.c.bf16 %v2218_v29, %v2214_v13  ;;  %v2230_v25 = vld [vmem:[#allocation10 + $0xe98] sm:$0xff] }
 0x430   : > { %5483 = vmatprep.subr.bf16.mxu1 %v5482_v62  ;;  %v2201_v62 = vld [vmem:[#allocation10 + $0xdb0] sm:$0xff]  ;;  %v5180_v12 = vpack.c.bf16 %v2199_v59, %v2195_v16  ;;  %v5510_v31 = vpack.c.bf16 %v2226_v23, %v2222_v30  ;;  %v2228_v50 = vld [vmem:[#allocation10 + $0xe88] sm:$0xff]  ;;  %v2234_v63 = vld [vmem:[#allocation10 + $0xeb8] sm:$0xff] }
 0x431   : > { %v2232_v54 = vld [vmem:[#allocation10 + $0xea8] sm:$0xff]  ;;  %v2231_v16 = vld [vmem:[#allocation10 + $0xea0] sm:$0xff]  ;;  %v2229_v59 = vld [vmem:[#allocation10 + $0xe90] sm:$0xff] }
 0x432   : > { %5165 = vmatpush1.bf16.msra.mxu0 %v5164_v6  ;;  %v5500_v6 = vpack.c.bf16 %v2201_v62, %v2197_v60  ;;  %v5514_v60 = vpack.c.bf16 %v2234_v63, %v2230_v25  ;;  %v2236_v62 = vld [vmem:[#allocation10 + $0xec8] sm:$0xff]  ;;  %v2242_v5 = vld [vmem:[#allocation10 + $0xef8] sm:$0xff] }
 0x433   : > { %5485 = vmatpush1.bf16.msra.mxu1 %v5484_v7  ;;  %5167 = vmatprep.subr.bf16.mxu0 %v5166_v9  ;;  %v5182_v7 = vpack.c.bf16 %v2208_v3, %v2204_v26  ;;  %v2203_v9 = vld [vmem:[#allocation10 + $0xdc0] sm:$0xff]  ;;  %v2240_v26 = vld [vmem:[#allocation10 + $0xee8] sm:$0xff]  ;;  %v2238_v3 = vld [vmem:[#allocation10 + $0xed8] sm:$0xff] }
 0x434   : > { %5487 = vmatprep.subr.bf16.mxu1 %v5486_v14  ;;  %v2209_v14 = vld [vmem:[#allocation10 + $0xdf0] sm:$0xff]  ;;  %v5184_v32 = vpack.c.bf16 %v2207_v10, %v2203_v9  ;;  %v2239_v9 = vld [vmem:[#allocation10 + $0xee0] sm:$0xff]  ;;  %v2250_v13 = vld [vmem:[#allocation10 + $0xf38] sm:$0xff] }
 0x435   : > { %v2237_v10 = vld [vmem:[#allocation10 + $0xed0] sm:$0xff]  ;;  %v2258_v30 = vld [vmem:[#allocation10 + $0xf78] sm:$0xff] }
 0x436   : > { %5169 = vmatpush1.bf16.msra.mxu0 %v5168_v33  ;;  %v5504_v33 = vpack.c.bf16 %v2209_v14, %v2205_v20  ;;  %v5518_v20 = vpack.c.bf16 %v2242_v5, %v2238_v3  ;;  %v2244_v14 = vld [vmem:[#allocation10 + $0xf08] sm:$0xff]  ;;  %v2266_v25 = vld [vmem:[#allocation10 + $0xfb8] sm:$0xff] }
 0x437   : > { %5489 = vmatpush1.bf16.msra.mxu1 %v5488_v38  ;;  %5171 = vmatprep.subr.bf16.mxu0 %v5170_v34  ;;  %v5186_v38 = vpack.c.bf16 %v2216_v27, %v2212_v22  ;;  %v2211_v34 = vld [vmem:[#allocation10 + $0xe00] sm:$0xff]  ;;  %v2248_v22 = vld [vmem:[#allocation10 + $0xf28] sm:$0xff]  ;;  %v2246_v27 = vld [vmem:[#allocation10 + $0xf18] sm:$0xff] }
 0x438   : > { %5491 = vmatprep.subr.bf16.mxu1 %v5490_v39  ;;  %v2217_v39 = vld [vmem:[#allocation10 + $0xe30] sm:$0xff]  ;;  %v5188_v42 = vpack.c.bf16 %v2215_v56, %v2211_v34  ;;  %v2247_v34 = vld [vmem:[#allocation10 + $0xf20] sm:$0xff]  ;;  %v2274_v3 = vld [vmem:[#allocation10 + $0xff8] sm:$0xff] }
 0x439   : > { %v2245_v56 = vld [vmem:[#allocation10 + $0xf10] sm:$0xff] }
 0x43a   : > { %5173 = vmatpush1.bf16.msra.mxu0 %v5172_v44  ;;  %v5508_v44 = vpack.c.bf16 %v2217_v39, %v2213_v36  ;;  %v5522_v36 = vpack.c.bf16 %v2250_v13, %v2246_v27  ;;  %v2252_v39 = vld [vmem:[#allocation10 + $0xf48] sm:$0xff]  ;;  %v2282_v27 = vld [vmem:[#allocation10 + $0x1038] sm:$0xff] }
 0x43b   : > { %5493 = vmatpush1.bf16.msra.mxu1 %v5492_v46  ;;  %5175 = vmatprep.subr.bf16.mxu0 %v5174_v47  ;;  %v5190_v46 = vpack.c.bf16 %v2224_v24, %v2220_v40  ;;  %v2219_v47 = vld [vmem:[#allocation10 + $0xe40] sm:$0xff]  ;;  %v2256_v40 = vld [vmem:[#allocation10 + $0xf68] sm:$0xff]  ;;  %v2254_v24 = vld [vmem:[#allocation10 + $0xf58] sm:$0xff] }
 0x43c   : > { %5495 = vmatprep.subr.bf16.mxu1 %v5494_v43  ;;  %v2225_v43 = vld [vmem:[#allocation10 + $0xe70] sm:$0xff]  ;;  %v5192_v0 = vpack.c.bf16 %v2223_v48, %v2219_v47  ;;  %v2255_v47 = vld [vmem:[#allocation10 + $0xf60] sm:$0xff] }
 0x43d   : > { %v2253_v48 = vld [vmem:[#allocation10 + $0xf50] sm:$0xff] }
 0x43e   : > { %5177 = vmatpush1.bf16.msra.mxu0 %v5176_v1  ;;  %v5512_v1 = vpack.c.bf16 %v2225_v43, %v2221_v49  ;;  %v5526_v49 = vpack.c.bf16 %v2258_v30, %v2254_v24  ;;  %v2260_v43 = vld [vmem:[#allocation10 + $0xf88] sm:$0xff]  ;;  %v2286_v24 = vld [vmem:[#allocation10 + $0x1058] sm:$0xff] }
 0x43f   : > { %5497 = vmatpush1.bf16.msra.mxu1 %v5496_v17  ;;  %5179 = vmatprep.subr.bf16.mxu0 %v5178_v2  ;;  %v5194_v17 = vpack.c.bf16 %v2232_v54, %v2228_v50  ;;  %v2227_v2 = vld [vmem:[#allocation10 + $0xe80] sm:$0xff]  ;;  %v2264_v50 = vld [vmem:[#allocation10 + $0xfa8] sm:$0xff]  ;;  %v2262_v54 = vld [vmem:[#allocation10 + $0xf98] sm:$0xff] }
 0x440   : > { %5499 = vmatprep.subr.bf16.mxu1 %v5498_v61  ;;  %v2233_v61 = vld [vmem:[#allocation10 + $0xeb0] sm:$0xff]  ;;  %v5196_v18 = vpack.c.bf16 %v2231_v16, %v2227_v2  ;;  %v2263_v2 = vld [vmem:[#allocation10 + $0xfa0] sm:$0xff]  ;;  %v2290_v30 = vld [vmem:[#allocation10 + $0x1078] sm:$0xff] }
 0x441   : > { %v2261_v16 = vld [vmem:[#allocation10 + $0xf90] sm:$0xff] }
 0x442   : > { %5181 = vmatpush1.bf16.msra.mxu0 %v5180_v12  ;;  %v5516_v12 = vpack.c.bf16 %v2233_v61, %v2229_v59  ;;  %v5530_v59 = vpack.c.bf16 %v2266_v25, %v2262_v54  ;;  %v2268_v61 = vld [vmem:[#allocation10 + $0xfc8] sm:$0xff]  ;;  %v2294_v25 = vld [vmem:[#allocation10 + $0x1098] sm:$0xff] }
 0x443   : > { %5501 = vmatpush1.bf16.msra.mxu1 %v5500_v6  ;;  %5183 = vmatprep.subr.bf16.mxu0 %v5182_v7  ;;  %v5198_v6 = vpack.c.bf16 %v2240_v26, %v2236_v62  ;;  %v2235_v7 = vld [vmem:[#allocation10 + $0xec0] sm:$0xff]  ;;  %v2272_v62 = vld [vmem:[#allocation10 + $0xfe8] sm:$0xff]  ;;  %v2270_v26 = vld [vmem:[#allocation10 + $0xfd8] sm:$0xff] }
 0x444   : > { %5503 = vmatprep.subr.bf16.mxu1 %v5502_v35  ;;  %v2241_v35 = vld [vmem:[#allocation10 + $0xef0] sm:$0xff]  ;;  %v5200_v29 = vpack.c.bf16 %v2239_v9, %v2235_v7  ;;  %v2271_v7 = vld [vmem:[#allocation10 + $0xfe0] sm:$0xff]  ;;  %v2296_v54 = vld [vmem:[#allocation10 + $0x10a8] sm:$0xff] }
 0x445   : > { %v2269_v9 = vld [vmem:[#allocation10 + $0xfd0] sm:$0xff] }
 0x446   : > { %5185 = vmatpush1.bf16.msra.mxu0 %v5184_v32  ;;  %v5520_v32 = vpack.c.bf16 %v2241_v35, %v2237_v10  ;;  %v5534_v10 = vpack.c.bf16 %v2274_v3, %v2270_v26  ;;  %v2276_v35 = vld [vmem:[#allocation10 + $0x1008] sm:$0xff]  ;;  %v2302_v26 = vld [vmem:[#allocation10 + $0x10d8] sm:$0xff] }
 0x447   : > { %5505 = vmatpush1.bf16.msra.mxu1 %v5504_v33  ;;  %5187 = vmatprep.subr.bf16.mxu0 %v5186_v38  ;;  %v5202_v33 = vpack.c.bf16 %v2248_v22, %v2244_v14  ;;  %v2243_v38 = vld [vmem:[#allocation10 + $0xf00] sm:$0xff]  ;;  %v2280_v14 = vld [vmem:[#allocation10 + $0x1028] sm:$0xff]  ;;  %v2278_v22 = vld [vmem:[#allocation10 + $0x1018] sm:$0xff] }
 0x448   : > { %5507 = vmatprep.subr.bf16.mxu1 %v5506_v37  ;;  %v2249_v37 = vld [vmem:[#allocation10 + $0xf30] sm:$0xff]  ;;  %v5204_v23 = vpack.c.bf16 %v2247_v34, %v2243_v38  ;;  %v2275_v38 = vld [vmem:[#allocation10 + $0x1000] sm:$0xff]  ;;  %v2306_v3 = vld [vmem:[#allocation10 + $0x10f8] sm:$0xff] }
 0x449   : > { %v2279_v34 = vld [vmem:[#allocation10 + $0x1020] sm:$0xff] }
 0x44a   : > { %5189 = vmatpush1.bf16.msra.mxu0 %v5188_v42  ;;  %v5524_v42 = vpack.c.bf16 %v2249_v37, %v2245_v56  ;;  %v2277_v56 = vld [vmem:[#allocation10 + $0x1010] sm:$0xff] }
 0x44b   : > { %5509 = vmatpush1.bf16.msra.mxu1 %v5508_v44  ;;  %5191 = vmatprep.subr.bf16.mxu0 %v5190_v46  ;;  %v5206_v44 = vpack.c.bf16 %v2256_v40, %v2252_v39  ;;  %v2251_v46 = vld [vmem:[#allocation10 + $0xf40] sm:$0xff]  ;;  %v2281_v37 = vld [vmem:[#allocation10 + $0x1030] sm:$0xff]  ;;  %v2284_v39 = vld [vmem:[#allocation10 + $0x1048] sm:$0xff] }
 0x44c   : > { %5511 = vmatprep.subr.bf16.mxu1 %v5510_v31  ;;  %v2257_v31 = vld [vmem:[#allocation10 + $0xf70] sm:$0xff]  ;;  %v5208_v63 = vpack.c.bf16 %v2255_v47, %v2251_v46  ;;  %v2288_v40 = vld [vmem:[#allocation10 + $0x1068] sm:$0xff]  ;;  %v2283_v46 = vld [vmem:[#allocation10 + $0x1040] sm:$0xff] }
 0x44d   : > { %v2287_v47 = vld [vmem:[#allocation10 + $0x1060] sm:$0xff] }
 0x44e   : > { %5193 = vmatpush1.bf16.msra.mxu0 %v5192_v0  ;;  %v5528_v0 = vpack.c.bf16 %v2257_v31, %v2253_v48  ;;  %v2285_v48 = vld [vmem:[#allocation10 + $0x1050] sm:$0xff]  ;;  %v5542_v31 = vpack.c.bf16 %v2290_v30, %v2286_v24 }
 0x44f   : > { %5513 = vmatpush1.bf16.msra.mxu1 %v5512_v1  ;;  %5195 = vmatprep.subr.bf16.mxu0 %v5194_v17  ;;  %v5210_v1 = vpack.c.bf16 %v2264_v50, %v2260_v43  ;;  %v2259_v17 = vld [vmem:[#allocation10 + $0xf80] sm:$0xff]  ;;  %v2289_v43 = vld [vmem:[#allocation10 + $0x1070] sm:$0xff]  ;;  %v2292_v50 = vld [vmem:[#allocation10 + $0x1088] sm:$0xff] }
 0x450   : > { %5515 = vmatprep.subr.bf16.mxu1 %v5514_v60  ;;  %v2265_v60 = vld [vmem:[#allocation10 + $0xfb0] sm:$0xff]  ;;  %v5212_v5 = vpack.c.bf16 %v2263_v2, %v2259_v17  ;;  %v5544_v17 = vpack.c.bf16 %v2289_v43, %v2285_v48  ;;  %v2291_v2 = vld [vmem:[#allocation10 + $0x1080] sm:$0xff]  ;;  %v2324_v48 = vld [vmem:[#allocation10 + $0x1188] sm:$0xff] }
 0x451   : > { %v2330_v43 = vld [vmem:[#allocation10 + $0x11b8] sm:$0xff] }
 0x452   : > { %5197 = vmatpush1.bf16.msra.mxu0 %v5196_v18  ;;  %v5532_v18 = vpack.c.bf16 %v2265_v60, %v2261_v16  ;;  %v2295_v16 = vld [vmem:[#allocation10 + $0x10a0] sm:$0xff]  ;;  %v2297_v60 = vld [vmem:[#allocation10 + $0x10b0] sm:$0xff] }
 0x453   : > { %5517 = vmatpush1.bf16.msra.mxu1 %v5516_v12  ;;  %5199 = vmatprep.subr.bf16.mxu0 %v5198_v6  ;;  %v5214_v12 = vpack.c.bf16 %v2272_v62, %v2268_v61  ;;  %v2267_v6 = vld [vmem:[#allocation10 + $0xfc0] sm:$0xff]  ;;  %v2300_v61 = vld [vmem:[#allocation10 + $0x10c8] sm:$0xff] }
 0x454   : > { %5519 = vmatprep.subr.bf16.mxu1 %v5518_v20  ;;  %v2273_v20 = vld [vmem:[#allocation10 + $0xff0] sm:$0xff]  ;;  %v5216_v13 = vpack.c.bf16 %v2271_v7, %v2267_v6  ;;  %v2304_v62 = vld [vmem:[#allocation10 + $0x10e8] sm:$0xff]  ;;  %v2303_v6 = vld [vmem:[#allocation10 + $0x10e0] sm:$0xff] }
 0x455   : > { %v2301_v7 = vld [vmem:[#allocation10 + $0x10d0] sm:$0xff] }
 0x456   : > { %5201 = vmatpush1.bf16.msra.mxu0 %v5200_v29  ;;  %v5536_v29 = vpack.c.bf16 %v2273_v20, %v2269_v9  ;;  %v5550_v9 = vpack.c.bf16 %v2306_v3, %v2302_v26  ;;  %v2308_v20 = vld [vmem:[#allocation10 + $0x1108] sm:$0xff]  ;;  %v2331_v26 = vld [vmem:[#allocation10 + $0x11c0] sm:$0xff] }
 0x457   : > { %5521 = vmatpush1.bf16.msra.mxu1 %v5520_v32  ;;  %5203 = vmatprep.subr.bf16.mxu0 %v5202_v33  ;;  %v5218_v32 = vpack.c.bf16 %v2280_v14, %v2276_v35  ;;  %v5538_v33 = vpack.c.bf16 %v2282_v27, %v2278_v22  ;;  %v2312_v35 = vld [vmem:[#allocation10 + $0x1128] sm:$0xff]  ;;  %v2310_v14 = vld [vmem:[#allocation10 + $0x1118] sm:$0xff]  ;;  %v2335_v3 = vld [vmem:[#allocation10 + $0x11e0] sm:$0xff] }
 0x458   : > { %5523 = vmatprep.subr.bf16.mxu1 %v5522_v36  ;;  %v1743_v36 = vrot.slane %v6454_v11, 3  ;;  %v2314_v22 = vld [vmem:[#allocation10 + $0x1138] sm:$0xff] }
 0x45a   : > { %5205 = vmatpush1.bf16.msra.mxu0 %v5204_v23  ;;  %v5220_v23 = vpack.c.bf16 %v2279_v34, %v2275_v38  ;;  %v5554_v38 = vpack.c.bf16 %v2314_v22, %v2310_v14  ;;  %v2313_v34 = vld [vmem:[#allocation10 + $0x1130] sm:$0xff]  ;;  %v2339_v14 = vld [vmem:[#allocation10 + $0x1200] sm:$0xff] }
 0x45b   : > { %5525 = vmatpush1.bf16.msra.mxu1 %v5524_v42  ;;  %5207 = vmatprep.subr.bf16.mxu0 %v5206_v44  ;;  %v5540_v42 = vpack.c.bf16 %v2281_v37, %v2277_v56  ;;  %v5222_v44 = vpack.c.bf16 %v2288_v40, %v2284_v39  ;;  %v2316_v56 = vld [vmem:[#allocation10 + $0x1148] sm:$0xff]  ;;  %v2318_v37 = vld [vmem:[#allocation10 + $0x1158] sm:$0xff]  ;;  %v2343_v22 = vld [vmem:[#allocation10 + $0x1220] sm:$0xff] }
 0x45c   : > { %5527 = vmatprep.subr.bf16.mxu1 %v5526_v49  ;;  %v1745_v49 = vsel %vm592_vm3, %v1741_v21, %v1743_v36  ;;  %v5226_v21 = vpack.c.bf16 %v2296_v54, %v2292_v50  ;;  %v2322_v39 = vld [vmem:[#allocation10 + $0x1178] sm:$0xff] }
 0x45e   : > { %5209 = vmatpush1.bf16.msra.mxu0 %v5208_v63  ;;  %v2298_v63 = vld [vmem:[#allocation10 + $0x10b8] sm:$0xff] }
 0x45f   : > { %5529 = vmatpush1.bf16.msra.mxu1 %v5528_v0  ;;  %5211 = vmatprep.subr.bf16.mxu0 %v5210_v1  ;;  %v5224_v0 = vpack.c.bf16 %v2287_v47, %v2283_v46  ;;  %v1744_v1 = vsel %vm592_vm3, %v1738_v15, %v1743_v36  ;;  %v5228_v15 = vpack.c.bf16 %v2295_v16, %v2291_v2  ;;  %v2320_v36 = vld [vmem:[#allocation10 + $0x1168] sm:$0xff]  ;;  %v2321_v47 = vld [vmem:[#allocation10 + $0x1170] sm:$0xff] }
 0x460   : > { %5531 = vmatprep.subr.bf16.mxu1 %v5530_v59  ;;  %v2293_v59 = vld [vmem:[#allocation10 + $0x1090] sm:$0xff]  ;;  %v5238_v30 = vpack.c.bf16 %v2320_v36, %v2316_v56  ;;  %v5558_v46 = vpack.c.bf16 %v2322_v39, %v2318_v37  ;;  %v2332_v2 = vld [vmem:[#allocation10 + $0x11c8] sm:$0xff]  ;;  %v2347_v37 = vld [vmem:[#allocation10 + $0x1240] sm:$0xff] }
 0x461   : > { %v2336_v16 = vld [vmem:[#allocation10 + $0x11e8] sm:$0xff]  ;;  %v2351_v39 = vld [vmem:[#allocation10 + $0x1260] sm:$0xff] }
 0x462   : > { %5213 = vmatpush1.bf16.msra.mxu0 %v5212_v5  ;;  %v5548_v5 = vpack.c.bf16 %v2297_v60, %v2293_v59  ;;  %v2334_v59 = vld [vmem:[#allocation10 + $0x11d8] sm:$0xff] }
 0x463   : > { %5533 = vmatpush1.bf16.msra.mxu1 %v5532_v18  ;;  %5215 = vmatprep.subr.bf16.mxu0 %v5214_v12  ;;  %v5230_v18 = vpack.c.bf16 %v2304_v62, %v2300_v61  ;;  %v2299_v12 = vld [vmem:[#allocation10 + $0x10c0] sm:$0xff]  ;;  %v5246_v62 = vpack.c.bf16 %v2336_v16, %v2332_v2 }
 0x464   : > { %5535 = vmatprep.subr.bf16.mxu1 %v5534_v10  ;;  %v2305_v10 = vld [vmem:[#allocation10 + $0x10f0] sm:$0xff]  ;;  %v5232_v27 = vpack.c.bf16 %v2303_v6, %v2299_v12  ;;  %v2340_v12 = vld [vmem:[#allocation10 + $0x1208] sm:$0xff] }
 0x465   : > { %v2344_v6 = vld [vmem:[#allocation10 + $0x1228] sm:$0xff] }
 0x466   : > { %5217 = vmatpush1.bf16.msra.mxu0 %v5216_v13  ;;  %v5234_v13 = vpack.c.bf16 %v2312_v35, %v2308_v20  ;;  %v5250_v35 = vpack.c.bf16 %v2344_v6, %v2340_v12 }
 0x467   : > { %5537 = vmatpush1.bf16.msra.mxu1 %v5536_v29  ;;  %5219 = vmatprep.subr.bf16.mxu0 %v5218_v32  ;;  %v2307_v29 = vld [vmem:[#allocation10 + $0x1100] sm:$0xff] }
 0x468   : > { %5539 = vmatprep.subr.bf16.mxu1 %v5538_v33  ;;  %v2311_v32 = vld [vmem:[#allocation10 + $0x1120] sm:$0xff]  ;;  %v2309_v33 = vld [vmem:[#allocation10 + $0x1110] sm:$0xff] }
 0x469   : > { %2721 = vmatmul.mubr.f32.vlgmr.msra.gmra.mrb[8].mxu0 %v7063_v19  ;;  %v5236_v40 = vpack.c.bf16 %v2311_v32, %v2307_v29  ;;  %v5556_v24 = vpack.c.bf16 %v2313_v34, %v2309_v33  ;;  %v2348_v29 = vld [vmem:[#allocation10 + $0x1248] sm:$0xff]  ;;  %v2350_v33 = vld [vmem:[#allocation10 + $0x1258] sm:$0xff]  ;;  %v5252_v34 = vpack.c.bf16 %v2343_v22, %v2339_v14 }
 0x46a   : > { %3106 = vmatmul.mubr.f32.vlgmr.msra.gmra.mrb[16].mxu1 %v7063_v19  ;;  %2726 = vmatprep.mubr.f32.mxu0 %v1745_v49  ;;  %v5546_v19 = vpack.c.bf16 %v2298_v63, %v2294_v25  ;;  %v2323_v63 = vld [vmem:[#allocation10 + $0x1180] sm:$0xff]  ;;  %v2352_v32 = vld [vmem:[#allocation10 + $0x1268] sm:$0xff] }
 0x46b   : > { %5221 = vmatpush1.bf16.msra.mxu0 %v5220_v23  ;;  %3111 = vmatprep.mubr.f32.mxu1 %v1745_v49  ;;  %v2315_v23 = vld [vmem:[#allocation10 + $0x1140] sm:$0xff]  ;;  %v2328_v49 = vld [vmem:[#allocation10 + $0x11a8] sm:$0xff]  ;;  %v5254_v36 = vpack.c.bf16 %v2352_v32, %v2348_v29 }
 0x46c   : > { %5541 = vmatpush1.bf16.msra.mxu1 %v5540_v42  ;;  %5223 = vmatprep.subr.bf16.mxu0 %v5222_v44  ;;  %v2319_v42 = vld [vmem:[#allocation10 + $0x1160] sm:$0xff]  ;;  %v2317_v44 = vld [vmem:[#allocation10 + $0x1150] sm:$0xff]  ;;  %v5242_v25 = vpack.c.bf16 %v2328_v49, %v2324_v48  ;;  %v2380_v14 = vld [vmem:[#allocation10 + $0x1348] sm:$0xff] }
 0x46d   : > { %2727 = vmatmul.mubr.f32.gmra.mrb[10].mxu0 %v1744_v1  ;;  %5543 = vmatprep.subr.bf16.mxu1 %v5542_v31  ;;  %v2326_v31 = vld [vmem:[#allocation10 + $0x1198] sm:$0xff]  ;;  %v5240_v50 = vpack.c.bf16 %v2319_v42, %v2315_v23  ;;  %v5560_v54 = vpack.c.bf16 %v2321_v47, %v2317_v44  ;;  %v2356_v23 = vld [vmem:[#allocation10 + $0x1288] sm:$0xff]  ;;  %v5256_v47 = vpack.c.bf16 %v2351_v39, %v2347_v37 }
 0x46e   : > { %3112 = vmatmul.mubr.f32.gmra.mrb[18].mxu1 %v1744_v1  ;;  %2797 = vmatprep.mubr.f32.mxu0 %v7071_v52  ;;  %v2325_v1 = vld [vmem:[#allocation10 + $0x1190] sm:$0xff]  ;;  %v2360_v42 = vld [vmem:[#allocation10 + $0x12a8] sm:$0xff]  ;;  %v2358_v44 = vld [vmem:[#allocation10 + $0x1298] sm:$0xff] }
 0x46f   : > { %5225 = vmatpush1.bf16.msra.mxu0 %v5224_v0  ;;  %3182 = vmatprep.mubr.f32.mxu1 %v7071_v52  ;;  %v5552_v52 = vpack.c.bf16 %v2305_v10, %v2301_v7  ;;  %v2327_v0 = vld [vmem:[#allocation10 + $0x11a0] sm:$0xff]  ;;  %v2342_v7 = vld [vmem:[#allocation10 + $0x1218] sm:$0xff]  ;;  %v5248_v10 = vpack.c.bf16 %v2335_v3, %v2331_v26  ;;  %v5258_v49 = vpack.c.bf16 %v2360_v42, %v2356_v23  ;;  %v2372_v26 = vld [vmem:[#allocation10 + $0x1308] sm:$0xff] }
 0x470   : > { %5545 = vmatpush1.bf16.msra.mxu1 %v5544_v17  ;;  %5227 = vmatprep.subr.bf16.mxu0 %v5226_v21  ;;  %v5562_v17 = vpack.c.bf16 %v2330_v43, %v2326_v31  ;;  %v2329_v21 = vld [vmem:[#allocation10 + $0x11b0] sm:$0xff]  ;;  %v5244_v60 = vpack.c.bf16 %v2327_v0, %v2323_v63  ;;  %v2355_v31 = vld [vmem:[#allocation10 + $0x1280] sm:$0xff]  ;;  %v2364_v63 = vld [vmem:[#allocation10 + $0x12c8] sm:$0xff] }
 0x471   : > { %5547 = vmatprep.subr.bf16.mxu1 %v5546_v19  ;;  %v2338_v19 = vld [vmem:[#allocation10 + $0x11f8] sm:$0xff]  ;;  %v5564_v61 = vpack.c.bf16 %v2329_v21, %v2325_v1  ;;  %v2359_v43 = vld [vmem:[#allocation10 + $0x12a0] sm:$0xff]  ;;  %v2368_v0 = vld [vmem:[#allocation10 + $0x12e8] sm:$0xff] }
 0x472   : > { %v2366_v1 = vld [vmem:[#allocation10 + $0x12d8] sm:$0xff]  ;;  %v5260_v21 = vpack.c.bf16 %v2359_v43, %v2355_v31  ;;  %v5262_v16 = vpack.c.bf16 %v2368_v0, %v2364_v63  ;;  %v2376_v3 = vld [vmem:[#allocation10 + $0x1328] sm:$0xff] }
 0x473   : > { %5229 = vmatpush1.bf16.msra.mxu0 %v5228_v15  ;;  %v2333_v15 = vld [vmem:[#allocation10 + $0x11d0] sm:$0xff]  ;;  %v5266_v6 = vpack.c.bf16 %v2376_v3, %v2372_v26  ;;  %v2384_v22 = vld [vmem:[#allocation10 + $0x1368] sm:$0xff]  ;;  %v3386_v3 = vld [vmem:[#allocation16 + $0x88] sm:$0xff] }
 0x474   : > { %5549 = vmatpush1.bf16.msra.mxu1 %v5548_v5  ;;  %5231 = vmatprep.subr.bf16.mxu0 %v5230_v18  ;;  %v5566_v5 = vpack.c.bf16 %v2338_v19, %v2334_v59  ;;  %v2337_v18 = vld [vmem:[#allocation10 + $0x11f0] sm:$0xff]  ;;  %v2363_v59 = vld [vmem:[#allocation10 + $0x12c0] sm:$0xff]  ;;  %v5270_v32 = vpack.c.bf16 %v2384_v22, %v2380_v14  ;;  %v2388_v37 = vld [vmem:[#allocation10 + $0x1388] sm:$0xff] }
 0x475   : > { %5551 = vmatprep.subr.bf16.mxu1 %v5550_v9  ;;  %v2346_v9 = vld [vmem:[#allocation10 + $0x1238] sm:$0xff]  ;;  %v5568_v20 = vpack.c.bf16 %v2337_v18, %v2333_v15  ;;  %v2367_v19 = vld [vmem:[#allocation10 + $0x12e0] sm:$0xff]  ;;  %v2392_v39 = vld [vmem:[#allocation10 + $0x13a8] sm:$0xff] }
 0x476   : > { %v2374_v15 = vld [vmem:[#allocation10 + $0x1318] sm:$0xff]  ;;  %v5264_v18 = vpack.c.bf16 %v2367_v19, %v2363_v59  ;;  %v5274_v42 = vpack.c.bf16 %v2392_v39, %v2388_v37  ;;  %v2396_v31 = vld [vmem:[#allocation10 + $0x13c8] sm:$0xff] }
 0x477   : > { %5233 = vmatpush1.bf16.msra.mxu0 %v5232_v27  ;;  %v2341_v27 = vld [vmem:[#allocation10 + $0x1210] sm:$0xff]  ;;  %v2400_v43 = vld [vmem:[#allocation10 + $0x13e8] sm:$0xff] }
 0x478   : > { %5553 = vmatpush1.bf16.msra.mxu1 %v5552_v52  ;;  %5235 = vmatprep.subr.bf16.mxu0 %v5234_v13  ;;  %v5570_v52 = vpack.c.bf16 %v2346_v9, %v2342_v7  ;;  %v2345_v13 = vld [vmem:[#allocation10 + $0x1230] sm:$0xff]  ;;  %v2371_v7 = vld [vmem:[#allocation10 + $0x1300] sm:$0xff]  ;;  %v5278_v0 = vpack.c.bf16 %v2400_v43, %v2396_v31 }
 0x479   : > { %5555 = vmatprep.subr.bf16.mxu1 %v5554_v38  ;;  %v2354_v38 = vld [vmem:[#allocation10 + $0x1278] sm:$0xff]  ;;  %v5572_v56 = vpack.c.bf16 %v2345_v13, %v2341_v27  ;;  %v2375_v9 = vld [vmem:[#allocation10 + $0x1320] sm:$0xff] }
 0x47a   : > { %v2382_v27 = vld [vmem:[#allocation10 + $0x1358] sm:$0xff]  ;;  %v5268_v13 = vpack.c.bf16 %v2375_v9, %v2371_v7  ;;  %v3391_v22 = vld [vmem:[#allocation16 + $0xb0] sm:$0xff]  ;;  %v2403_v43 = vld [vmem:[#allocation11] sm:$0xf] }
 0x47b   : > { %5237 = vmatpush1.bf16.msra.mxu0 %v5236_v40  ;;  %v2349_v40 = vld [vmem:[#allocation10 + $0x1250] sm:$0xff]  ;;  %v3395_v39 = vld [vmem:[#allocation16 + $0xd0] sm:$0xff] }
 0x47c   : > { %5557 = vmatpush1.bf16.msra.mxu1 %v5556_v24  ;;  %5239 = vmatprep.subr.bf16.mxu0 %v5238_v30  ;;  %v5574_v24 = vpack.c.bf16 %v2354_v38, %v2350_v33  ;;  %v2353_v30 = vld [vmem:[#allocation10 + $0x1270] sm:$0xff]  ;;  %v2379_v33 = vld [vmem:[#allocation10 + $0x1340] sm:$0xff] }
 0x47d   : > { %5559 = vmatprep.subr.bf16.mxu1 %v5558_v46  ;;  %v2362_v46 = vld [vmem:[#allocation10 + $0x12b8] sm:$0xff]  ;;  %v5576_v48 = vpack.c.bf16 %v2353_v30, %v2349_v40  ;;  %v2383_v38 = vld [vmem:[#allocation10 + $0x1360] sm:$0xff] }
 0x47e   : > { %v2390_v40 = vld [vmem:[#allocation10 + $0x1398] sm:$0xff]  ;;  %v5272_v30 = vpack.c.bf16 %v2383_v38, %v2379_v33 }
 0x47f   : > { %5241 = vmatpush1.bf16.msra.mxu0 %v5240_v50  ;;  %v2357_v50 = vld [vmem:[#allocation10 + $0x1290] sm:$0xff]  ;;  %v3394_v38 = vld [vmem:[#allocation16 + $0xc8] sm:$0xff] }
 0x480   : > { %5561 = vmatpush1.bf16.msra.mxu1 %v5560_v54  ;;  %5243 = vmatprep.subr.bf16.mxu0 %v5242_v25  ;;  %v5578_v54 = vpack.c.bf16 %v2362_v46, %v2358_v44  ;;  %v2361_v25 = vld [vmem:[#allocation10 + $0x12b0] sm:$0xff]  ;;  %v2387_v44 = vld [vmem:[#allocation10 + $0x1380] sm:$0xff] }
 0x481   : > { %5563 = vmatprep.subr.bf16.mxu1 %v5562_v17  ;;  %v2370_v17 = vld [vmem:[#allocation10 + $0x12f8] sm:$0xff]  ;;  %v5580_v2 = vpack.c.bf16 %v2361_v25, %v2357_v50  ;;  %v2391_v46 = vld [vmem:[#allocation10 + $0x13a0] sm:$0xff] }
 0x482   : > { %v2398_v50 = vld [vmem:[#allocation10 + $0x13d8] sm:$0xff]  ;;  %v5276_v25 = vpack.c.bf16 %v2391_v46, %v2387_v44 }
 0x483   : > { %5245 = vmatpush1.bf16.msra.mxu0 %v5244_v60  ;;  %v2365_v60 = vld [vmem:[#allocation10 + $0x12d0] sm:$0xff]  ;;  %v3398_v46 = vld [vmem:[#allocation16 + $0xe8] sm:$0xff] }
 0x484   : > { %5565 = vmatpush1.bf16.msra.mxu1 %v5564_v61  ;;  %5247 = vmatprep.subr.bf16.mxu0 %v5246_v62  ;;  %v5582_v61 = vpack.c.bf16 %v2370_v17, %v2366_v1  ;;  %v2369_v62 = vld [vmem:[#allocation10 + $0x12f0] sm:$0xff]  ;;  %v2395_v1 = vld [vmem:[#allocation10 + $0x13c0] sm:$0xff] }
 0x485   : > { %5567 = vmatprep.subr.bf16.mxu1 %v5566_v5  ;;  %v2378_v5 = vld [vmem:[#allocation10 + $0x1338] sm:$0xff]  ;;  %v5584_v12 = vpack.c.bf16 %v2369_v62, %v2365_v60  ;;  %v2399_v17 = vld [vmem:[#allocation10 + $0x13e0] sm:$0xff]  ;;  %v1756_v60 = vrot.slane %v6454_v11, 4 }
 0x486   : > { %v5280_v59 = vpack.c.bf16 %v2399_v17, %v2395_v1  ;;  %v3385_v26 = vld [vmem:[#allocation16 + $0x80] sm:$0xff] }
 0x487   : > { %5249 = vmatpush1.bf16.msra.mxu0 %v5248_v10  ;;  %v2373_v10 = vld [vmem:[#allocation10 + $0x1310] sm:$0xff]  ;;  %v1757_v62 = vsel %vm604_vm2, %v1751_v41, %v1756_v60  ;;  %v3390_v41 = vld [vmem:[#allocation16 + $0xa8] sm:$0xff] }
 0x488   : > { %5569 = vmatpush1.bf16.msra.mxu1 %v5568_v20  ;;  %5251 = vmatprep.subr.bf16.mxu0 %v5250_v35  ;;  %v5586_v20 = vpack.c.bf16 %v2378_v5, %v2374_v15  ;;  %v2377_v35 = vld [vmem:[#allocation10 + $0x1330] sm:$0xff]  ;;  %v5614_v5 = vpack.c.bf16 %v3386_v3, %v3385_v26 }
 0x489   : > { %5571 = vmatprep.subr.bf16.mxu1 %v5570_v52  ;;  %v2386_v52 = vld [vmem:[#allocation10 + $0x1378] sm:$0xff]  ;;  %v5588_v29 = vpack.c.bf16 %v2377_v35, %v2373_v10 }
 0x48a   : > { %v3369_v15 = vld [vmem:[#allocation16] sm:$0xff]  ;;  %v3374_v35 = vld [vmem:[#allocation16 + $0x28] sm:$0xff] }
 0x48b   : > { %5253 = vmatpush1.bf16.msra.mxu0 %v5252_v34  ;;  %v2381_v34 = vld [vmem:[#allocation10 + $0x1350] sm:$0xff] }
 0x48c   : > { %5573 = vmatpush1.bf16.msra.mxu1 %v5572_v56  ;;  %5255 = vmatprep.subr.bf16.mxu0 %v5254_v36  ;;  %v5590_v56 = vpack.c.bf16 %v2386_v52, %v2382_v27  ;;  %v2385_v36 = vld [vmem:[#allocation10 + $0x1370] sm:$0xff]  ;;  %v3375_v52 = vld [vmem:[#allocation16 + $0x30] sm:$0xff] }
 0x48d   : > { %5575 = vmatprep.subr.bf16.mxu1 %v5574_v24  ;;  %v2394_v24 = vld [vmem:[#allocation10 + $0x13b8] sm:$0xff]  ;;  %v5592_v23 = vpack.c.bf16 %v2385_v36, %v2381_v34  ;;  %v3392_v27 = vld [vmem:[#allocation16 + $0xb8] sm:$0xff] }
 0x48e   : > { %v3389_v9 = vld [vmem:[#allocation16 + $0xa0] sm:$0xff]  ;;  %v3378_v36 = vld [vmem:[#allocation16 + $0x48] sm:$0xff] }
 0x48f   : > { %5257 = vmatpush1.bf16.msra.mxu0 %v5256_v47  ;;  %v2389_v47 = vld [vmem:[#allocation10 + $0x1390] sm:$0xff]  ;;  %v5622_v10 = vpack.c.bf16 %v3390_v41, %v3389_v9 }
 0x490   : > { %5577 = vmatpush1.bf16.msra.mxu1 %v5576_v48  ;;  %5259 = vmatprep.subr.bf16.mxu0 %v5258_v49  ;;  %v5594_v48 = vpack.c.bf16 %v2394_v24, %v2390_v40  ;;  %v2393_v49 = vld [vmem:[#allocation10 + $0x13b0] sm:$0xff]  ;;  %v3379_v24 = vld [vmem:[#allocation16 + $0x50] sm:$0xff] }
 0x491   : > { %5579 = vmatprep.subr.bf16.mxu1 %v5578_v54  ;;  %v2402_v54 = vld [vmem:[#allocation10 + $0x13f8] sm:$0xff]  ;;  %v5596_v63 = vpack.c.bf16 %v2393_v49, %v2389_v47  ;;  %v3396_v40 = vld [vmem:[#allocation16 + $0xd8] sm:$0xff] }
 0x492   : > { %v3393_v33 = vld [vmem:[#allocation16 + $0xc0] sm:$0xff]  ;;  %v3382_v49 = vld [vmem:[#allocation16 + $0x68] sm:$0xff] }
 0x493   : > { %5261 = vmatpush1.bf16.msra.mxu0 %v5260_v21  ;;  %v5598_v21 = vpack.c.bf16 %v2402_v54, %v2398_v50  ;;  %v3377_v34 = vld [vmem:[#allocation16 + $0x40] sm:$0xff]  ;;  %v2408_v50 = vrot.slane %v2403_v43, %v940_v53  ;;  %v2416_v54 = vrot.slane %v2403_v43, %v948_v55 }
 0x494   : > { %5581 = vmatpush1.bf16.msra.mxu1 %v5580_v2  ;;  %5263 = vmatprep.subr.bf16.mxu0 %v5262_v16  ;;  %v2397_v2 = vld [vmem:[#allocation10 + $0x13d0] sm:$0xff]  ;;  %v5632_v37 = vpack.c.bf16 %v3378_v36, %v3377_v34  ;;  %v3494_v36 = vld [vmem:[#allocation16 + $0x1a8] sm:$0xff] }
 0x495   : > { %5583 = vmatprep.subr.bf16.mxu1 %v5582_v61  ;;  %v2401_v16 = vld [vmem:[#allocation10 + $0x13f0] sm:$0xff]  ;;  %v1758_v61 = vsel %vm604_vm2, %v1754_v28, %v1756_v60 }
 0x496   : > { %v5600_v19 = vpack.c.bf16 %v2401_v16, %v2397_v2  ;;  %v3388_v28 = vld [vmem:[#allocation16 + $0x98] sm:$0xff]  ;;  %v3397_v44 = vld [vmem:[#allocation16 + $0xe0] sm:$0xff] }
 0x497   : > { %5265 = vmatpush1.bf16.msra.mxu0 %v5264_v18  ;;  %v3370_v18 = vld [vmem:[#allocation16 + $0x8] sm:$0xff]  ;;  %v3381_v47 = vld [vmem:[#allocation16 + $0x60] sm:$0xff]  ;;  %v3476_v34 = vld [vmem:[#allocation16 + $0x118] sm:$0xff] }
 0x498   : > { %5585 = vmatpush1.bf16.msra.mxu1 %v5584_v12  ;;  %5267 = vmatprep.subr.bf16.mxu0 %v5266_v6  ;;  %v5616_v8 = vpack.c.bf16 %v3370_v18, %v3369_v15  ;;  %v3387_v12 = vld [vmem:[#allocation16 + $0x90] sm:$0xff]  ;;  %v3372_v6 = vld [vmem:[#allocation16 + $0x18] sm:$0xff]  ;;  %v5640_v31 = vpack.c.bf16 %v3382_v49, %v3381_v47  ;;  %v3497_v47 = vld [vmem:[#allocation16 + $0x1c0] sm:$0xff] }
 0x499   : > { %5587 = vmatprep.subr.bf16.mxu1 %v5586_v20  ;;  %v5618_v7 = vpack.c.bf16 %v3388_v28, %v3387_v12  ;;  %v3373_v20 = vld [vmem:[#allocation16 + $0x20] sm:$0xff] }
 0x49a   : > { %v5624_v14 = vpack.c.bf16 %v3374_v35, %v3373_v20  ;;  %v3490_v20 = vld [vmem:[#allocation16 + $0x188] sm:$0xff]  ;;  %v3207_v35 = vld [vmem:[#allocation13] sm:$0x7f] }
 0x49b   : > { %5269 = vmatpush1.bf16.msra.mxu0 %v5268_v13  ;;  %v5626_v13 = vpack.c.bf16 %v3392_v27, %v3391_v22  ;;  %v3473_v22 = vld [vmem:[#allocation16 + $0x100] sm:$0xff]  ;;  %v3474_v27 = vld [vmem:[#allocation16 + $0x108] sm:$0xff] }
 0x49c   : > { %5589 = vmatpush1.bf16.msra.mxu1 %v5588_v29  ;;  %5271 = vmatprep.subr.bf16.mxu0 %v5270_v32  ;;  %v3376_v29 = vld [vmem:[#allocation16 + $0x38] sm:$0xff] }
 0x49d   : > { %5591 = vmatprep.subr.bf16.mxu1 %v5590_v56  ;;  %v5628_v32 = vpack.c.bf16 %v3376_v29, %v3375_v52  ;;  %v5630_v56 = vpack.c.bf16 %v3394_v38, %v3393_v33  ;;  %v3491_v52 = vld [vmem:[#allocation16 + $0x190] sm:$0xff]  ;;  %v3289_v29 = vld [vmem:[#allocation14] sm:$0x7f] }
 0x49e   : > { %v3475_v38 = vld [vmem:[#allocation16 + $0x110] sm:$0xff] }
 0x49f   : > { %5273 = vmatpush1.bf16.msra.mxu0 %v5272_v30  ;;  %v5634_v30 = vpack.c.bf16 %v3396_v40, %v3395_v39  ;;  %v3477_v40 = vld [vmem:[#allocation16 + $0x120] sm:$0xff] }
 0x4a0   : > { %5593 = vmatpush1.bf16.msra.mxu1 %v5592_v23  ;;  %5275 = vmatprep.subr.bf16.mxu0 %v5274_v42  ;;  %v3380_v23 = vld [vmem:[#allocation16 + $0x58] sm:$0xff] }
 0x4a1   : > { %5595 = vmatprep.subr.bf16.mxu1 %v5594_v48  ;;  %v5636_v42 = vpack.c.bf16 %v3380_v23, %v3379_v24  ;;  %v5638_v48 = vpack.c.bf16 %v3398_v46, %v3397_v44  ;;  %v3478_v24 = vld [vmem:[#allocation16 + $0x128] sm:$0xff]  ;;  %v3496_v23 = vld [vmem:[#allocation16 + $0x1b8] sm:$0xff]  ;;  %v3479_v44 = vld [vmem:[#allocation16 + $0x130] sm:$0xff] }
 0x4a2   : > { %v3480_v46 = vld [vmem:[#allocation16 + $0x138] sm:$0xff] }
 0x4a3   : > { %5277 = vmatpush1.bf16.msra.mxu0 %v5276_v25  ;;  %v2412_v25 = vrot.slane %v2403_v43, %v944_v57  ;;  %v5660_v49 = vpack.c.bf16 %v3480_v46, %v3479_v44  ;;  %v3693_v44 = vld [vmem:[#allocation16 + $0x310] sm:$0xff]  ;;  %v3694_v46 = vld [vmem:[#allocation16 + $0x318] sm:$0xff] }
 0x4a4   : > { %5597 = vmatpush1.bf16.msra.mxu1 %v5596_v63  ;;  %5279 = vmatprep.subr.bf16.mxu0 %v5278_v0  ;;  %v2420_v63 = vrot.slane %v2403_v43, %v952_v58  ;;  %v3481_v43 = vld [vmem:[#allocation16 + $0x140] sm:$0xff] }
 0x4a5   : > { %5599 = vmatprep.subr.bf16.mxu1 %v5598_v21 }
 0x4a7   : > { %5281 = vmatpush1.bf16.msra.mxu0 %v5280_v59 }
 0x4a8   : > { %5601 = vmatpush1.bf16.msra.mxu1 %v5600_v19  ;;  %5615 = vmatprep.subr.bf16.mxu0 %v5614_v5 }
 0x4aa   : > { %2798 = vmatmul.mubr.f32.vlgmr.msra.gmra.mrb[8].mxu0 %v7076_v45 }
 0x4ab   : > { %3183 = vmatmul.mubr.f32.vlgmr.msra.gmra.mrb[16].mxu1 %v7076_v45  ;;  %2803 = vmatprep.mubr.f32.mxu0 %v1758_v61  ;;  %v3371_v45 = vld [vmem:[#allocation16 + $0x10] sm:$0xff] }
 0x4ac   : > { %3188 = vmatprep.mubr.f32.mxu1 %v1758_v61  ;;  %5617 = vmatpush3.bf16.msra.mxu0 %v5616_v8  ;;  %v5620_v4 = vpack.c.bf16 %v3372_v6, %v3371_v45 }
 0x4ad   : > { %5619 = vmatprep.subr.bf16.mxu0 %v5618_v7 }
 0x4ae   : > { %2804 = vmatmul.mubr.f32.gmra.mrb[10].mxu0 %v1757_v62 }
 0x4af   : > { %3189 = vmatmul.mubr.f32.gmra.mrb[18].mxu1 %v1757_v62 }
 0x4b0   : > { %3282 = vmatprep.mubr.f32.mxu1 %v6454_v11  ;;  %5621 = vmatpush3.bf16.msra.mxu0 %v5620_v4 }
 0x4b1   : > { %5623 = vmatprep.subr.bf16.mxu0 %v5622_v10  ;;  %v3489_v10 = vld [vmem:[#allocation16 + $0x180] sm:$0xff] }
 0x4b4   : > { %5625 = vmatpush3.bf16.msra.mxu0 %v5624_v14  ;;  %v5646_v14 = vpack.c.bf16 %v3490_v20, %v3489_v10  ;;  %v3583_v10 = vld [vmem:[#allocation16 + $0x200] sm:$0xff]  ;;  %v3584_v20 = vld [vmem:[#allocation16 + $0x208] sm:$0xff] }
 0x4b5   : > { %5627 = vmatprep.subr.bf16.mxu0 %v5626_v13  ;;  %v3492_v13 = vld [vmem:[#allocation16 + $0x198] sm:$0xff] }
 0x4b6   : > { %v5650_v33 = vpack.c.bf16 %v3492_v13, %v3491_v52  ;;  %v3692_v52 = vld [vmem:[#allocation16 + $0x308] sm:$0xff]  ;;  %v3601_v13 = vld [vmem:[#allocation16 + $0x290] sm:$0xff] }
 0x4b8   : > { %5629 = vmatpush3.bf16.msra.mxu0 %v5628_v32  ;;  %v5648_v32 = vpack.c.bf16 %v3474_v27, %v3473_v22 }
 0x4b9   : > { %5631 = vmatprep.subr.bf16.mxu0 %v5630_v56  ;;  %v3493_v56 = vld [vmem:[#allocation16 + $0x1a0] sm:$0xff] }
 0x4ba   : > { %v5654_v39 = vpack.c.bf16 %v3494_v36, %v3493_v56  ;;  %v3585_v56 = vld [vmem:[#allocation16 + $0x210] sm:$0xff]  ;;  %v3586_v36 = vld [vmem:[#allocation16 + $0x218] sm:$0xff] }
 0x4bc   : > { %5633 = vmatpush3.bf16.msra.mxu0 %v5632_v37  ;;  %v5652_v37 = vpack.c.bf16 %v3476_v34, %v3475_v38  ;;  %v3709_v38 = vld [vmem:[#allocation16 + $0x390] sm:$0xff]  ;;  %v3710_v34 = vld [vmem:[#allocation16 + $0x398] sm:$0xff] }
 0x4bd   : > { %5635 = vmatprep.subr.bf16.mxu0 %v5634_v30  ;;  %v3495_v30 = vld [vmem:[#allocation16 + $0x1b0] sm:$0xff] }
 0x4c0   : > { %5637 = vmatpush3.bf16.msra.mxu0 %v5636_v42  ;;  %v5658_v42 = vpack.c.bf16 %v3496_v23, %v3495_v30  ;;  %v3603_v30 = vld [vmem:[#allocation16 + $0x2a0] sm:$0xff]  ;;  %v3604_v23 = vld [vmem:[#allocation16 + $0x2a8] sm:$0xff] }
 0x4c1   : > { %5639 = vmatprep.subr.bf16.mxu0 %v5638_v48  ;;  %v3498_v48 = vld [vmem:[#allocation16 + $0x1c8] sm:$0xff] }
 0x4c4   : > { %5641 = vmatpush3.bf16.msra.mxu0 %v5640_v31  ;;  %v5662_v31 = vpack.c.bf16 %v3498_v48, %v3497_v47  ;;  %v5684_v47 = vpack.c.bf16 %v3586_v36, %v3585_v56  ;;  %v3711_v48 = vld [vmem:[#allocation16 + $0x3a0] sm:$0xff]  ;;  %v3720_v36 = vld [vmem:[#allocation16 + $0x3e8] sm:$0xff] }
 0x4c5   : > { %v3719_v56 = vld [vmem:[#allocation16 + $0x3e0] sm:$0xff] }
 0x57d   : > { %v2799_v0 = vpop.f32.mrb[8].mxu0 }
 0x57e   : > { %v5854_v1 = vadd.f32 %v2799_v0, %v2408_v50  ;;  %v3184_v17 = vpop.f32.mrb[16].mxu1  ;;  %v2801_v21 = vpop.f32.mrb[9].mxu0 }
 0x57f   : > { %v5858_v2 = vadd.f32 %v3184_v17, %v2416_v54  ;;  %v5855_v16 = vadd.f32 %v2801_v21, %v2412_v25  ;;  %v3186_v59 = vpop.f32.mrb[17].mxu1  ;;  %v3484_v17 = vld [vmem:[#allocation16 + $0x158] sm:$0xff] }
 0x580   : > { %v3195_v19 = vmax.f32 %v5854_v1, 0.0  ;;  %v5859_v60 = vadd.f32 %v3186_v59, %v2420_v63  ;;  %v3483_v1 = vld [vmem:[#allocation16 + $0x150] sm:$0xff] }
 0x581   : > { %v3197_v61 = vmax.f32 %v5858_v2, 0.0  ;;  %v3196_v53 = vmax.f32 %v5855_v16, 0.0  ;;  %v2805_v62 = vpop.f32.mrb[10].mxu0  ;;  %v5668_v21 = vpack.c.bf16 %v3484_v17, %v3483_v1  ;;  %v3501_v2 = vld [vmem:[#allocation16 + $0x1e0] sm:$0xff]  ;;  %v3502_v16 = vld [vmem:[#allocation16 + $0x1e8] sm:$0xff] }
 0x582   : > { %v3198_v26 = vmax.f32 %v5859_v60, 0.0  ;;  %v5856_v55 = vadd.f32 %v2805_v62, %v2408_v50  ;;  %v3190_v3 = vpop.f32.mrb[18].mxu1  ;;  %v2807_v15 = vpop.f32.mrb[11].mxu0  ;;  %v3482_v50 = vld [vmem:[#allocation16 + $0x148] sm:$0xff]  ;;  %v5670_v59 = vpack.c.bf16 %v3502_v16, %v3501_v2  ;;  %v3400_v62 = vld [vmem:[#allocation16 + $0xf8] sm:$0xff]  ;;  %v3695_v17 = vld [vmem:[#allocation16 + $0x320] sm:$0xff] }
 0x583   : > { %v3203_v57 = vmax.f32 %v3195_v19, %v3197_v61  ;;  %v5860_v5 = vadd.f32 %v3190_v3, %v2416_v54  ;;  %v5857_v51 = vadd.f32 %v2807_v15, %v2412_v25  ;;  %v3192_v58 = vpop.f32.mrb[19].mxu1  ;;  %v3499_v54 = vld [vmem:[#allocation16 + $0x1d0] sm:$0xff]  ;;  %v3500_v25 = vld [vmem:[#allocation16 + $0x1d8] sm:$0xff]  ;;  %v3485_v19 = vld [vmem:[#allocation16 + $0x160] sm:$0xff] }
 0x584   : > { %v3204_v18 = vmax.f32 %v3196_v53, %v3198_v26  ;;  %v3199_v8 = vmax.f32 %v5856_v55, 0.0  ;;  %v5861_v12 = vadd.f32 %v3192_v58, %v2420_v63  ;;  %v5664_v63 = vpack.c.bf16 %v3482_v50, %v3481_v43  ;;  %v3486_v60 = vld [vmem:[#allocation16 + $0x168] sm:$0xff]  ;;  %v3399_v53 = vld [vmem:[#allocation16 + $0xf0] sm:$0xff]  ;;  %v3384_v3 = vld [vmem:[#allocation16 + $0x78] sm:$0xff] }
 0x585   : > { %v3201_v28 = vmax.f32 %v5860_v5, 0.0  ;;  %v3200_v45 = vmax.f32 %v5857_v51, 0.0  ;;  %v5666_v0 = vpack.c.bf16 %v3500_v25, %v3499_v54  ;;  %v5672_v61 = vpack.c.bf16 %v3486_v60, %v3485_v19  ;;  %v3383_v55 = vld [vmem:[#allocation16 + $0x70] sm:$0xff]  ;;  %v3504_v5 = vld [vmem:[#allocation16 + $0x1f8] sm:$0xff]  ;;  %v3587_v50 = vld [vmem:[#allocation16 + $0x220] sm:$0xff] }
 0x586   : > { %v3202_v6 = vmax.f32 %v5861_v12, 0.0  ;;  %v5642_v26 = vpack.c.bf16 %v3400_v62, %v3399_v53  ;;  %v5644_v15 = vpack.c.bf16 %v3384_v3, %v3383_v55  ;;  %v3487_v58 = vld [vmem:[#allocation16 + $0x170] sm:$0xff]  ;;  %v3599_v12 = vld [vmem:[#allocation16 + $0x280] sm:$0xff]  ;;  %v5686_v43 = vpack.c.bf16 %v3604_v23, %v3603_v30  ;;  %v3588_v54 = vld [vmem:[#allocation16 + $0x228] sm:$0xff] }
 0x587   : > { %v3205_v7 = vmax.f32 %v3199_v8, %v3201_v28  ;;  %v3600_v28 = vld [vmem:[#allocation16 + $0x288] sm:$0xff]  ;;  %v5716_v25 = vpack.c.bf16 %v3694_v46, %v3693_v44  ;;  %v5688_v2 = vpack.c.bf16 %v3588_v54, %v3587_v50  ;;  %v3713_v16 = vld [vmem:[#allocation16 + $0x3b0] sm:$0xff]  ;;  %v3607_v62 = vld [vmem:[#allocation16 + $0x2c0] sm:$0xff] }
 0x588   : > { %v3206_v4 = vmax.f32 %v3200_v45, %v3202_v6  ;;  %5643 = vmatprep.subr.bf16.mxu0 %v5642_v26  ;;  %v5678_v45 = vpack.c.bf16 %v3600_v28, %v3599_v12  ;;  %v3707_v6 = vld [vmem:[#allocation16 + $0x380] sm:$0xff]  ;;  %v3589_v60 = vld [vmem:[#allocation16 + $0x230] sm:$0xff]  ;;  %v3608_v26 = vld [vmem:[#allocation16 + $0x2c8] sm:$0xff] }
 0x589   : > { %v5605_v9 = vpack.c.bf16 %v3205_v7, %v3203_v57  ;;  %v3503_v57 = vld [vmem:[#allocation16 + $0x1f0] sm:$0xff]  ;;  %5645 = vmatpush3.bf16.msra.mxu0 %v5644_v15  ;;  %v3708_v7 = vld [vmem:[#allocation16 + $0x388] sm:$0xff]  ;;  %v3698_v15 = vld [vmem:[#allocation16 + $0x338] sm:$0xff] }
 0x58a   : > { %v5602_v41 = vpack.c.bf16 %v3206_v4, %v3204_v18  ;;  %v5674_v51 = vpack.c.bf16 %v3504_v5, %v3503_v57  ;;  %v3488_v18 = vld [vmem:[#allocation16 + $0x178] sm:$0xff]  ;;  %5679 = vmatprep.subr.bf16.mxu0 %v5678_v45  ;;  %v5710_v4 = vpack.c.bf16 %v3708_v7, %v3707_v6  ;;  %v3697_v3 = vld [vmem:[#allocation16 + $0x330] sm:$0xff]  ;;  %v3715_v5 = vld [vmem:[#allocation16 + $0x3c0] sm:$0xff] }
 0x58b   : > { %v5676_v8 = vpack.c.bf16 %v3488_v18, %v3487_v58  ;;  %v5694_v58 = vpack.c.bf16 %v3608_v26, %v3607_v62  ;;  %v3591_v18 = vld [vmem:[#allocation16 + $0x240] sm:$0xff]  ;;  %v5724_v12 = vpack.c.bf16 %v3698_v15, %v3697_v3  ;;  %v3609_v28 = vld [vmem:[#allocation16 + $0x2d0] sm:$0xff]  ;;  %v3610_v45 = vld [vmem:[#allocation16 + $0x2d8] sm:$0xff] }
 0x58c   : > { %5604 = vmatprep.subr.msk.bf16.mxu1 %vm5603_vm9, %v5602_v41  ;;  %v3699_v7 = vld [vmem:[#allocation16 + $0x340] sm:$0xff]  ;;  %v3613_v30 = vld [vmem:[#allocation16 + $0x2f0] sm:$0xff]  ;;  %v3614_v23 = vld [vmem:[#allocation16 + $0x2f8] sm:$0xff] }
 0x58d   : > { %5607 = vmatpush1.bf16.msk.msra.mxu1 %vm5603_vm9, %v5605_v9  ;;  %v3704_v44 = vld [vmem:[#allocation16 + $0x368] sm:$0xff]  ;;  %v3815_v54 = vld [vmem:[#allocation16 + $0x480] sm:$0xff]  ;;  %v3925_v15 = vld [vmem:[#allocation16 + $0x590] sm:$0xff] }
 0x58e   : > { %5610 = vmatprep.subr.msk.bf16.mxu1 %vm5603_vm9, %v5602_v41  ;;  %v3907_v26 = vld [vmem:[#allocation16 + $0x500] sm:$0xff] }
 0x590   : > { %4368 = vmatmul.mubr.msk.f32.vlgmr.msra.gmra.mrb[20].mxu1 %vm3208_vm10, %v3207_v35 }
 0x591   : > { %5613 = vmatpush1.bf16.msk.msra.mxu1 %vm5603_vm9, %v5605_v9  ;;  %3357 = vmatprep.mubr.f32.mxu1 %v6454_v11  ;;  %v5656_v11 = vpack.c.bf16 %v3478_v24, %v3477_v40 }
 0x592   : > { %5647 = vmatprep.subr.bf16.mxu1 %v5646_v14  ;;  %v3691_v14 = vld [vmem:[#allocation16 + $0x300] sm:$0xff] }
 0x593   : > { %v5712_v40 = vpack.c.bf16 %v3692_v52, %v3691_v14  ;;  %v3594_v14 = vld [vmem:[#allocation16 + $0x258] sm:$0xff]  ;;  %v3611_v52 = vld [vmem:[#allocation16 + $0x2e0] sm:$0xff] }
 0x594   : > { %4371 = vmatmul.mubr.msk.f32.vlgmr.msra.gmra.mrb[22].mxu1 %vm3208_vm10, %v3289_v29  ;;  %v3602_v29 = vld [vmem:[#allocation16 + $0x298] sm:$0xff] }
 0x595   : > { %5649 = vmatpush3.bf16.msra.mxu1 %v5648_v32  ;;  %v5682_v24 = vpack.c.bf16 %v3602_v29, %v3601_v13  ;;  %v3612_v13 = vld [vmem:[#allocation16 + $0x2e8] sm:$0xff] }
 0x596   : > { %5651 = vmatprep.subr.bf16.mxu1 %v5650_v33  ;;  %v5680_v33 = vpack.c.bf16 %v3584_v20, %v3583_v10  ;;  %v3718_v10 = vld [vmem:[#allocation16 + $0x3d8] sm:$0xff]  ;;  %v5698_v20 = vpack.c.bf16 %v3610_v45, %v3609_v28  ;;  %v3819_v28 = vld [vmem:[#allocation16 + $0x4a0] sm:$0xff]  ;;  %v3820_v45 = vld [vmem:[#allocation16 + $0x4a8] sm:$0xff] }
 0x599   : > { %5653 = vmatpush3.bf16.msra.mxu1 %v5652_v37 }
 0x59a   : > { %5655 = vmatprep.subr.bf16.mxu1 %v5654_v39 }
 0x59d   : > { %5657 = vmatpush3.bf16.msra.mxu1 %v5656_v11 }
 0x59e   : > { %5659 = vmatprep.subr.bf16.mxu1 %v5658_v42  ;;  %v5714_v42 = vpack.c.bf16 %v3710_v34, %v3709_v38  ;;  %v3702_v38 = vld [vmem:[#allocation16 + $0x358] sm:$0xff] }
 0x5a1   : > { %5661 = vmatpush3.bf16.msra.mxu1 %v5660_v49  ;;  %v3712_v49 = vld [vmem:[#allocation16 + $0x3a8] sm:$0xff] }
 0x5a2   : > { %5663 = vmatprep.subr.bf16.mxu1 %v5662_v31  ;;  %v5718_v1 = vpack.c.bf16 %v3712_v49, %v3711_v48  ;;  %v3722_v48 = vld [vmem:[#allocation16 + $0x3f8] sm:$0xff]  ;;  %v5706_v49 = vpack.c.bf16 %v3614_v23, %v3613_v30 }
 0x5a3   : > { %v3806_v30 = vld [vmem:[#allocation16 + $0x438] sm:$0xff] }
 0x5a5   : > { %5665 = vmatpush3.bf16.msra.mxu1 %v5664_v63  ;;  %v3605_v63 = vld [vmem:[#allocation16 + $0x2b0] sm:$0xff] }
 0x5a6   : > { %5667 = vmatprep.subr.bf16.mxu1 %v5666_v0  ;;  %v3606_v0 = vld [vmem:[#allocation16 + $0x2b8] sm:$0xff] }
 0x5a7   : > { %v5690_v19 = vpack.c.bf16 %v3606_v0, %v3605_v63  ;;  %v3705_v0 = vld [vmem:[#allocation16 + $0x370] sm:$0xff] }
 0x5a9   : > { %5669 = vmatpush3.bf16.msra.mxu1 %v5668_v21  ;;  %v3696_v21 = vld [vmem:[#allocation16 + $0x328] sm:$0xff] }
 0x5aa   : > { %5671 = vmatprep.subr.bf16.mxu1 %v5670_v59  ;;  %v3714_v59 = vld [vmem:[#allocation16 + $0x3b8] sm:$0xff]  ;;  %v5720_v53 = vpack.c.bf16 %v3696_v21, %v3695_v17  ;;  %v3923_v21 = vld [vmem:[#allocation16 + $0x580] sm:$0xff] }
 0x5ab   : > { %v5722_v55 = vpack.c.bf16 %v3714_v59, %v3713_v16  ;;  %v3799_v59 = vld [vmem:[#allocation16 + $0x400] sm:$0xff] }
 0x5ad   : > { %5673 = vmatpush3.bf16.msra.mxu1 %v5672_v61  ;;  %v3590_v61 = vld [vmem:[#allocation16 + $0x238] sm:$0xff] }
 0x5ae   : > { %5675 = vmatprep.subr.bf16.mxu1 %v5674_v51  ;;  %v5692_v57 = vpack.c.bf16 %v3590_v61, %v3589_v60  ;;  %v3716_v51 = vld [vmem:[#allocation16 + $0x3c8] sm:$0xff]  ;;  %v3817_v61 = vld [vmem:[#allocation16 + $0x490] sm:$0xff] }
 0x5af   : > { %v5726_v6 = vpack.c.bf16 %v3716_v51, %v3715_v5 }
 0x5b1   : > { %5677 = vmatpush3.bf16.msra.mxu1 %v5676_v8  ;;  %v3592_v8 = vld [vmem:[#allocation16 + $0x248] sm:$0xff] }
 0x5b2   : > { %5711 = vmatprep.subr.bf16.mxu1 %v5710_v4  ;;  %v3700_v4 = vld [vmem:[#allocation16 + $0x348] sm:$0xff] }
 0x663   : > { %v3284_v9 = vpop.f32.mrb[20].mxu1 }
 0x664   : > { %v3286_v41 = vpop.f32.mrb[21].mxu1 }
 0x667   : > { %v3359_v35 = vpop.f32.mrb[22].mxu1 }
 0x668   : > { %v7132_v22 = vmax.f32 %v3284_v9, %v3359_v35  ;;  %v3361_v27 = vpop.f32.mrb[23].mxu1  ;;  %v5696_v9 = vpack.c.bf16 %v3592_v8, %v3591_v18  ;;  %v3593_v35 = vld [vmem:[#allocation16 + $0x250] sm:$0xff]  ;;  %v3802_v18 = vld [vmem:[#allocation16 + $0x418] sm:$0xff] }
 0x669   : > { %v7134_v32 = vmax.f32 %v3286_v41, %v3361_v27  ;;  %v3717_v41 = vld [vmem:[#allocation16 + $0x3d0] sm:$0xff]  ;;  %v5728_v27 = vpack.c.bf16 %v3700_v4, %v3699_v7  ;;  %v5700_v34 = vpack.c.bf16 %v3594_v14, %v3593_v35  ;;  %v3928_v35 = vld [vmem:[#allocation16 + $0x5a8] sm:$0xff]  ;;  %v5750_v14 = vpack.c.bf16 %v3820_v45, %v3819_v28  ;;  %v3830_v45 = vld [vmem:[#allocation16 + $0x4f8] sm:$0xff] }
 0x66a   : > { %3366 = vst [vmem:[%s559_s29] sm:$0x7f] %v7132_v22  ;;  %v3507_v11 = vrot.slane %v7132_v22, 1  ;;  %v5730_v29 = vpack.c.bf16 %v3718_v10, %v3717_v41  ;;  %v3615_v5 = vrot.slane %v7132_v22, 2  ;;  %v3909_v4 = vld [vmem:[#allocation16 + $0x510] sm:$0xff] }
 0x66b   : > { %3367 = vst [vmem:[%s559_s29 + $0x8] sm:$0x7f] %v7134_v32  ;;  %3465 = vmatprep.mubr.f32.mxu0 %v7134_v32  ;;  %v3508_v37 = vrot.slane %v7134_v32, 1  ;;  %v3616_v39 = vrot.slane %v7134_v32, 2  ;;  %v3724_v31 = vrot.slane %v7134_v32, 3  ;;  %v3832_v8 = vrot.slane %v7134_v32, 4 }
 0x66c   : > { %3466 = vmatmul.mubr.f32.vlgmr.msra.gmra.mrb[12].mxu0 %v7132_v22  ;;  %v3940_v41 = vrot.slane %v7134_v32, 5  ;;  %v3829_v28 = vld [vmem:[#allocation16 + $0x4f0] sm:$0xff] }
 0x66d   : > { %5681 = vmatpush3.bf16.msra.mxu0 %v5680_v33  ;;  %3575 = vmatprep.mubr.f32.mxu1 %v3508_v37  ;;  %v3701_v33 = vld [vmem:[#allocation16 + $0x350] sm:$0xff]  ;;  %v5702_v37 = vpack.c.bf16 %v3612_v13, %v3611_v52  ;;  %v3804_v52 = vld [vmem:[#allocation16 + $0x428] sm:$0xff] }
 0x66e   : > { %3683 = vmatprep.mubr.f32.mxu0 %v3616_v39  ;;  %3576 = vmatmul.mubr.f32.vlgmr.msra.gmra.mrb[24].mxu1 %v3507_v11  ;;  %v3595_v39 = vld [vmem:[#allocation16 + $0x260] sm:$0xff]  ;;  %v5734_v11 = vpack.c.bf16 %v3720_v36, %v3719_v56  ;;  %v3912_v56 = vld [vmem:[#allocation16 + $0x528] sm:$0xff] }
 0x66f   : > { %5713 = vmatpush3.bf16.msra.mxu1 %v5712_v40  ;;  %5683 = vmatprep.subr.bf16.mxu0 %v5682_v24  ;;  %v3596_v40 = vld [vmem:[#allocation16 + $0x268] sm:$0xff]  ;;  %v5732_v24 = vpack.c.bf16 %v3702_v38, %v3701_v33  ;;  %v3822_v33 = vld [vmem:[#allocation16 + $0x4b8] sm:$0xff] }
 0x670   : > { %3791 = vmatprep.mubr.f32.mxu1 %v3724_v31  ;;  %5715 = vmatprep.subr.bf16.mxu1 %v5714_v42  ;;  %v3703_v42 = vld [vmem:[#allocation16 + $0x360] sm:$0xff]  ;;  %v5704_v46 = vpack.c.bf16 %v3596_v40, %v3595_v39  ;;  %v3597_v31 = vld [vmem:[#allocation16 + $0x270] sm:$0xff]  ;;  %v3930_v39 = vld [vmem:[#allocation16 + $0x5b8] sm:$0xff] }
 0x671   : > { %5685 = vmatpush3.bf16.msra.mxu0 %v5684_v47  ;;  %v3721_v47 = vld [vmem:[#allocation16 + $0x3f0] sm:$0xff]  ;;  %v5736_v50 = vpack.c.bf16 %v3704_v44, %v3703_v42  ;;  %v3824_v42 = vld [vmem:[#allocation16 + $0x4c8] sm:$0xff] }
 0x672   : > { %5687 = vmatprep.subr.bf16.mxu0 %v5686_v43  ;;  %v3598_v43 = vld [vmem:[#allocation16 + $0x278] sm:$0xff]  ;;  %v5738_v63 = vpack.c.bf16 %v3722_v48, %v3721_v47 }
 0x673   : > { %5717 = vmatpush3.bf16.msra.mxu1 %v5716_v25  ;;  %v3816_v25 = vld [vmem:[#allocation16 + $0x488] sm:$0xff]  ;;  %v5708_v17 = vpack.c.bf16 %v3598_v43, %v3597_v31  ;;  %v3914_v47 = vld [vmem:[#allocation16 + $0x538] sm:$0xff] }
 0x674   : > { %5719 = vmatprep.subr.bf16.mxu1 %v5718_v1  ;;  %v3706_v1 = vld [vmem:[#allocation16 + $0x378] sm:$0xff]  ;;  %v5742_v16 = vpack.c.bf16 %v3816_v25, %v3815_v54  ;;  %v3932_v31 = vld [vmem:[#allocation16 + $0x5c8] sm:$0xff] }
 0x675   : > { %5689 = vmatpush3.bf16.msra.mxu0 %v5688_v2  ;;  %v3924_v2 = vld [vmem:[#allocation16 + $0x588] sm:$0xff]  ;;  %v5740_v60 = vpack.c.bf16 %v3706_v1, %v3705_v0  ;;  %v3826_v0 = vld [vmem:[#allocation16 + $0x4d8] sm:$0xff] }
 0x676   : > { %5691 = vmatprep.subr.bf16.mxu0 %v5690_v19  ;;  %v3800_v19 = vld [vmem:[#allocation16 + $0x408] sm:$0xff]  ;;  %v5774_v62 = vpack.c.bf16 %v3924_v2, %v3923_v21 }
 0x677   : > { %5721 = vmatpush3.bf16.msra.mxu1 %v5720_v53  ;;  %v3818_v53 = vld [vmem:[#allocation16 + $0x498] sm:$0xff]  ;;  %v5744_v3 = vpack.c.bf16 %v3800_v19, %v3799_v59  ;;  %v3808_v54 = vld [vmem:[#allocation16 + $0x448] sm:$0xff] }
 0x678   : > { %5723 = vmatprep.subr.bf16.mxu1 %v5722_v55  ;;  %v3908_v55 = vld [vmem:[#allocation16 + $0x508] sm:$0xff]  ;;  %v5746_v51 = vpack.c.bf16 %v3818_v53, %v3817_v61  ;;  %v3934_v59 = vld [vmem:[#allocation16 + $0x5d8] sm:$0xff] }
 0x679   : > { %5693 = vmatpush3.bf16.msra.mxu0 %v5692_v57  ;;  %v3926_v57 = vld [vmem:[#allocation16 + $0x598] sm:$0xff]  ;;  %v3916_v21 = vld [vmem:[#allocation16 + $0x548] sm:$0xff] }
 0x67a   : > { %5695 = vmatprep.subr.bf16.mxu0 %v5694_v58  ;;  %v3801_v58 = vld [vmem:[#allocation16 + $0x410] sm:$0xff]  ;;  %v5778_v7 = vpack.c.bf16 %v3926_v57, %v3925_v15  ;;  %v3810_v61 = vld [vmem:[#allocation16 + $0x458] sm:$0xff] }
 0x67b   : > { %5725 = vmatpush3.bf16.msra.mxu1 %v5724_v12  ;;  %v5776_v12 = vpack.c.bf16 %v3908_v55, %v3907_v26  ;;  %v5748_v10 = vpack.c.bf16 %v3802_v18, %v3801_v58  ;;  %v3828_v26 = vld [vmem:[#allocation16 + $0x4e8] sm:$0xff]  ;;  %v3918_v15 = vld [vmem:[#allocation16 + $0x558] sm:$0xff]  ;;  %v3811_v18 = vld [vmem:[#allocation16 + $0x460] sm:$0xff] }
 0x67c   : > { %5727 = vmatprep.subr.bf16.mxu1 %v5726_v6  ;;  %v3723_v6 = vrot.slane %v7132_v22, 3 }
 0x67d   : > { %5697 = vmatpush3.bf16.msra.mxu0 %v5696_v9  ;;  %v3910_v9 = vld [vmem:[#allocation16 + $0x518] sm:$0xff] }
 0x67e   : > { %5699 = vmatprep.subr.bf16.mxu0 %v5698_v20  ;;  %v3927_v20 = vld [vmem:[#allocation16 + $0x5a0] sm:$0xff]  ;;  %v5780_v13 = vpack.c.bf16 %v3910_v9, %v3909_v4  ;;  %v3920_v4 = vld [vmem:[#allocation16 + $0x568] sm:$0xff] }
 0x67f   : > { %5729 = vmatpush3.bf16.msra.mxu1 %v5728_v27  ;;  %v3803_v27 = vld [vmem:[#allocation16 + $0x420] sm:$0xff]  ;;  %v5782_v38 = vpack.c.bf16 %v3928_v35, %v3927_v20  ;;  %v5770_v20 = vpack.c.bf16 %v3830_v45, %v3829_v28  ;;  %v3813_v35 = vld [vmem:[#allocation16 + $0x470] sm:$0xff] }
 0x680   : > { %5731 = vmatprep.subr.bf16.mxu1 %v5730_v29  ;;  %v3821_v29 = vld [vmem:[#allocation16 + $0x4b0] sm:$0xff]  ;;  %v5752_v36 = vpack.c.bf16 %v3804_v52, %v3803_v27  ;;  %v4031_v52 = vld [vmem:[#allocation16 + $0x680] sm:$0xff] }
 0x681   : > { %5701 = vmatpush3.bf16.msra.mxu0 %v5700_v34  ;;  %v3911_v34 = vld [vmem:[#allocation16 + $0x520] sm:$0xff]  ;;  %v5754_v40 = vpack.c.bf16 %v3822_v33, %v3821_v29  ;;  %v3921_v33 = vld [vmem:[#allocation16 + $0x570] sm:$0xff] }
 0x682   : > { %5703 = vmatprep.subr.bf16.mxu0 %v5702_v37  ;;  %v3929_v37 = vld [vmem:[#allocation16 + $0x5b0] sm:$0xff]  ;;  %v5784_v23 = vpack.c.bf16 %v3912_v56, %v3911_v34 }
 0x683   : > { %5733 = vmatpush3.bf16.msra.mxu1 %v5732_v24  ;;  %v3805_v24 = vld [vmem:[#allocation16 + $0x430] sm:$0xff]  ;;  %v5786_v44 = vpack.c.bf16 %v3930_v39, %v3929_v37  ;;  %v4016_v37 = vld [vmem:[#allocation16 + $0x608] sm:$0xff] }
 0x684   : > { %5735 = vmatprep.subr.bf16.mxu1 %v5734_v11  ;;  %v3823_v11 = vld [vmem:[#allocation16 + $0x4c0] sm:$0xff]  ;;  %v5756_v48 = vpack.c.bf16 %v3806_v30, %v3805_v24  ;;  %v4034_v24 = vld [vmem:[#allocation16 + $0x698] sm:$0xff] }
 0x685   : > { %5705 = vmatpush3.bf16.msra.mxu0 %v5704_v46  ;;  %v3913_v46 = vld [vmem:[#allocation16 + $0x530] sm:$0xff]  ;;  %v5758_v43 = vpack.c.bf16 %v3824_v42, %v3823_v11 }
 0x686   : > { %5707 = vmatprep.subr.bf16.mxu0 %v5706_v49  ;;  %v3931_v49 = vld [vmem:[#allocation16 + $0x5c0] sm:$0xff]  ;;  %v5788_v25 = vpack.c.bf16 %v3914_v47, %v3913_v46  ;;  %v4017_v42 = vld [vmem:[#allocation16 + $0x610] sm:$0xff]  ;;  %v4048_v46 = vrot.slane %v7134_v32, 6 }
 0x687   : > { %5737 = vmatpush3.bf16.msra.mxu1 %v5736_v50  ;;  %v3807_v50 = vld [vmem:[#allocation16 + $0x440] sm:$0xff]  ;;  %v5790_v1 = vpack.c.bf16 %v3932_v31, %v3931_v49  ;;  %v3939_v49 = vrot.slane %v7132_v22, 5  ;;  %v4021_v32 = vld [vmem:[#allocation16 + $0x630] sm:$0xff] }
 0x688   : > { %5739 = vmatprep.subr.bf16.mxu1 %v5738_v63  ;;  %v3825_v63 = vld [vmem:[#allocation16 + $0x4d0] sm:$0xff]  ;;  %v5760_v2 = vpack.c.bf16 %v3808_v54, %v3807_v50  ;;  %v4035_v47 = vld [vmem:[#allocation16 + $0x6a0] sm:$0xff]  ;;  %v4020_v54 = vld [vmem:[#allocation16 + $0x628] sm:$0xff] }
 0x689   : > { %5709 = vmatpush3.bf16.msra.mxu0 %v5708_v17  ;;  %v3915_v17 = vld [vmem:[#allocation16 + $0x540] sm:$0xff]  ;;  %v5762_v19 = vpack.c.bf16 %v3826_v0, %v3825_v63  ;;  %v4038_v63 = vld [vmem:[#allocation16 + $0x6b8] sm:$0xff] }
 0x68a   : > { %5743 = vmatprep.subr.bf16.mxu0 %v5742_v16  ;;  %v3933_v16 = vld [vmem:[#allocation16 + $0x5d0] sm:$0xff]  ;;  %v5792_v53 = vpack.c.bf16 %v3916_v21, %v3915_v17  ;;  %v4019_v50 = vld [vmem:[#allocation16 + $0x620] sm:$0xff]  ;;  %v4022_v17 = vld [vmem:[#allocation16 + $0x638] sm:$0xff] }
 0x68b   : > { %5741 = vmatpush3.bf16.msra.mxu1 %v5740_v60  ;;  %v3809_v60 = vld [vmem:[#allocation16 + $0x450] sm:$0xff]  ;;  %v5794_v55 = vpack.c.bf16 %v3934_v59, %v3933_v16  ;;  %v5816_v0 = vpack.c.bf16 %v4020_v54, %v4019_v50  ;;  %v4039_v21 = vld [vmem:[#allocation16 + $0x6c0] sm:$0xff]  ;;  %v5820_v16 = vpack.c.bf16 %v4022_v17, %v4021_v32 }
 0x68c   : > { %3684 = vmatmul.mubr.f32.vlgmr.msra.gmra.mrb[14].mxu0 %v3615_v5  ;;  %5775 = vmatprep.subr.bf16.mxu1 %v5774_v62  ;;  %v3827_v62 = vld [vmem:[#allocation16 + $0x4e0] sm:$0xff]  ;;  %v5764_v57 = vpack.c.bf16 %v3810_v61, %v3809_v60  ;;  %v4024_v60 = vld [vmem:[#allocation16 + $0x648] sm:$0xff]  ;;  %v4041_v61 = vld [vmem:[#allocation16 + $0x6d0] sm:$0xff] }
 0x68d   : > { %5745 = vmatpush3.bf16.msra.mxu0 %v5744_v3  ;;  %3899 = vmatprep.mubr.f32.mxu0 %v3832_v8  ;;  %v3917_v3 = vld [vmem:[#allocation16 + $0x550] sm:$0xff]  ;;  %v3935_v5 = vld [vmem:[#allocation16 + $0x5e0] sm:$0xff]  ;;  %v5766_v58 = vpack.c.bf16 %v3828_v26, %v3827_v62  ;;  %v3812_v8 = vld [vmem:[#allocation16 + $0x468] sm:$0xff] }
 0x68e   : > { %3792 = vmatmul.mubr.f32.vlgmr.msra.gmra.mrb[26].mxu1 %v3723_v6  ;;  %5747 = vmatprep.subr.bf16.mxu0 %v5746_v51  ;;  %v3936_v51 = vld [vmem:[#allocation16 + $0x5e8] sm:$0xff]  ;;  %v5768_v9 = vpack.c.bf16 %v3812_v8, %v3811_v18  ;;  %v4045_v8 = vld [vmem:[#allocation16 + $0x6f0] sm:$0xff] }
 0x68f   : > { %5777 = vmatpush3.bf16.msra.mxu1 %v5776_v12  ;;  %4007 = vmatprep.mubr.f32.mxu1 %v3940_v41  ;;  %v5796_v12 = vpack.c.bf16 %v3918_v15, %v3917_v3  ;;  %v5798_v6 = vpack.c.bf16 %v3936_v51, %v3935_v5  ;;  %v3937_v41 = vld [vmem:[#allocation16 + $0x5f0] sm:$0xff]  ;;  %v4026_v3 = vld [vmem:[#allocation16 + $0x658] sm:$0xff]  ;;  %v4043_v15 = vld [vmem:[#allocation16 + $0x6e0] sm:$0xff] }
 0x690   : > { %5779 = vmatprep.subr.bf16.mxu1 %v5778_v7  ;;  %v3919_v7 = vld [vmem:[#allocation16 + $0x560] sm:$0xff]  ;;  %v4028_v18 = vld [vmem:[#allocation16 + $0x668] sm:$0xff] }
 0x691   : > { %5749 = vmatpush3.bf16.msra.mxu0 %v5748_v10  ;;  %v3938_v10 = vld [vmem:[#allocation16 + $0x5f8] sm:$0xff]  ;;  %v5800_v27 = vpack.c.bf16 %v3920_v4, %v3919_v7 }
 0x692   : > { %5751 = vmatprep.subr.bf16.mxu0 %v5750_v14  ;;  %v3814_v14 = vld [vmem:[#allocation16 + $0x478] sm:$0xff]  ;;  %v5802_v29 = vpack.c.bf16 %v3938_v10, %v3937_v41  ;;  %v3368_v10 = vld [vmem:[#allocation17] sm:$0x1] }
 0x693   : > { %5781 = vmatpush3.bf16.msra.mxu1 %v5780_v13  ;;  %v4032_v13 = vld [vmem:[#allocation16 + $0x688] sm:$0xff]  ;;  %v5772_v34 = vpack.c.bf16 %v3814_v14, %v3813_v35  ;;  %v4030_v7 = vld [vmem:[#allocation16 + $0x678] sm:$0xff] }
 0x694   : > { %5783 = vmatprep.subr.bf16.mxu1 %v5782_v38  ;;  %v3922_v38 = vld [vmem:[#allocation16 + $0x578] sm:$0xff]  ;;  %v5806_v56 = vpack.c.bf16 %v4032_v13, %v4031_v52 }
 0x695   : > { %5753 = vmatpush3.bf16.msra.mxu0 %v5752_v36  ;;  %v4015_v36 = vld [vmem:[#allocation16 + $0x600] sm:$0xff]  ;;  %v5804_v39 = vpack.c.bf16 %v3922_v38, %v3921_v33 }
 0x696   : > { %5755 = vmatprep.subr.bf16.mxu0 %v5754_v40  ;;  %v4033_v40 = vld [vmem:[#allocation16 + $0x690] sm:$0xff]  ;;  %v5808_v30 = vpack.c.bf16 %v4016_v37, %v4015_v36 }
 0x697   : > { %5785 = vmatpush3.bf16.msra.mxu1 %v5784_v23  ;;  %v3831_v23 = vrot.slane %v7132_v22, 4  ;;  %v5810_v11 = vpack.c.bf16 %v4034_v24, %v4033_v40 }
 0x698   : > { %5787 = vmatprep.subr.bf16.mxu1 %v5786_v44  ;;  %v4018_v44 = vld [vmem:[#allocation16 + $0x618] sm:$0xff] }
 0x699   : > { %5757 = vmatpush3.bf16.msra.mxu0 %v5756_v48  ;;  %v4036_v48 = vld [vmem:[#allocation16 + $0x6a8] sm:$0xff]  ;;  %v5812_v31 = vpack.c.bf16 %v4018_v44, %v4017_v42 }
 0x69a   : > { %5759 = vmatprep.subr.bf16.mxu0 %v5758_v43  ;;  %v5814_v43 = vpack.c.bf16 %v4036_v48, %v4035_v47 }
 0x69b   : > { %5789 = vmatpush3.bf16.msra.mxu1 %v5788_v25  ;;  %v4037_v25 = vld [vmem:[#allocation16 + $0x6b0] sm:$0xff] }
 0x69c   : > { %5791 = vmatprep.subr.bf16.mxu1 %v5790_v1  ;;  %v5818_v1 = vpack.c.bf16 %v4038_v63, %v4037_v25 }
 0x69d   : > { %5761 = vmatpush3.bf16.msra.mxu0 %v5760_v2  ;;  %v4040_v2 = vld [vmem:[#allocation16 + $0x6c8] sm:$0xff] }
 0x69e   : > { %5763 = vmatprep.subr.bf16.mxu0 %v5762_v19  ;;  %v5822_v59 = vpack.c.bf16 %v4040_v2, %v4039_v21  ;;  %v4023_v19 = vld [vmem:[#allocation16 + $0x640] sm:$0xff] }
 0x69f   : > { %5793 = vmatpush3.bf16.msra.mxu1 %v5792_v53  ;;  %v4042_v53 = vld [vmem:[#allocation16 + $0x6d8] sm:$0xff]  ;;  %v5824_v62 = vpack.c.bf16 %v4024_v60, %v4023_v19 }
 0x6a0   : > { %5795 = vmatprep.subr.bf16.mxu1 %v5794_v55  ;;  %v5826_v26 = vpack.c.bf16 %v4042_v53, %v4041_v61  ;;  %v4025_v55 = vld [vmem:[#allocation16 + $0x650] sm:$0xff] }
 0x6a1   : > { %5765 = vmatpush3.bf16.msra.mxu0 %v5764_v57  ;;  %v4044_v57 = vld [vmem:[#allocation16 + $0x6e8] sm:$0xff]  ;;  %v5828_v5 = vpack.c.bf16 %v4026_v3, %v4025_v55 }
 0x6a2   : > { %5767 = vmatprep.subr.bf16.mxu0 %v5766_v58  ;;  %v5830_v51 = vpack.c.bf16 %v4044_v57, %v4043_v15  ;;  %v4027_v58 = vld [vmem:[#allocation16 + $0x660] sm:$0xff] }
 0x6a3   : > { %5797 = vmatpush3.bf16.msra.mxu1 %v5796_v12  ;;  %v4046_v12 = vld [vmem:[#allocation16 + $0x6f8] sm:$0xff]  ;;  %v5832_v28 = vpack.c.bf16 %v4028_v18, %v4027_v58 }
 0x6a4   : > { %5799 = vmatprep.subr.bf16.mxu1 %v5798_v6  ;;  %v5834_v45 = vpack.c.bf16 %v4046_v12, %v4045_v8  ;;  %v4029_v6 = vld [vmem:[#allocation16 + $0x670] sm:$0xff] }
 0x6a5   : > { %5769 = vmatpush3.bf16.msra.mxu0 %v5768_v9  ;;  %v5836_v4 = vpack.c.bf16 %v4030_v7, %v4029_v6  ;;  %v4047_v9 = vrot.slane %v7132_v22, 6 }
 0x6a6   : > { %5771 = vmatprep.subr.bf16.mxu0 %v5770_v20 }
 0x6a7   : > { %5801 = vmatpush3.bf16.msra.mxu1 %v5800_v27 }
 0x6a8   : > { %5803 = vmatprep.subr.bf16.mxu1 %v5802_v29 }
 0x6a9   : > { %5773 = vmatpush3.bf16.msra.mxu0 %v5772_v34 }
 0x6aa   : > { %5807 = vmatprep.subr.bf16.mxu0 %v5806_v56 }
 0x6ab   : > { %5805 = vmatpush3.bf16.msra.mxu1 %v5804_v39 }
 0x6ac   : > { %3900 = vmatmul.mubr.f32.vlgmr.msra.gmra.mrb[16].mxu0 %v3831_v23 }
 0x6ad   : > { %5809 = vmatpush3.bf16.msra.mxu0 %v5808_v30  ;;  %4115 = vmatprep.mubr.f32.mxu0 %v4048_v46 }
 0x6ae   : > { %4008 = vmatmul.mubr.f32.vlgmr.msra.gmra.mrb[28].mxu1 %v3939_v49  ;;  %5811 = vmatprep.subr.bf16.mxu0 %v5810_v11 }
 0x6b1   : > { %5813 = vmatpush3.bf16.msra.mxu0 %v5812_v31 }
 0x6b2   : > { %5815 = vmatprep.subr.bf16.mxu0 %v5814_v43 }
 0x6b5   : > { %5817 = vmatpush3.bf16.msra.mxu0 %v5816_v0 }
 0x6b6   : > { %5819 = vmatprep.subr.bf16.mxu0 %v5818_v1 }
 0x6b9   : > { %5821 = vmatpush3.bf16.msra.mxu0 %v5820_v16 }
 0x6ba   : > { %5823 = vmatprep.subr.bf16.mxu0 %v5822_v59 }
 0x6bd   : > { %5825 = vmatpush3.bf16.msra.mxu0 %v5824_v62 }
 0x6be   : > { %5827 = vmatprep.subr.bf16.mxu0 %v5826_v26 }
 0x6c1   : > { %5829 = vmatpush3.bf16.msra.mxu0 %v5828_v5 }
 0x6c2   : > { %5831 = vmatprep.subr.bf16.mxu0 %v5830_v51 }
 0x6c5   : > { %5833 = vmatpush3.bf16.msra.mxu0 %v5832_v28 }
 0x6c6   : > { %5835 = vmatprep.subr.bf16.mxu0 %v5834_v45 }
 0x6c9   : > { %5837 = vmatpush3.bf16.msra.mxu0 %v5836_v4 }
 0x6cc   : > { %4116 = vmatmul.mubr.f32.vlgmr.msra.gmra.mrb[18].mxu0 %v4047_v9 }
 0x73f   : > { %v4409_v41 = vpop.f32.mrb[12].mxu0 }
 0x740   : > { %v4410_v20 = vpop.f32.mrb[13].mxu0 }
 0x741   : > { %v4411_v35 = vadd.f32 %v4410_v20, %v4409_v41  ;;  %v4444_v14 = vpop.f32.mrb[24].mxu1 }
 0x742   : > { %v4445_v27 = vpop.f32.mrb[25].mxu1 }
 0x743   : > { %v3471_v52 = vadd.f32 %v4411_v35, %v3368_v10  ;;  %v4446_v13 = vadd.f32 %v4445_v27, %v4444_v14 }
 0x745   : > { %v3581_v29 = vadd.f32 %v4446_v13, %v3471_v52 }
 0x75f   : > { %v4479_v33 = vpop.f32.mrb[14].mxu0 }
 0x760   : > { %v4480_v38 = vpop.f32.mrb[15].mxu0 }
 0x761   : > { %v4481_v34 = vadd.f32 %v4480_v38, %v4479_v33  ;;  %v4514_v56 = vpop.f32.mrb[26].mxu1 }
 0x762   : > { %v4515_v36 = vpop.f32.mrb[27].mxu1 }
 0x763   : > { %v3689_v37 = vadd.f32 %v4481_v34, %v3581_v29  ;;  %v4516_v39 = vadd.f32 %v4515_v36, %v4514_v56 }
 0x765   : > { %v3797_v22 = vadd.f32 %v4516_v39, %v3689_v37 }
 0x77f   : > { %v4549_v40 = vpop.f32.mrb[16].mxu0 }
 0x780   : > { %v4550_v24 = vpop.f32.mrb[17].mxu0 }
 0x781   : > { %v4551_v30 = vadd.f32 %v4550_v24, %v4549_v40  ;;  %v4584_v23 = vpop.f32.mrb[28].mxu1 }
 0x782   : > { %v4585_v11 = vpop.f32.mrb[29].mxu1 }
 0x783   : > { %v3905_v42 = vadd.f32 %v4551_v30, %v3797_v22  ;;  %v4586_v44 = vadd.f32 %v4585_v11, %v4584_v23 }
 0x785   : > { %v4013_v46 = vadd.f32 %v4586_v44, %v3905_v42 }
 0x79f   : > { %v4619_v47 = vpop.f32.mrb[18].mxu0 }
 0x7a0   : > { %v4620_v48 = vpop.f32.mrb[19].mxu0 }
 0x7a1   : > { %v4621_v49 = vadd.f32 %v4620_v48, %v4619_v47 }
 0x7a3   : > { %v4121_v31 = vadd.f32 %v4621_v49, %v4013_v46 }
 0x7a5   : > { %4122 = vst [vmem:[%s549_s1] sm:$0x1] %v4121_v31 }
 0x7a6   : > { %6365 = shalt.err (!%p6362_p10)
}
 0x7a7   : > { %s6366_s14 = scalar_lea.hbm %s7157_s30, 16  ;;  %s6370_s23 = scalar_lea.hbm %s7211_s12, 32 }
 0x7a8   : > { %p6367_p2 = scmp.ne.s32.totalorder %s7157_s30, %s6366_s14  ;;  %p6371_p7 = scmp.lt.u32.totalorder %s7157_s30, %s7211_s12 }
 0x7a9   : > { %p6372_p8 = scmp.lt.u32.totalorder %s6370_s23, %s6366_s14  ;;  %p6374_p13 = scmp.lt.u32.totalorder %s6366_s14, %s7157_s30 }
 0x7aa   : > { %p6368_p3 = pnand %p6367_p2, %p7265_p1 }
 0x7ab   : > { %p6373_p11 = por %p6372_p8, %p6371_p7 }
 0x7ac   : > { %p6369_p4 = pneg %p6368_p3 }
 0x7ad   : > { %p6375_p0 = por %p6374_p13, %p6373_p11 }
 0x7af   : > { %p6376_p6 = pnand %p6375_p0, %p6369_p4 }
 0x7b1   : > { %6379 = shalt.err (!%p6376_p6)
}
 0x7b2   : > { %5966 = dma.vmem_to_hbm [thread:$0]  (%p7265_p1), %s7159_s6, 16, %s7157_s30, %s4129_s4  }
 0x7b3 PF: > { %s7266_s19 = sld [smem:[#allocation29_spill]]  ;;  %s7267_s2 = sld [smem:[#allocation27_spill]] }
 0x7b4   : > { %s7268_s29 = sld [smem:[#allocation32_spill]] }
 0x7b9   : > { %p6023_p5 = scmp.ge.s32.totalorder %s7266_s19, 2  ;;  %s4164_s28 = sand.u32 1, %s7267_s2  }
 0x7ba   : > { %p7269_p9 = scmp.ne.s32.totalorder %s7268_s29, 0  ;;  %s4165_s26 = scalar_lea.sflag [#allocation4], %s4164_s28 }
 0x7bc   : > { %p6000_p12 = pnand %p6023_p5, %p7269_p9 }
 0x7be   : > { %6421 = dma.done.wait (!%p6000_p12), %s4165_s26, 16  }
 0x7bf   : > { %6423 = vsyncadd (!%p6000_p12), %s4165_s26, 4294967280  ;;  %s7270_s24 = sld [smem:[#allocation30_spill]]  ;;  %s7271_s1 = sld [smem:[#allocation28_spill]] }
 0x7c0   : > { %s7272_s23 = sld [smem:[#allocation31_spill]]  ;;  %s7273_s21 = smov %s6430_s22 }
 0x7c5   : > { %p29_p10 = scmp.ge.s32.totalorder %s7270_s24, 4   ;;  %s7274_s22 = smov %s7271_s1 }
 0x7c7   :  { %31 = sbr.rel (!%p29_p10) target bundleno = 15 (0xf), region = 158 }
 0x7ce   :  { %4169 = vsyncpa [#allocation3], 1 }
 0x7cf   :  { %4171 = vsyncpa [#allocation3 + $0x1], 1 }
 0x7d0   :  { %4172 = vsyncpa [#allocation6], 1 }
 0x7d1   :  { %4173 = vsyncpa [#allocation9], 1 }
 0x7d2   :  { %4174 = vsyncpa [#allocation12], 1 }
 0x7d3   :  { %4175 = vsyncpa [#allocation15], 1 }
 0x7d4   :  { %4176 = vsyncpa [#allocation18], 1 }
 0x7d5   :  { %4177 = vsyncpa [#allocation4], 1 }
 0x7d6   :  { %4179 = vsyncpa [#allocation4 + $0x1], 1 }

</bundles_post_ra>
